<compile_context>
chip_gen: v7x
topology: tpu7x:2x2x1
jax: 0.10.0
libtpu: 0.0.40
codegen_flags: <defaults>
</compile_context>

<pallas_src>
import jax
import jax.numpy as jnp
from jax.experimental import pallas as pl
from jax.experimental.pallas import tpu as pltpu


TM_DEFAULT = 256


def _round_up(n, m):
    return ((n + m - 1) // m) * m


# ----------------------------------------------------------------------------
# Pallas kernels
# ----------------------------------------------------------------------------
def _matmul_shift_relu_kernel(a_ref, w_ref, shift_ref, o_ref):
    """o = relu(A @ W + shift); bf16 operands, f32 MXU accumulation."""
    acc = jnp.dot(a_ref[...], w_ref[...], preferred_element_type=jnp.float32)
    y = jnp.maximum(acc + shift_ref[...], 0.0)
    o_ref[...] = y.astype(o_ref.dtype)


def _fused_matmul_shift_relu(a, w, shift, *, tm=TM_DEFAULT):
    """a: (M, K) bf16, w: (K, C) bf16, shift: (1, C) f32 -> (M, C) bf16.

    Tiled over M with a parallel grid axis so the DMA of tile i+1 overlaps the
    compute of tile i and the grid can be sharded across TensorCores.
    """
    M, K = a.shape
    Kw, C = w.shape
    assert K == Kw
    tm = min(tm, _round_up(M, 8))
    mp = _round_up(M, tm)
    if mp != M:
        a = jnp.pad(a, ((0, mp - M), (0, 0)))
    cost = pl.CostEstimate(
        flops=2 * mp * K * C,
        transcendentals=0,
        bytes_accessed=mp * K * 2 + K * C * 2 + C * 4 + mp * C * 2,
    )
    out = pl.pallas_call(
        _matmul_shift_relu_kernel,
        out_shape=jax.ShapeDtypeStruct((mp, C), jnp.bfloat16),
        grid=(mp // tm,),
        in_specs=[
            pl.BlockSpec((tm, K), lambda i: (i, 0)),
            pl.BlockSpec((K, C), lambda i: (0, 0)),
            pl.BlockSpec((1, C), lambda i: (0, 0)),
        ],
        out_specs=pl.BlockSpec((tm, C), lambda i: (i, 0)),
        compiler_params=pltpu.CompilerParams(
            dimension_semantics=("parallel",),
            vmem_limit_bytes=48 * 1024 * 1024,
        ),
        cost_estimate=cost,
    )(a, w, shift)
    if mp != M:
        out = out[:M]
    return out


def _head_kernel(x_ref, w_ref, o_ref):
    """Global-average-pool over spatial, fc (no bias), log_softmax over classes.

    x_ref: (N, P, C) bf16 -- P = 7*7 spatial positions, C = 128
    w_ref: (C, NUM_CLASSES) f32
    o_ref: (N, NUM_CLASSES) f32
    """
    x = x_ref[...].astype(jnp.float32)
    g = jnp.mean(x, axis=1)                      # (N, C) == AvgPool2d(7) on 7x7
    logits = jnp.dot(g, w_ref[...], preferred_element_type=jnp.float32)
    m = jnp.max(logits, axis=1, keepdims=True)
    z = logits - m
    lse = jnp.log(jnp.sum(jnp.exp(z), axis=1, keepdims=True))
    o_ref[...] = z - lse                         # log_softmax(dim=1)


def _head(x_npc, fc_w):
    N, P, C = x_npc.shape
    Cw, NC = fc_w.shape
    assert C == Cw
    # TODO(synk): could be folded into the conv8 pallas_call's finalize path to
    # save one dispatch; kept separate for robustness at this tiny size.
    return pl.pallas_call(
        _head_kernel,
        out_shape=jax.ShapeDtypeStruct((N, NC), jnp.float32),
        grid=(1,),
        in_specs=[
            pl.BlockSpec((N, P, C), lambda i: (0, 0, 0)),
            pl.BlockSpec((C, NC), lambda i: (0, 0)),
        ],
        out_specs=pl.BlockSpec((N, NC), lambda i: (0, 0)),
    )(x_npc, fc_w)


# ----------------------------------------------------------------------------
# Glue: im2col, conv block, maxpool
# ----------------------------------------------------------------------------
def _im2col3x3(x_nhwc):
    """(N,H,W,C) -> (N*H*W, 9*C), 'same' padding, (dy, dx, c) column order."""
    # TODO(synk): the 9x-expanded activation is still materialised in HBM; a
    # halo'd in-kernel 9-tap shifted-matmul would remove this traffic entirely.
    N, H, W, C = x_nhwc.shape
    xp = jnp.pad(x_nhwc, ((0, 0), (1, 1), (1, 1), (0, 0)))
    cols = [xp[:, dy:dy + H, dx:dx + W, :] for dy in range(3) for dx in range(3)]
    return jnp.concatenate(cols, axis=-1).reshape(N * H * W, 9 * C)


def _conv_block(x_nhwc, p):
    """3x3 'same' conv (optionally with a fused 1x1 branch) + BN(eval) + ReLU."""
    N, H, W, Cin = x_nhwc.shape
    K, Cout = p["w"].shape
    assert K == 9 * Cin
    a = _im2col3x3(x_nhwc)
    out = _fused_matmul_shift_relu(a, p["w"], p["shift"])
    return out.reshape(N, H, W, Cout)


def _maxpool2x2(x_nhwc):
    N, H, W, C = x_nhwc.shape
    return x_nhwc.reshape(N, H // 2, 2, W // 2, 2, C).max(axis=(2, 4))


# ----------------------------------------------------------------------------
# Parameters: deterministic synthetic init + BN folding + tran/conv merging
# ----------------------------------------------------------------------------
def _bn_fold(gamma, beta, running_mean, running_var, eps=1e-5):
    scale = gamma / jnp.sqrt(running_var + eps)
    shift = beta - running_mean * scale
    return scale.astype(jnp.float32), shift.astype(jnp.float32)


_LAYER_DEFS = {
    # name: (k, cin, cout)
    "tran1": (1, 3, 32),
    "conv1": (3, 3, 32),
    "conv2": (3, 32, 32),
    "tran2": (1, 32, 64),
    "conv3": (3, 32, 64),
    "conv4": (3, 64, 64),
    "conv5": (3, 64, 64),
    "tran3": (1, 64, 128),
    "conv6": (3, 64, 128),
    "conv7": (3, 128, 128),
    "conv8": (3, 128, 128),
}


def _init_raw_params(key):
    """Deterministic synthetic conv / BN / fc parameters (not a checkpoint)."""
    raw = {}
    keys = jax.random.split(key, len(_LAYER_DEFS) + 1)
    for (name, (k, cin, cout)), kk in zip(_LAYER_DEFS.items(), keys):
        fan_in = k * k * cin
        w = jax.random.normal(kk, (k, k, cin, cout), jnp.float32) / jnp.sqrt(fan_in)
        c = jnp.arange(cout, dtype=jnp.float32)
        gamma = 1.0 + 0.01 * jnp.cos(c)
        beta = 0.01 * jnp.sin(c)
        r_mean = 0.001 * c / cout
        r_var = jnp.ones((cout,), jnp.float32) + 0.05 * (c / cout)
        scale, shift = _bn_fold(gamma, beta, r_mean, r_var)
        raw[name] = {"w": w, "scale": scale, "shift": shift}
    raw["fc_w"] = jax.random.normal(keys[-1], (128, 10), jnp.float32) / jnp.sqrt(128.0)
    return raw


def _fold3x3(w, scale):
    k, _, cin, cout = w.shape
    return (w * scale[None, None, None, :]).reshape(k * k * cin, cout)


def _prepare_params(raw):
    """Fold BN scale into weights; merge 1x1 'tran' branches into the 3x3 convs."""
    def single(name):
        p = raw[name]
        wm = _fold3x3(p["w"], p["scale"])
        return {"w": wm.astype(jnp.bfloat16),
                "shift": p["shift"].reshape(1, -1).astype(jnp.float32)}

    def pair(tran_name, conv_name):
        t, c = raw[tran_name], raw[conv_name]
        cin = c["w"].shape[2]
        c1 = t["w"].shape[3]
        # 1x1 weight embedded at the centre tap (dy=1, dx=1) of the 3x3 im2col.
        w1 = (t["w"] * t["scale"][None, None, None, :]).reshape(cin, c1)
        w1e = jnp.zeros((9 * cin, c1), jnp.float32).at[4 * cin:5 * cin, :].set(w1)
        w3 = _fold3x3(c["w"], c["scale"])
        wm = jnp.concatenate([w1e, w3], axis=1)          # (9*cin, c1 + c3)
        shift = jnp.concatenate([t["shift"], c["shift"]]).reshape(1, -1)
        return {"w": wm.astype(jnp.bfloat16), "shift": shift.astype(jnp.float32)}

    return {
        "pair1": pair("tran1", "conv1"),
        "conv2": single("conv2"),
        "pair2": pair("tran2", "conv3"),
        "conv4": single("conv4"),
        "conv5": single("conv5"),
        "pair3": pair("tran3", "conv6"),
        "conv7": single("conv7"),
        "conv8": single("conv8"),
        "fc_w": raw["fc_w"].astype(jnp.float32),
    }


# ----------------------------------------------------------------------------
# Full QuizDNN forward
# ----------------------------------------------------------------------------
@jax.jit
def quizdnn_forward(x_nchw, params):
    # Accept NCHW (PyTorch layout), compute NHWC channels-last in bf16.
    x = jnp.transpose(x_nchw, (0, 2, 3, 1)).astype(jnp.bfloat16)

    # --- stage 1 -----------------------------------------------------------
    o = _conv_block(x, params["pair1"])            # [tran1 | conv1] -> 64 ch
    x1, x2 = o[..., :32], o[..., 32:]
    s12 = x1 + x2
    x3 = _conv_block(s12, params["conv2"])
    y4 = _maxpool2x2(s12 + x3)

    # --- stage 2 -----------------------------------------------------------
    o = _conv_block(y4, params["pair2"])           # [tran2 | conv3] -> 128 ch
    x4, x5 = o[..., :64], o[..., 64:]
    s45 = x4 + x5
    x6 = _conv_block(s45, params["conv4"])
    x7 = _conv_block(s45 + x6, params["conv5"])
    y8 = _maxpool2x2(x5 + x6 + x7)

    # --- stage 3 -----------------------------------------------------------
    o = _conv_block(y8, params["pair3"])           # [tran3 | conv6] -> 256 ch
    x8, x9 = o[..., :128], o[..., 128:]
    s89 = x8 + x9
    x10 = _conv_block(s89, params["conv7"])
    x11 = _conv_block(s89 + x10, params["conv8"])

    # --- head: GAP(7) + Linear(128->10, no bias) + log_softmax --------------
    N, H, W, C = x11.shape
    return _head(x11.reshape(N, H * W, C), params["fc_w"])


if __name__ == "__main__":
    key = jax.random.PRNGKey(0)
    k_x, k_p = jax.random.split(key)
    # 28x28 input so two 2x2 maxpools give the 7x7 map AvgPool2d(7) expects.
    x = jax.random.normal(k_x, (2, 3, 28, 28), jnp.float32)
    params = _prepare_params(_init_raw_params(k_p))

    out = quizdnn_forward(x, params)
    out = jax.block_until_ready(out)

    assert out.shape == (2, 10)
    # log_softmax rows must sum to ~1 in prob space
    assert jnp.allclose(jnp.sum(jnp.exp(out), axis=1), 1.0, atol=1e-4)
    print("KERNEL_OK")
</pallas_src>

<mosaic_0001>
module attributes {stable_mosaic.version = 11 : i64} {
  func.func @_matmul_shift_relu_kernel(%arg0: i32, %arg1: memref<256x27xbf16, #tpu.memory_space<vmem>>, %arg2: memref<27x64xbf16, #tpu.memory_space<vmem>>, %arg3: memref<1x64xf32, #tpu.memory_space<vmem>>, %arg4: memref<256x64xbf16, #tpu.memory_space<vmem>>) attributes {dimension_semantics = [#tpu.dimension_semantics<parallel>], iteration_bounds = array<i64: 7>, scalar_prefetch = 0 : i64, scratch_operands = 0 : i64, tpu.core_type = #tpu.core_type<tc>, window_params = [{transform_indices = @transform_0, window_bounds = array<i64: 256, 27>}, {pipeline_mode = #tpu.pipeline_mode<synchronous>, transform_indices = @transform_1, window_bounds = array<i64: 27, 64>}, {pipeline_mode = #tpu.pipeline_mode<synchronous>, transform_indices = @transform_2, window_bounds = array<i64: 1, 64>}, {transform_indices = @transform_3, window_bounds = array<i64: 256, 64>}]} {
    %c0 = arith.constant 0 : index
    %c0_0 = arith.constant 0 : index
    %0 = vector.load %arg1[%c0, %c0_0] : memref<256x27xbf16, #tpu.memory_space<vmem>>, vector<256x27xbf16>
    %c0_1 = arith.constant 0 : index
    %c0_2 = arith.constant 0 : index
    %1 = vector.load %arg2[%c0_1, %c0_2] : memref<27x64xbf16, #tpu.memory_space<vmem>>, vector<27x64xbf16>
    %cst = arith.constant dense<0.000000e+00> : vector<256x64xf32>
    %2 = tpu.matmul %0, %1, %cst {dimension_numbers = #tpu.dot_dimension_numbers<[1], [0], [0], [1], [0, 0, 1, 1], [], []>} : vector<256x27xbf16>, vector<27x64xbf16>, vector<256x64xf32> -> vector<256x64xf32>
    %c0_3 = arith.constant 0 : index
    %c0_4 = arith.constant 0 : index
    %3 = vector.load %arg3[%c0_3, %c0_4] : memref<1x64xf32, #tpu.memory_space<vmem>>, vector<1x64xf32>
    %4 = vector.broadcast %3 : vector<1x64xf32> to vector<256x64xf32>
    %5 = arith.addf %2, %4 : vector<256x64xf32>
    %cst_5 = arith.constant 0.000000e+00 : f32
    %6 = vector.broadcast %cst_5 : f32 to vector<256x64xf32>
    %7 = arith.maximumf %5, %6 : vector<256x64xf32>
    %8 = arith.truncf %7 : vector<256x64xf32> to vector<256x64xbf16>
    %c0_6 = arith.constant 0 : index
    %c0_7 = arith.constant 0 : index
    %9 = vector.load %arg4[%c0_6, %c0_7] : memref<256x64xbf16, #tpu.memory_space<vmem>>, vector<256x64xbf16>
    tpu.vector_store %arg4[%c0_6, %c0_7], %8 {strides = array<i32>} : memref<256x64xbf16, #tpu.memory_space<vmem>>, vector<256x64xbf16>,
    return
  }
  func.func @transform_0(%arg0: i32) -> (i32, i32) {
    %c0_i32 = arith.constant 0 : i32
    %c0_i32_0 = arith.constant 0 : i32
    return %arg0, %c0_i32 : i32, i32
  }
  func.func @transform_1(%arg0: i32) -> (i32, i32) {
    %c0_i32 = arith.constant 0 : i32
    %c0_i32_0 = arith.constant 0 : i32
    %c0_i32_1 = arith.constant 0 : i32
    return %c0_i32, %c0_i32_0 : i32, i32
  }
  func.func @transform_2(%arg0: i32) -> (i32, i32) {
    %c0_i32 = arith.constant 0 : i32
    %c0_i32_0 = arith.constant 0 : i32
    %c0_i32_1 = arith.constant 0 : i32
    return %c0_i32, %c0_i32_0 : i32, i32
  }
  func.func @transform_3(%arg0: i32) -> (i32, i32) {
    %c0_i32 = arith.constant 0 : i32
    %c0_i32_0 = arith.constant 0 : i32
    return %arg0, %c0_i32 : i32, i32
  }
}

module attributes {stable_mosaic.version = 11 : i64} {
  func.func @_matmul_shift_relu_kernel(%arg0: i32, %arg1: memref<256x288xbf16, #tpu.memory_space<vmem>>, %arg2: memref<288x32xbf16, #tpu.memory_space<vmem>>, %arg3: memref<1x32xf32, #tpu.memory_space<vmem>>, %arg4: memref<256x32xbf16, #tpu.memory_space<vmem>>) attributes {dimension_semantics = [#tpu.dimension_semantics<parallel>], iteration_bounds = array<i64: 7>, scalar_prefetch = 0 : i64, scratch_operands = 0 : i64, tpu.core_type = #tpu.core_type<tc>, window_params = [{transform_indices = @transform_0, window_bounds = array<i64: 256, 288>}, {pipeline_mode = #tpu.pipeline_mode<synchronous>, transform_indices = @transform_1, window_bounds = array<i64: 288, 32>}, {pipeline_mode = #tpu.pipeline_mode<synchronous>, transform_indices = @transform_2, window_bounds = array<i64: 1, 32>}, {transform_indices = @transform_3, window_bounds = array<i64: 256, 32>}]} {
    %c0 = arith.constant 0 : index
    %c0_0 = arith.constant 0 : index
    %0 = vector.load %arg1[%c0, %c0_0] : memref<256x288xbf16, #tpu.memory_space<vmem>>, vector<256x288xbf16>
    %c0_1 = arith.constant 0 : index
    %c0_2 = arith.constant 0 : index
    %1 = vector.load %arg2[%c0_1, %c0_2] : memref<288x32xbf16, #tpu.memory_space<vmem>>, vector<288x32xbf16>
    %cst = arith.constant dense<0.000000e+00> : vector<256x32xf32>
    %2 = tpu.matmul %0, %1, %cst {dimension_numbers = #tpu.dot_dimension_numbers<[1], [0], [0], [1], [0, 0, 1, 1], [], []>} : vector<256x288xbf16>, vector<288x32xbf16>, vector<256x32xf32> -> vector<256x32xf32>
    %c0_3 = arith.constant 0 : index
    %c0_4 = arith.constant 0 : index
    %3 = vector.load %arg3[%c0_3, %c0_4] : memref<1x32xf32, #tpu.memory_space<vmem>>, vector<1x32xf32>
    %4 = vector.broadcast %3 : vector<1x32xf32> to vector<256x32xf32>
    %5 = arith.addf %2, %4 : vector<256x32xf32>
    %cst_5 = arith.constant 0.000000e+00 : f32
    %6 = vector.broadcast %cst_5 : f32 to vector<256x32xf32>
    %7 = arith.maximumf %5, %6 : vector<256x32xf32>
    %8 = arith.truncf %7 : vector<256x32xf32> to vector<256x32xbf16>
    %c0_6 = arith.constant 0 : index
    %c0_7 = arith.constant 0 : index
    %9 = vector.load %arg4[%c0_6, %c0_7] : memref<256x32xbf16, #tpu.memory_space<vmem>>, vector<256x32xbf16>
    tpu.vector_store %arg4[%c0_6, %c0_7], %8 {strides = array<i32>} : memref<256x32xbf16, #tpu.memory_space<vmem>>, vector<256x32xbf16>,
    return
  }
  func.func @transform_0(%arg0: i32) -> (i32, i32) {
    %c0_i32 = arith.constant 0 : i32
    %c0_i32_0 = arith.constant 0 : i32
    return %arg0, %c0_i32 : i32, i32
  }
  func.func @transform_1(%arg0: i32) -> (i32, i32) {
    %c0_i32 = arith.constant 0 : i32
    %c0_i32_0 = arith.constant 0 : i32
    %c0_i32_1 = arith.constant 0 : i32
    return %c0_i32, %c0_i32_0 : i32, i32
  }
  func.func @transform_2(%arg0: i32) -> (i32, i32) {
    %c0_i32 = arith.constant 0 : i32
    %c0_i32_0 = arith.constant 0 : i32
    %c0_i32_1 = arith.constant 0 : i32
    return %c0_i32, %c0_i32_0 : i32, i32
  }
  func.func @transform_3(%arg0: i32) -> (i32, i32) {
    %c0_i32 = arith.constant 0 : i32
    %c0_i32_0 = arith.constant 0 : i32
    return %arg0, %c0_i32 : i32, i32
  }
}

module attributes {stable_mosaic.version = 11 : i64} {
  func.func @_matmul_shift_relu_kernel(%arg0: i32, %arg1: memref<256x288xbf16, #tpu.memory_space<vmem>>, %arg2: memref<288x128xbf16, #tpu.memory_space<vmem>>, %arg3: memref<1x128xf32, #tpu.memory_space<vmem>>, %arg4: memref<256x128xbf16, #tpu.memory_space<vmem>>) attributes {dimension_semantics = [#tpu.dimension_semantics<parallel>], iteration_bounds = array<i64: 2>, scalar_prefetch = 0 : i64, scratch_operands = 0 : i64, tpu.core_type = #tpu.core_type<tc>, window_params = [{transform_indices = @transform_0, window_bounds = array<i64: 256, 288>}, {pipeline_mode = #tpu.pipeline_mode<synchronous>, transform_indices = @transform_1, window_bounds = array<i64: 288, 128>}, {pipeline_mode = #tpu.pipeline_mode<synchronous>, transform_indices = @transform_2, window_bounds = array<i64: 1, 128>}, {transform_indices = @transform_3, window_bounds = array<i64: 256, 128>}]} {
    %c0 = arith.constant 0 : index
    %c0_0 = arith.constant 0 : index
    %0 = vector.load %arg1[%c0, %c0_0] : memref<256x288xbf16, #tpu.memory_space<vmem>>, vector<256x288xbf16>
    %c0_1 = arith.constant 0 : index
    %c0_2 = arith.constant 0 : index
    %1 = vector.load %arg2[%c0_1, %c0_2] : memref<288x128xbf16, #tpu.memory_space<vmem>>, vector<288x128xbf16>
    %cst = arith.constant dense<0.000000e+00> : vector<256x128xf32>
    %2 = tpu.matmul %0, %1, %cst {dimension_numbers = #tpu.dot_dimension_numbers<[1], [0], [0], [1], [0, 0, 1, 1], [], []>} : vector<256x288xbf16>, vector<288x128xbf16>, vector<256x128xf32> -> vector<256x128xf32>
    %c0_3 = arith.constant 0 : index
    %c0_4 = arith.constant 0 : index
    %3 = vector.load %arg3[%c0_3, %c0_4] : memref<1x128xf32, #tpu.memory_space<vmem>>, vector<1x128xf32>
    %4 = vector.broadcast %3 : vector<1x128xf32> to vector<256x128xf32>
    %5 = arith.addf %2, %4 : vector<256x128xf32>
    %cst_5 = arith.constant 0.000000e+00 : f32
    %6 = vector.broadcast %cst_5 : f32 to vector<256x128xf32>
    %7 = arith.maximumf %5, %6 : vector<256x128xf32>
    %8 = arith.truncf %7 : vector<256x128xf32> to vector<256x128xbf16>
    %c0_6 = arith.constant 0 : index
    %c0_7 = arith.constant 0 : index
    %9 = vector.load %arg4[%c0_6, %c0_7] : memref<256x128xbf16, #tpu.memory_space<vmem>>, vector<256x128xbf16>
    tpu.vector_store %arg4[%c0_6, %c0_7], %8 {strides = array<i32>} : memref<256x128xbf16, #tpu.memory_space<vmem>>, vector<256x128xbf16>,
    return
  }
  func.func @transform_0(%arg0: i32) -> (i32, i32) {
    %c0_i32 = arith.constant 0 : i32
    %c0_i32_0 = arith.constant 0 : i32
    return %arg0, %c0_i32 : i32, i32
  }
  func.func @transform_1(%arg0: i32) -> (i32, i32) {
    %c0_i32 = arith.constant 0 : i32
    %c0_i32_0 = arith.constant 0 : i32
    %c0_i32_1 = arith.constant 0 : i32
    return %c0_i32, %c0_i32_0 : i32, i32
  }
  func.func @transform_2(%arg0: i32) -> (i32, i32) {
    %c0_i32 = arith.constant 0 : i32
    %c0_i32_0 = arith.constant 0 : i32
    %c0_i32_1 = arith.constant 0 : i32
    return %c0_i32, %c0_i32_0 : i32, i32
  }
  func.func @transform_3(%arg0: i32) -> (i32, i32) {
    %c0_i32 = arith.constant 0 : i32
    %c0_i32_0 = arith.constant 0 : i32
    return %arg0, %c0_i32 : i32, i32
  }
}

module attributes {stable_mosaic.version = 11 : i64} {
  func.func @_matmul_shift_relu_kernel(%arg0: i32, %arg1: memref<256x576xbf16, #tpu.memory_space<vmem>>, %arg2: memref<576x64xbf16, #tpu.memory_space<vmem>>, %arg3: memref<1x64xf32, #tpu.memory_space<vmem>>, %arg4: memref<256x64xbf16, #tpu.memory_space<vmem>>) attributes {dimension_semantics = [#tpu.dimension_semantics<parallel>], iteration_bounds = array<i64: 2>, scalar_prefetch = 0 : i64, scratch_operands = 0 : i64, tpu.core_type = #tpu.core_type<tc>, window_params = [{transform_indices = @transform_0, window_bounds = array<i64: 256, 576>}, {pipeline_mode = #tpu.pipeline_mode<synchronous>, transform_indices = @transform_1, window_bounds = array<i64: 576, 64>}, {pipeline_mode = #tpu.pipeline_mode<synchronous>, transform_indices = @transform_2, window_bounds = array<i64: 1, 64>}, {transform_indices = @transform_3, window_bounds = array<i64: 256, 64>}]} {
    %c0 = arith.constant 0 : index
    %c0_0 = arith.constant 0 : index
    %0 = vector.load %arg1[%c0, %c0_0] : memref<256x576xbf16, #tpu.memory_space<vmem>>, vector<256x576xbf16>
    %c0_1 = arith.constant 0 : index
    %c0_2 = arith.constant 0 : index
    %1 = vector.load %arg2[%c0_1, %c0_2] : memref<576x64xbf16, #tpu.memory_space<vmem>>, vector<576x64xbf16>
    %cst = arith.constant dense<0.000000e+00> : vector<256x64xf32>
    %2 = tpu.matmul %0, %1, %cst {dimension_numbers = #tpu.dot_dimension_numbers<[1], [0], [0], [1], [0, 0, 1, 1], [], []>} : vector<256x576xbf16>, vector<576x64xbf16>, vector<256x64xf32> -> vector<256x64xf32>
    %c0_3 = arith.constant 0 : index
    %c0_4 = arith.constant 0 : index
    %3 = vector.load %arg3[%c0_3, %c0_4] : memref<1x64xf32, #tpu.memory_space<vmem>>, vector<1x64xf32>
    %4 = vector.broadcast %3 : vector<1x64xf32> to vector<256x64xf32>
    %5 = arith.addf %2, %4 : vector<256x64xf32>
    %cst_5 = arith.constant 0.000000e+00 : f32
    %6 = vector.broadcast %cst_5 : f32 to vector<256x64xf32>
    %7 = arith.maximumf %5, %6 : vector<256x64xf32>
    %8 = arith.truncf %7 : vector<256x64xf32> to vector<256x64xbf16>
    %c0_6 = arith.constant 0 : index
    %c0_7 = arith.constant 0 : index
    %9 = vector.load %arg4[%c0_6, %c0_7] : memref<256x64xbf16, #tpu.memory_space<vmem>>, vector<256x64xbf16>
    tpu.vector_store %arg4[%c0_6, %c0_7], %8 {strides = array<i32>} : memref<256x64xbf16, #tpu.memory_space<vmem>>, vector<256x64xbf16>,
    return
  }
  func.func @transform_0(%arg0: i32) -> (i32, i32) {
    %c0_i32 = arith.constant 0 : i32
    %c0_i32_0 = arith.constant 0 : i32
    return %arg0, %c0_i32 : i32, i32
  }
  func.func @transform_1(%arg0: i32) -> (i32, i32) {
    %c0_i32 = arith.constant 0 : i32
    %c0_i32_0 = arith.constant 0 : i32
    %c0_i32_1 = arith.constant 0 : i32
    return %c0_i32, %c0_i32_0 : i32, i32
  }
  func.func @transform_2(%arg0: i32) -> (i32, i32) {
    %c0_i32 = arith.constant 0 : i32
    %c0_i32_0 = arith.constant 0 : i32
    %c0_i32_1 = arith.constant 0 : i32
    return %c0_i32, %c0_i32_0 : i32, i32
  }
  func.func @transform_3(%arg0: i32) -> (i32, i32) {
    %c0_i32 = arith.constant 0 : i32
    %c0_i32_0 = arith.constant 0 : i32
    return %arg0, %c0_i32 : i32, i32
  }
}

module attributes {stable_mosaic.version = 11 : i64} {
  func.func @_matmul_shift_relu_kernel(%arg0: i32, %arg1: memref<104x576xbf16, #tpu.memory_space<vmem>>, %arg2: memref<576x256xbf16, #tpu.memory_space<vmem>>, %arg3: memref<1x256xf32, #tpu.memory_space<vmem>>, %arg4: memref<104x256xbf16, #tpu.memory_space<vmem>>) attributes {dimension_semantics = [#tpu.dimension_semantics<parallel>], iteration_bounds = array<i64: 1>, scalar_prefetch = 0 : i64, scratch_operands = 0 : i64, tpu.core_type = #tpu.core_type<tc>, window_params = [{transform_indices = @transform_0, window_bounds = array<i64: 104, 576>}, {pipeline_mode = #tpu.pipeline_mode<synchronous>, transform_indices = @transform_1, window_bounds = array<i64: 576, 256>}, {pipeline_mode = #tpu.pipeline_mode<synchronous>, transform_indices = @transform_2, window_bounds = array<i64: 1, 256>}, {transform_indices = @transform_3, window_bounds = array<i64: 104, 256>}]} {
    %c0 = arith.constant 0 : index
    %c0_0 = arith.constant 0 : index
    %0 = vector.load %arg1[%c0, %c0_0] : memref<104x576xbf16, #tpu.memory_space<vmem>>, vector<104x576xbf16>
    %c0_1 = arith.constant 0 : index
    %c0_2 = arith.constant 0 : index
    %1 = vector.load %arg2[%c0_1, %c0_2] : memref<576x256xbf16, #tpu.memory_space<vmem>>, vector<576x256xbf16>
    %cst = arith.constant dense<0.000000e+00> : vector<104x256xf32>
    %2 = tpu.matmul %0, %1, %cst {dimension_numbers = #tpu.dot_dimension_numbers<[1], [0], [0], [1], [0, 0, 1, 1], [], []>} : vector<104x576xbf16>, vector<576x256xbf16>, vector<104x256xf32> -> vector<104x256xf32>
    %c0_3 = arith.constant 0 : index
    %c0_4 = arith.constant 0 : index
    %3 = vector.load %arg3[%c0_3, %c0_4] : memref<1x256xf32, #tpu.memory_space<vmem>>, vector<1x256xf32>
    %4 = vector.broadcast %3 : vector<1x256xf32> to vector<104x256xf32>
    %5 = arith.addf %2, %4 : vector<104x256xf32>
    %cst_5 = arith.constant 0.000000e+00 : f32
    %6 = vector.broadcast %cst_5 : f32 to vector<104x256xf32>
    %7 = arith.maximumf %5, %6 : vector<104x256xf32>
    %8 = arith.truncf %7 : vector<104x256xf32> to vector<104x256xbf16>
    %c0_6 = arith.constant 0 : index
    %c0_7 = arith.constant 0 : index
    %9 = vector.load %arg4[%c0_6, %c0_7] : memref<104x256xbf16, #tpu.memory_space<vmem>>, vector<104x256xbf16>
    tpu.vector_store %arg4[%c0_6, %c0_7], %8 {strides = array<i32>} : memref<104x256xbf16, #tpu.memory_space<vmem>>, vector<104x256xbf16>,
    return
  }
  func.func @transform_0(%arg0: i32) -> (i32, i32) {
    %c0_i32 = arith.constant 0 : i32
    %c0_i32_0 = arith.constant 0 : i32
    return %arg0, %c0_i32 : i32, i32
  }
  func.func @transform_1(%arg0: i32) -> (i32, i32) {
    %c0_i32 = arith.constant 0 : i32
    %c0_i32_0 = arith.constant 0 : i32
    %c0_i32_1 = arith.constant 0 : i32
    return %c0_i32, %c0_i32_0 : i32, i32
  }
  func.func @transform_2(%arg0: i32) -> (i32, i32) {
    %c0_i32 = arith.constant 0 : i32
    %c0_i32_0 = arith.constant 0 : i32
    %c0_i32_1 = arith.constant 0 : i32
    return %c0_i32, %c0_i32_0 : i32, i32
  }
  func.func @transform_3(%arg0: i32) -> (i32, i32) {
    %c0_i32 = arith.constant 0 : i32
    %c0_i32_0 = arith.constant 0 : i32
    return %arg0, %c0_i32 : i32, i32
  }
}

module attributes {stable_mosaic.version = 11 : i64} {
  func.func @_matmul_shift_relu_kernel(%arg0: i32, %arg1: memref<104x1152xbf16, #tpu.memory_space<vmem>>, %arg2: memref<1152x128xbf16, #tpu.memory_space<vmem>>, %arg3: memref<1x128xf32, #tpu.memory_space<vmem>>, %arg4: memref<104x128xbf16, #tpu.memory_space<vmem>>) attributes {dimension_semantics = [#tpu.dimension_semantics<parallel>], iteration_bounds = array<i64: 1>, scalar_prefetch = 0 : i64, scratch_operands = 0 : i64, tpu.core_type = #tpu.core_type<tc>, window_params = [{transform_indices = @transform_0, window_bounds = array<i64: 104, 1152>}, {pipeline_mode = #tpu.pipeline_mode<synchronous>, transform_indices = @transform_1, window_bounds = array<i64: 1152, 128>}, {pipeline_mode = #tpu.pipeline_mode<synchronous>, transform_indices = @transform_2, window_bounds = array<i64: 1, 128>}, {transform_indices = @transform_3, window_bounds = array<i64: 104, 128>}]} {
    %c0 = arith.constant 0 : index
    %c0_0 = arith.constant 0 : index
    %0 = vector.load %arg1[%c0, %c0_0] : memref<104x1152xbf16, #tpu.memory_space<vmem>>, vector<104x1152xbf16>
    %c0_1 = arith.constant 0 : index
    %c0_2 = arith.constant 0 : index
    %1 = vector.load %arg2[%c0_1, %c0_2] : memref<1152x128xbf16, #tpu.memory_space<vmem>>, vector<1152x128xbf16>
    %cst = arith.constant dense<0.000000e+00> : vector<104x128xf32>
    %2 = tpu.matmul %0, %1, %cst {dimension_numbers = #tpu.dot_dimension_numbers<[1], [0], [0], [1], [0, 0, 1, 1], [], []>} : vector<104x1152xbf16>, vector<1152x128xbf16>, vector<104x128xf32> -> vector<104x128xf32>
    %c0_3 = arith.constant 0 : index
    %c0_4 = arith.constant 0 : index
    %3 = vector.load %arg3[%c0_3, %c0_4] : memref<1x128xf32, #tpu.memory_space<vmem>>, vector<1x128xf32>
    %4 = vector.broadcast %3 : vector<1x128xf32> to vector<104x128xf32>
    %5 = arith.addf %2, %4 : vector<104x128xf32>
    %cst_5 = arith.constant 0.000000e+00 : f32
    %6 = vector.broadcast %cst_5 : f32 to vector<104x128xf32>
    %7 = arith.maximumf %5, %6 : vector<104x128xf32>
    %8 = arith.truncf %7 : vector<104x128xf32> to vector<104x128xbf16>
    %c0_6 = arith.constant 0 : index
    %c0_7 = arith.constant 0 : index
    %9 = vector.load %arg4[%c0_6, %c0_7] : memref<104x128xbf16, #tpu.memory_space<vmem>>, vector<104x128xbf16>
    tpu.vector_store %arg4[%c0_6, %c0_7], %8 {strides = array<i32>} : memref<104x128xbf16, #tpu.memory_space<vmem>>, vector<104x128xbf16>,
    return
  }
  func.func @transform_0(%arg0: i32) -> (i32, i32) {
    %c0_i32 = arith.constant 0 : i32
    %c0_i32_0 = arith.constant 0 : i32
    return %arg0, %c0_i32 : i32, i32
  }
  func.func @transform_1(%arg0: i32) -> (i32, i32) {
    %c0_i32 = arith.constant 0 : i32
    %c0_i32_0 = arith.constant 0 : i32
    %c0_i32_1 = arith.constant 0 : i32
    return %c0_i32, %c0_i32_0 : i32, i32
  }
  func.func @transform_2(%arg0: i32) -> (i32, i32) {
    %c0_i32 = arith.constant 0 : i32
    %c0_i32_0 = arith.constant 0 : i32
    %c0_i32_1 = arith.constant 0 : i32
    return %c0_i32, %c0_i32_0 : i32, i32
  }
  func.func @transform_3(%arg0: i32) -> (i32, i32) {
    %c0_i32 = arith.constant 0 : i32
    %c0_i32_0 = arith.constant 0 : i32
    return %arg0, %c0_i32 : i32, i32
  }
}

module attributes {stable_mosaic.version = 11 : i64} {
  func.func @_head_kernel(%arg0: i32, %arg1: memref<2x49x128xbf16, #tpu.memory_space<vmem>>, %arg2: memref<128x10xf32, #tpu.memory_space<vmem>>, %arg3: memref<2x10xf32, #tpu.memory_space<vmem>>) attributes {dimension_semantics = [#tpu.dimension_semantics<arbitrary>], iteration_bounds = array<i64: 1>, scalar_prefetch = 0 : i64, scratch_operands = 0 : i64, tpu.core_type = #tpu.core_type<tc>, window_params = [{pipeline_mode = #tpu.pipeline_mode<synchronous>, transform_indices = @transform_0, window_bounds = array<i64: 2, 49, 128>}, {pipeline_mode = #tpu.pipeline_mode<synchronous>, transform_indices = @transform_1, window_bounds = array<i64: 128, 10>}, {pipeline_mode = #tpu.pipeline_mode<synchronous>, transform_indices = @transform_2, window_bounds = array<i64: 2, 10>}]} {
    %c0 = arith.constant 0 : index
    %c0_0 = arith.constant 0 : index
    %c0_1 = arith.constant 0 : index
    %0 = vector.load %arg1[%c0, %c0_0, %c0_1] : memref<2x49x128xbf16, #tpu.memory_space<vmem>>, vector<2x49x128xbf16>
    %1 = arith.extf %0 : vector<2x49x128xbf16> to vector<2x49x128xf32>
    %cst = arith.constant dense<0.000000e+00> : vector<2x128xf32>
    %2 = vector.multi_reduction <add>, %1, %cst [1] : vector<2x49x128xf32> to vector<2x128xf32>
    %cst_2 = arith.constant 4.900000e+01 : f32
    %3 = vector.broadcast %cst_2 : f32 to vector<2x128xf32>
    %4 = arith.divf %2, %3 : vector<2x128xf32>
    %c0_3 = arith.constant 0 : index
    %c0_4 = arith.constant 0 : index
    %5 = vector.load %arg2[%c0_3, %c0_4] : memref<128x10xf32, #tpu.memory_space<vmem>>, vector<128x10xf32>
    %cst_5 = arith.constant dense<0.000000e+00> : vector<2x10xf32>
    %6 = tpu.matmul %4, %5, %cst_5 {dimension_numbers = #tpu.dot_dimension_numbers<[1], [0], [0], [1], [0, 0, 1, 1], [], []>} : vector<2x128xf32>, vector<128x10xf32>, vector<2x10xf32> -> vector<2x10xf32>
    %cst_6 = arith.constant dense<0xFF800000> : vector<2xf32>
    %7 = vector.multi_reduction <maximumf>, %6, %cst_6 [1] : vector<2x10xf32> to vector<2xf32>
    %8 = vector.shape_cast %7 : vector<2xf32> to vector<2x1xf32>
    %9 = vector.broadcast %8 : vector<2x1xf32> to vector<2x10xf32>
    %10 = arith.subf %6, %9 : vector<2x10xf32>
    %11 = math.exp %10 : vector<2x10xf32>
    %cst_7 = arith.constant dense<0.000000e+00> : vector<2xf32>
    %12 = vector.multi_reduction <add>, %11, %cst_7 [1] : vector<2x10xf32> to vector<2xf32>
    %13 = vector.shape_cast %12 : vector<2xf32> to vector<2x1xf32>
    %14 = math.log %13 : vector<2x1xf32>
    %15 = vector.broadcast %14 : vector<2x1xf32> to vector<2x10xf32>
    %16 = arith.subf %10, %15 : vector<2x10xf32>
    %c0_8 = arith.constant 0 : index
    %c0_9 = arith.constant 0 : index
    %17 = vector.load %arg3[%c0_8, %c0_9] : memref<2x10xf32, #tpu.memory_space<vmem>>, vector<2x10xf32>
    tpu.vector_store %arg3[%c0_8, %c0_9], %16 {strides = array<i32>} : memref<2x10xf32, #tpu.memory_space<vmem>>, vector<2x10xf32>,
    return
  }
  func.func @transform_0(%arg0: i32) -> (i32, i32, i32) {
    %c0_i32 = arith.constant 0 : i32
    %c0_i32_0 = arith.constant 0 : i32
    %c0_i32_1 = arith.constant 0 : i32
    %c0_i32_2 = arith.constant 0 : i32
    return %c0_i32, %c0_i32_0, %c0_i32_1 : i32, i32, i32
  }
  func.func @transform_1(%arg0: i32) -> (i32, i32) {
    %c0_i32 = arith.constant 0 : i32
    %c0_i32_0 = arith.constant 0 : i32
    %c0_i32_1 = arith.constant 0 : i32
    return %c0_i32, %c0_i32_0 : i32, i32
  }
  func.func @transform_2(%arg0: i32) -> (i32, i32) {
    %c0_i32 = arith.constant 0 : i32
    %c0_i32_0 = arith.constant 0 : i32
    %c0_i32_1 = arith.constant 0 : i32
    return %c0_i32, %c0_i32_0 : i32, i32
  }
}

</mosaic_0001>

<bundles_post_ra>
// kernel: quizdnn_forward.9
= control target key start
LH: loop header
LB: loop body
LE: loop exit
PB: predicated region body
PF: predicated region fallthrough
CT: control target
= control target key end

     0   :  { %s999_s12 = smov 0   ;;  %s1166_s0 = inlined_call_operand.vmem [shape: bf16[1792,27], index: 0, kind: input, shape index: {}]   ;;  %s1167_s1 = inlined_call_operand.vmem [shape: bf16[27,64], index: 1, kind: input, shape index: {}]   ;;  %s1168_s2 = inlined_call_operand.vmem [shape: f32[1,64], index: 2, kind: input, shape index: {}]   ;;  %s1169_s3 = inlined_call_operand.vmem [shape: bf16[1792,64], index: 3, kind: output, shape index: {}]  }
   0x1 LB: > { %s775_s13 = sadd.s32 4294967295, %s976_s12   ;;  %p779_p0 = scmp.ge.s32.totalorder %s976_s12, 1  ;;  %s976_s12 = sphi %s999_s12, %s13_s12  }
   0x2   : > { %p138_p1 = scmp.lt.s32.totalorder %s976_s12, 8 }
   0x4   : > { %p139_p2 = pnand %p779_p0, %p138_p1 }
   0x5   : > { %v952_v0 = vld [vmem:[%s1167_s1] sm:$0xff] (!%p139_p2)   ;;  %vm358_vm0 = vcmask (!%p139_p2), 1044480   ;;  %v953_v1 = vld [vmem:[%s1167_s1 + $0x8] sm:$0x3f] (!%p139_p2)   ;;  %vm359_vm1 = vcmask (!%p139_p2), 1045504   ;;  %s780_s18 = sshll.u32 (!%p139_p2), %s775_s13, 5 }
   0x6   : > { %142 = sbr.rel (%p139_p2) target bundleno = 265 (0x109), region = 32  ;;  %903 = vmatprep.subr.bf16.mxu0 (!%p139_p2), %v952_v0  ;;  %939 = vmatprep.subr.bf16.mxu1 (!%p139_p2), %v952_v0  ;;  %v978_v2 = vmov (!%p139_p2), 65535   ;;  %p163_p3 = scmp.lt.s32.totalorder (!%p139_p2), %s780_s18, 223  ;;  %vm309_vm2 = vcmask (!%p139_p2), 220160   ;;  %v1058_v22 = vld [vmem:[%s1168_s2] ss:$0 sm:$0xff] (!%p139_p2) }
   0x7   : > { %904 = vmatpush3.bf16.msra.mxu0 (!%p139_p2), %v952_v0  ;;  %941 = vmatpush3.bf16.msra.mxu1 (!%p139_p2), %v952_v0  ;;  %v360_v3 = vsel (!%p139_p2), %vm358_vm0, 4294967295, %v978_v2  ;;  %vm686_vm3 = vcmask (!%p139_p2), 519168  }
   0x8   : > { %v361_v4 = vsel (!%p139_p2), %vm359_vm1, %v360_v3, 0 }
   0x9   : > { %v363_v5 = vand.u32 (!%p139_p2), %v953_v1, %v361_v4 }
   0xb   : > { %905 = vmatprep.subr.bf16.mxu0 (!%p139_p2), %v363_v5  ;;  %940 = vmatprep.subr.bf16.mxu1 (!%p139_p2), %v363_v5 }
   0xc   : > { %906 = vmatpush3.bf16.msra.mxu0 (!%p139_p2), %v363_v5  ;;  %942 = vmatpush3.bf16.msra.mxu1 (!%p139_p2), %v363_v5 }
   0xd   : > { %s1171_s18 = smov (!%p163_p3, %s780_s18), 223 }
   0xe   : > { %s781_s19 = sshll.u32 %s1171_s18, 2 }
   0xf   : > { %s1021_s22 = scalar_lea.vmem %s1166_s0, %s781_s19  ;;  %s1070_s27 = scalar_lea.vmem %s1169_s3, %s781_s19 }
  0x10   : > { %v954_v6 = vld [vmem:[%s1021_s22] sm:$0xff]   ;;  %v956_v8 = vld [vmem:[%s1021_s22 + $0x8] sm:$0xff]   ;;  %v958_v10 = vld [vmem:[%s1021_s22 + $0x10] sm:$0xff]  }
  0x11   : > { %v955_v7 = vld [vmem:[%s1021_s22 + $0x40] sm:$0xff]   ;;  %907 = vmatprep.mubr.msk.bf16.mxu0 %vm309_vm2, %v954_v6  ;;  %v957_v9 = vld [vmem:[%s1021_s22 + $0x48] sm:$0xff]   ;;  %v959_v11 = vld [vmem:[%s1021_s22 + $0x50] sm:$0xff]  }
  0x12   : > { %923 = vmatprep.mubr.msk.bf16.mxu1 %vm309_vm2, %v955_v7  ;;  %908 = vmatmul.mubr.msk.bf16.vlgmr.msra.gmra.mrb[0].mxu0 %vm309_vm2, %v956_v8  ;;  %v960_v12 = vld [vmem:[%s1021_s22 + $0x18] sm:$0xff]   ;;  %v962_v14 = vld [vmem:[%s1021_s22 + $0x20] sm:$0xff]   ;;  %v964_v16 = vld [vmem:[%s1021_s22 + $0x28] sm:$0xff]  }
  0x13   : > { %924 = vmatmul.mubr.msk.bf16.vlgmr.msra.gmra.mrb[0].mxu1 %vm309_vm2, %v957_v9  ;;  %911 = vmatprep.mubr.msk.bf16.mxu0 %vm309_vm2, %v958_v10  ;;  %v961_v13 = vld [vmem:[%s1021_s22 + $0x58] sm:$0xff]   ;;  %v963_v15 = vld [vmem:[%s1021_s22 + $0x60] sm:$0xff]   ;;  %v965_v17 = vld [vmem:[%s1021_s22 + $0x68] sm:$0xff]  }
  0x14   : > { %927 = vmatprep.mubr.msk.bf16.mxu1 %vm309_vm2, %v959_v11  ;;  %v966_v18 = vld [vmem:[%s1021_s22 + $0x30] sm:$0xff]   ;;  %v968_v20 = vld [vmem:[%s1021_s22 + $0x38] sm:$0xff]  }
  0x15   : > { %v967_v19 = vld [vmem:[%s1021_s22 + $0x70] sm:$0xff]   ;;  %v969_v21 = vld [vmem:[%s1021_s22 + $0x78] sm:$0xff]  }
  0x1a   : > { %912 = vmatmul.mubr.msk.bf16.gmra.mrb[4].mxu0 %vm309_vm2, %v960_v12 }
  0x1b   : > { %928 = vmatmul.mubr.msk.bf16.gmra.mrb[4].mxu1 %vm309_vm2, %v961_v13  ;;  %915 = vmatprep.mubr.msk.bf16.mxu0 %vm309_vm2, %v962_v14 }
  0x1c   : > { %931 = vmatprep.mubr.msk.bf16.mxu1 %vm309_vm2, %v963_v15 }
  0x22   : > { %916 = vmatmul.mubr.msk.bf16.gmra.mrb[8].mxu0 %vm309_vm2, %v964_v16 }
  0x23   : > { %932 = vmatmul.mubr.msk.bf16.gmra.mrb[8].mxu1 %vm309_vm2, %v965_v17  ;;  %919 = vmatprep.mubr.msk.bf16.mxu0 %vm309_vm2, %v966_v18 }
  0x24   : > { %935 = vmatprep.mubr.msk.bf16.mxu1 %vm309_vm2, %v967_v19 }
  0x2a   : > { %920 = vmatmul.mubr.msk.bf16.gmra.mrb[12].mxu0 %vm309_vm2, %v968_v20 }
  0x2b   : > { %936 = vmatmul.mubr.msk.bf16.gmra.mrb[12].mxu1 %vm309_vm2, %v969_v21 }
  0xe5   : > { %v909_v23 = vpop.f32.mrb[0].mxu0 }
  0xe6   : > { %v408_v24 = vadd.f32 %v909_v23, %v1058_v22  ;;  %v925_v25 = vpop.f32.mrb[0].mxu1  ;;  %v399_v26 = vpop.f32.mrb[1].mxu0 }
  0xe7   : > { %v472_v27 = vadd.f32 %v925_v25, %v1058_v22  ;;  %v400_v28 = vadd.f32 %v1058_v22, %v399_v26  ;;  %v463_v29 = vpop.f32.mrb[1].mxu1  ;;  %v910_v30 = vpop.f32.mrb[2].mxu0 }
  0xe8   : > { %v528_v31 = vmax.f32 %v408_v24, 0.0  ;;  %v464_v32 = vadd.f32 %v1058_v22, %v463_v29  ;;  %v411_v33 = vadd.f32 %v910_v30, %v1058_v22  ;;  %v926_v34 = vpop.f32.mrb[2].mxu1  ;;  %v402_v35 = vpop.f32.mrb[3].mxu0 }
  0xe9   : > { %v544_v36 = vmax.f32 %v472_v27, 0.0  ;;  %v526_v37 = vmax.f32 %v400_v28, 0.0  ;;  %v475_v38 = vadd.f32 %v926_v34, %v1058_v22  ;;  %v403_v39 = vadd.f32 %v1058_v22, %v402_v35  ;;  %v466_v40 = vpop.f32.mrb[3].mxu1 }
  0xea   : > { %v855_v41 = vpack.c.bf16 %v528_v31, %v528_v31  ;;  %v542_v42 = vmax.f32 %v464_v32, 0.0  ;;  %v529_v43 = vmax.f32 %v411_v33, 0.0  ;;  %v467_v44 = vadd.f32 %v1058_v22, %v466_v40 }
  0xeb   : > { %v871_v45 = vpack.c.bf16 %v544_v36, %v544_v36  ;;  %v853_v46 = vpack.c.bf16 %v526_v37, %v526_v37  ;;  %v545_v47 = vmax.f32 %v475_v38, 0.0  ;;  %v527_v48 = vmax.f32 %v403_v39, 0.0 }
  0xec   : > { %689 = vst.msk [vmem:[%s1070_s27 + $0x8] sm:$0xf] %vm686_vm3, %v855_v41  ;;  %v869_v49 = vpack.c.bf16 %v542_v42, %v542_v42  ;;  %v856_v50 = vpack.c.bf16 %v529_v43, %v529_v43  ;;  %v543_v51 = vmax.f32 %v467_v44, 0.0 }
  0xed   : > { %705 = vst.msk [vmem:[%s1070_s27 + $0x48] sm:$0xf] %vm686_vm3, %v871_v45  ;;  %687 = vst.msk [vmem:[%s1070_s27] sm:$0xf] %vm686_vm3, %v853_v46  ;;  %v872_v52 = vpack.c.bf16 %v545_v47, %v545_v47  ;;  %v854_v53 = vpack.c.bf16 %v527_v48, %v527_v48  ;;  %v913_v54 = vpop.f32.mrb[4].mxu0 }
  0xee   : > { %703 = vst.msk [vmem:[%s1070_s27 + $0x40] sm:$0xf] %vm686_vm3, %v869_v49  ;;  %690 = vst.msk [vmem:[%s1070_s27 + $0xc] sm:$0xf] %vm686_vm3, %v856_v50  ;;  %v870_v55 = vpack.c.bf16 %v543_v51, %v543_v51  ;;  %v424_v56 = vadd.f32 %v913_v54, %v1058_v22  ;;  %v929_v57 = vpop.f32.mrb[4].mxu1  ;;  %v415_v58 = vpop.f32.mrb[5].mxu0 }
  0xef   : > { %706 = vst.msk [vmem:[%s1070_s27 + $0x4c] sm:$0xf] %vm686_vm3, %v872_v52  ;;  %688 = vst.msk [vmem:[%s1070_s27 + $0x4] sm:$0xf] %vm686_vm3, %v854_v53  ;;  %v488_v59 = vadd.f32 %v929_v57, %v1058_v22  ;;  %v416_v60 = vadd.f32 %v1058_v22, %v415_v58  ;;  %v479_v61 = vpop.f32.mrb[5].mxu1  ;;  %v914_v62 = vpop.f32.mrb[6].mxu0 }
  0xf0   : > { %704 = vst.msk [vmem:[%s1070_s27 + $0x44] sm:$0xf] %vm686_vm3, %v870_v55  ;;  %v532_v63 = vmax.f32 %v424_v56, 0.0  ;;  %v480_v0 = vadd.f32 %v1058_v22, %v479_v61  ;;  %v427_v1 = vadd.f32 %v914_v62, %v1058_v22  ;;  %v930_v2 = vpop.f32.mrb[6].mxu1  ;;  %v418_v3 = vpop.f32.mrb[7].mxu0 }
  0xf1   : > { %v548_v4 = vmax.f32 %v488_v59, 0.0  ;;  %v530_v5 = vmax.f32 %v416_v60, 0.0  ;;  %v491_v6 = vadd.f32 %v930_v2, %v1058_v22  ;;  %v419_v7 = vadd.f32 %v1058_v22, %v418_v3  ;;  %v482_v8 = vpop.f32.mrb[7].mxu1 }
  0xf2   : > { %v859_v9 = vpack.c.bf16 %v532_v63, %v532_v63  ;;  %v546_v10 = vmax.f32 %v480_v0, 0.0  ;;  %v533_v11 = vmax.f32 %v427_v1, 0.0  ;;  %v483_v12 = vadd.f32 %v1058_v22, %v482_v8 }
  0xf3   : > { %v875_v13 = vpack.c.bf16 %v548_v4, %v548_v4  ;;  %v857_v14 = vpack.c.bf16 %v530_v5, %v530_v5  ;;  %v549_v15 = vmax.f32 %v491_v6, 0.0  ;;  %v531_v16 = vmax.f32 %v419_v7, 0.0 }
  0xf4   : > { %693 = vst.msk [vmem:[%s1070_s27 + $0x18] sm:$0xf] %vm686_vm3, %v859_v9  ;;  %v873_v17 = vpack.c.bf16 %v546_v10, %v546_v10  ;;  %v860_v18 = vpack.c.bf16 %v533_v11, %v533_v11  ;;  %v547_v19 = vmax.f32 %v483_v12, 0.0 }
  0xf5   : > { %709 = vst.msk [vmem:[%s1070_s27 + $0x58] sm:$0xf] %vm686_vm3, %v875_v13  ;;  %691 = vst.msk [vmem:[%s1070_s27 + $0x10] sm:$0xf] %vm686_vm3, %v857_v14  ;;  %v876_v20 = vpack.c.bf16 %v549_v15, %v549_v15  ;;  %v858_v21 = vpack.c.bf16 %v531_v16, %v531_v16  ;;  %v917_v23 = vpop.f32.mrb[8].mxu0 }
  0xf6   : > { %707 = vst.msk [vmem:[%s1070_s27 + $0x50] sm:$0xf] %vm686_vm3, %v873_v17  ;;  %694 = vst.msk [vmem:[%s1070_s27 + $0x1c] sm:$0xf] %vm686_vm3, %v860_v18  ;;  %v874_v24 = vpack.c.bf16 %v547_v19, %v547_v19  ;;  %v440_v25 = vadd.f32 %v917_v23, %v1058_v22  ;;  %v933_v26 = vpop.f32.mrb[8].mxu1  ;;  %v431_v27 = vpop.f32.mrb[9].mxu0 }
  0xf7   : > { %710 = vst.msk [vmem:[%s1070_s27 + $0x5c] sm:$0xf] %vm686_vm3, %v876_v20  ;;  %692 = vst.msk [vmem:[%s1070_s27 + $0x14] sm:$0xf] %vm686_vm3, %v858_v21  ;;  %v504_v28 = vadd.f32 %v933_v26, %v1058_v22  ;;  %v432_v29 = vadd.f32 %v1058_v22, %v431_v27  ;;  %v495_v30 = vpop.f32.mrb[9].mxu1  ;;  %v918_v31 = vpop.f32.mrb[10].mxu0 }
  0xf8   : > { %708 = vst.msk [vmem:[%s1070_s27 + $0x54] sm:$0xf] %vm686_vm3, %v874_v24  ;;  %v536_v32 = vmax.f32 %v440_v25, 0.0  ;;  %v496_v33 = vadd.f32 %v1058_v22, %v495_v30  ;;  %v443_v34 = vadd.f32 %v918_v31, %v1058_v22  ;;  %v934_v35 = vpop.f32.mrb[10].mxu1  ;;  %v434_v36 = vpop.f32.mrb[11].mxu0 }
  0xf9   : > { %v552_v37 = vmax.f32 %v504_v28, 0.0  ;;  %v534_v38 = vmax.f32 %v432_v29, 0.0  ;;  %v507_v39 = vadd.f32 %v934_v35, %v1058_v22  ;;  %v435_v40 = vadd.f32 %v1058_v22, %v434_v36  ;;  %v498_v41 = vpop.f32.mrb[11].mxu1 }
  0xfa   : > { %v863_v42 = vpack.c.bf16 %v536_v32, %v536_v32  ;;  %v550_v43 = vmax.f32 %v496_v33, 0.0  ;;  %v537_v44 = vmax.f32 %v443_v34, 0.0  ;;  %v499_v45 = vadd.f32 %v1058_v22, %v498_v41 }
  0xfb   : > { %v879_v46 = vpack.c.bf16 %v552_v37, %v552_v37  ;;  %v861_v47 = vpack.c.bf16 %v534_v38, %v534_v38  ;;  %v553_v48 = vmax.f32 %v507_v39, 0.0  ;;  %v535_v49 = vmax.f32 %v435_v40, 0.0 }
  0xfc   : > { %697 = vst.msk [vmem:[%s1070_s27 + $0x28] sm:$0xf] %vm686_vm3, %v863_v42  ;;  %v877_v50 = vpack.c.bf16 %v550_v43, %v550_v43  ;;  %v864_v51 = vpack.c.bf16 %v537_v44, %v537_v44  ;;  %v551_v52 = vmax.f32 %v499_v45, 0.0 }
  0xfd   : > { %713 = vst.msk [vmem:[%s1070_s27 + $0x68] sm:$0xf] %vm686_vm3, %v879_v46  ;;  %695 = vst.msk [vmem:[%s1070_s27 + $0x20] sm:$0xf] %vm686_vm3, %v861_v47  ;;  %v880_v53 = vpack.c.bf16 %v553_v48, %v553_v48  ;;  %v862_v54 = vpack.c.bf16 %v535_v49, %v535_v49  ;;  %v921_v55 = vpop.f32.mrb[12].mxu0 }
  0xfe   : > { %711 = vst.msk [vmem:[%s1070_s27 + $0x60] sm:$0xf] %vm686_vm3, %v877_v50  ;;  %698 = vst.msk [vmem:[%s1070_s27 + $0x2c] sm:$0xf] %vm686_vm3, %v864_v51  ;;  %v878_v56 = vpack.c.bf16 %v551_v52, %v551_v52  ;;  %v456_v57 = vadd.f32 %v921_v55, %v1058_v22  ;;  %v937_v58 = vpop.f32.mrb[12].mxu1  ;;  %v447_v59 = vpop.f32.mrb[13].mxu0 }
  0xff   : > { %714 = vst.msk [vmem:[%s1070_s27 + $0x6c] sm:$0xf] %vm686_vm3, %v880_v53  ;;  %696 = vst.msk [vmem:[%s1070_s27 + $0x24] sm:$0xf] %vm686_vm3, %v862_v54  ;;  %v520_v60 = vadd.f32 %v937_v58, %v1058_v22  ;;  %v448_v61 = vadd.f32 %v1058_v22, %v447_v59  ;;  %v511_v62 = vpop.f32.mrb[13].mxu1  ;;  %v922_v63 = vpop.f32.mrb[14].mxu0 }
 0x100   : > { %712 = vst.msk [vmem:[%s1070_s27 + $0x64] sm:$0xf] %vm686_vm3, %v878_v56  ;;  %v540_v0 = vmax.f32 %v456_v57, 0.0  ;;  %v512_v1 = vadd.f32 %v1058_v22, %v511_v62  ;;  %v459_v2 = vadd.f32 %v922_v63, %v1058_v22  ;;  %v938_v3 = vpop.f32.mrb[14].mxu1  ;;  %v450_v4 = vpop.f32.mrb[15].mxu0 }
 0x101   : > { %v556_v5 = vmax.f32 %v520_v60, 0.0  ;;  %v538_v6 = vmax.f32 %v448_v61, 0.0  ;;  %v523_v7 = vadd.f32 %v938_v3, %v1058_v22  ;;  %v451_v8 = vadd.f32 %v1058_v22, %v450_v4  ;;  %v514_v9 = vpop.f32.mrb[15].mxu1 }
 0x102   : > { %v867_v10 = vpack.c.bf16 %v540_v0, %v540_v0  ;;  %v554_v11 = vmax.f32 %v512_v1, 0.0  ;;  %v541_v12 = vmax.f32 %v459_v2, 0.0  ;;  %v515_v13 = vadd.f32 %v1058_v22, %v514_v9 }
 0x103   : > { %v883_v14 = vpack.c.bf16 %v556_v5, %v556_v5  ;;  %v865_v15 = vpack.c.bf16 %v538_v6, %v538_v6  ;;  %v557_v16 = vmax.f32 %v523_v7, 0.0  ;;  %v539_v17 = vmax.f32 %v451_v8, 0.0 }
 0x104   : > { %701 = vst.msk [vmem:[%s1070_s27 + $0x38] sm:$0xf] %vm686_vm3, %v867_v10  ;;  %v881_v18 = vpack.c.bf16 %v554_v11, %v554_v11  ;;  %v868_v19 = vpack.c.bf16 %v541_v12, %v541_v12  ;;  %v555_v20 = vmax.f32 %v515_v13, 0.0 }
 0x105   : > { %717 = vst.msk [vmem:[%s1070_s27 + $0x78] sm:$0xf] %vm686_vm3, %v883_v14  ;;  %699 = vst.msk [vmem:[%s1070_s27 + $0x30] sm:$0xf] %vm686_vm3, %v865_v15  ;;  %v884_v21 = vpack.c.bf16 %v557_v16, %v557_v16  ;;  %v866_v23 = vpack.c.bf16 %v539_v17, %v539_v17 }
 0x106   : > { %715 = vst.msk [vmem:[%s1070_s27 + $0x70] sm:$0xf] %vm686_vm3, %v881_v18  ;;  %702 = vst.msk [vmem:[%s1070_s27 + $0x3c] sm:$0xf] %vm686_vm3, %v868_v19  ;;  %v882_v22 = vpack.c.bf16 %v555_v20, %v555_v20 }
 0x107   : > { %718 = vst.msk [vmem:[%s1070_s27 + $0x7c] sm:$0xf] %vm686_vm3, %v884_v21  ;;  %700 = vst.msk [vmem:[%s1070_s27 + $0x34] sm:$0xf] %vm686_vm3, %v866_v23 }
 0x108   : > { %716 = vst.msk [vmem:[%s1070_s27 + $0x74] sm:$0xf] %vm686_vm3, %v882_v22 }
 0x109 PF: > { %s13_s12 = sadd.s32 1, %s976_s12  }
 0x10a   : > { %p10_p4 = scmp.ge.s32.totalorder %s13_s12, 9  }
 0x10c   :  { %12 = sbr.rel (!%p10_p4) target bundleno = 1 (0x1), region = 62 }

// kernel: quizdnn_forward.10
= control target key start
LH: loop header
LB: loop body
LE: loop exit
PB: predicated region body
PF: predicated region fallthrough
CT: control target
= control target key end

     0   :  { %s1712_s12 = smov 0   ;;  %s1986_s0 = inlined_call_operand.vmem [shape: bf16[1792,288], index: 0, kind: input, shape index: {}]   ;;  %s1987_s1 = inlined_call_operand.vmem [shape: bf16[288,32], index: 1, kind: input, shape index: {}]   ;;  %s1988_s2 = inlined_call_operand.vmem [shape: f32[1,32], index: 2, kind: input, shape index: {}]   ;;  %s1989_s3 = inlined_call_operand.vmem [shape: bf16[1792,32], index: 3, kind: output, shape index: {}]  }
   0x1 LB: > { %s1253_s13 = sadd.s32 4294967295, %s1690_s12   ;;  %p1257_p0 = scmp.ge.s32.totalorder %s1690_s12, 1  ;;  %s1690_s12 = sphi %s1712_s12, %s13_s12  }
   0x2   : > { %p139_p1 = scmp.lt.s32.totalorder %s1690_s12, 8 }
   0x4   : > { %p140_p2 = pnand %p1257_p0, %p139_p1 }
   0x5   : > { %v1602_v0 = vld [vmem:[%s1987_s1 + $0x40] sm:$0xff] (!%p140_p2)   ;;  %s1258_s16 = sshll.u32 (!%p140_p2), %s1253_s13, 5  ;;  %v1604_v2 = vld [vmem:[%s1987_s1 + $0x48] sm:$0xff] (!%p140_p2)   ;;  %v1606_v4 = vld [vmem:[%s1987_s1 + $0x50] sm:$0xff] (!%p140_p2)   ;;  %vm633_vm0 = vcmask (!%p140_p2), 261120   ;;  %vm1164_vm1 = vcmask (!%p140_p2), 257024  }
   0x6   : > { %143 = sbr.rel (%p140_p2) target bundleno = 352 (0x160), region = 32  ;;  %v1603_v1 = vld [vmem:[%s1987_s1] sm:$0xff] (!%p140_p2)   ;;  %1411 = vmatprep.subr.bf16.mxu0 (!%p140_p2), %v1602_v0  ;;  %1577 = vmatprep.subr.bf16.mxu1 (!%p140_p2), %v1602_v0  ;;  %p165_p3 = scmp.lt.s32.totalorder (!%p140_p2), %s1258_s16, 223  ;;  %v1605_v3 = vld [vmem:[%s1987_s1 + $0x8] sm:$0xff] (!%p140_p2)   ;;  %v1607_v5 = vld [vmem:[%s1987_s1 + $0x10] sm:$0xff] (!%p140_p2)  }
   0x7   : > { %1412 = vmatpush3.bf16.msra.mxu0 (!%p140_p2), %v1603_v1  ;;  %1585 = vmatpush3.bf16.msra.mxu1 (!%p140_p2), %v1603_v1  ;;  %v1608_v6 = vld [vmem:[%s1987_s1 + $0x58] sm:$0xff] (!%p140_p2)   ;;  %v1610_v8 = vld [vmem:[%s1987_s1 + $0x60] sm:$0xff] (!%p140_p2)   ;;  %v1612_v10 = vld [vmem:[%s1987_s1 + $0x68] sm:$0xff] (!%p140_p2)  }
   0x8   : > { %1413 = vmatprep.subr.bf16.mxu0 (!%p140_p2), %v1604_v2  ;;  %1578 = vmatprep.subr.bf16.mxu1 (!%p140_p2), %v1604_v2  ;;  %v1609_v7 = vld [vmem:[%s1987_s1 + $0x18] sm:$0xff] (!%p140_p2)   ;;  %v1611_v9 = vld [vmem:[%s1987_s1 + $0x20] sm:$0xff] (!%p140_p2)   ;;  %v1613_v13 = vld [vmem:[%s1987_s1 + $0x28] sm:$0xff] (!%p140_p2)  }
   0x9   : > { %v1614_v14 = vld [vmem:[%s1987_s1 + $0x70] sm:$0xff] (!%p140_p2)   ;;  %v1616_v16 = vld [vmem:[%s1987_s1 + $0x78] sm:$0xff] (!%p140_p2)   ;;  %v1624_v18 = vld [vmem:[%s1987_s1 + $0x80] sm:$0xff] (!%p140_p2)  }
   0xa   : > { %v1615_v15 = vld [vmem:[%s1987_s1 + $0x30] sm:$0xff] (!%p140_p2)   ;;  %v1617_v17 = vld [vmem:[%s1987_s1 + $0x38] sm:$0xff] (!%p140_p2)   ;;  %v1637_v23 = vld [vmem:[%s1987_s1 + $0x88] sm:$0xff] (!%p140_p2)  }
   0xb   : > { %1414 = vmatpush3.bf16.msra.mxu0 (!%p140_p2), %v1605_v3  ;;  %1586 = vmatpush3.bf16.msra.mxu1 (!%p140_p2), %v1605_v3 }
   0xc   : > { %1415 = vmatprep.subr.bf16.mxu0 (!%p140_p2), %v1606_v4  ;;  %1579 = vmatprep.subr.bf16.mxu1 (!%p140_p2), %v1606_v4 }
   0xd   : > { %s1991_s16 = smov (!%p165_p3, %s1258_s16), 223 }
   0xe   : > { %s1593_s29 = smul.u32 12, %s1991_s16  ;;  %s1261_s5 = sshll.u32 %s1991_s16, 2 }
   0xf   : > { %1416 = vmatpush3.bf16.msra.mxu0 %v1607_v5  ;;  %1587 = vmatpush3.bf16.msra.mxu1 %v1607_v5  ;;  %s1875_s8 = scalar_lea.vmem %s1989_s3, %s1261_s5 }
  0x10   : > { %1417 = vmatprep.subr.bf16.mxu0 %v1608_v6  ;;  %1580 = vmatprep.subr.bf16.mxu1 %v1608_v6  ;;  %s1753_s9 = scalar_lea.vmem %s1986_s0, %s1593_s29 }
  0x11   : > { %v1620_v11 = vld [vmem:[%s1753_s9 + $0x4] ss:$12 sps:$4 sm:$0xff]   ;;  %v1618_v19 = vld [vmem:[%s1753_s9] ss:$12 sps:$4 sm:$0xff]   ;;  %v1625_v21 = vld [vmem:[%s1753_s9 + $0x1c] ss:$12 sps:$4 sm:$0xff]  }
  0x12   : > { %v1623_v12 = vld [vmem:[%s1753_s9 + $0x124] ss:$12 sps:$4 sm:$0xff]   ;;  %714 = vmatprep.mubr.bf16.mxu0 %v1620_v11  ;;  %v1621_v20 = vld [vmem:[%s1753_s9 + $0x120] ss:$12 sps:$4 sm:$0xff]   ;;  %v1627_v22 = vld [vmem:[%s1753_s9 + $0x13c] ss:$12 sps:$4 sm:$0xff]  }
  0x13   : > { %1418 = vmatpush3.bf16.msra.mxu0 %v1609_v7  ;;  %1588 = vmatpush3.bf16.msra.mxu1 %v1609_v7  ;;  %v1629_v24 = vld [vmem:[%s1753_s9 + $0x18] ss:$12 sps:$4 sm:$0xff]   ;;  %v1631_v26 = vld [vmem:[%s1753_s9 + $0x34] ss:$12 sps:$4 sm:$0xff]   ;;  %v1635_v28 = vld [vmem:[%s1753_s9 + $0x30] ss:$12 sps:$4 sm:$0xff]  }
  0x14   : > { %1419 = vmatprep.subr.bf16.mxu0 %v1610_v8  ;;  %1581 = vmatprep.subr.bf16.mxu1 %v1610_v8  ;;  %v1630_v25 = vld [vmem:[%s1753_s9 + $0x138] ss:$12 sps:$4 sm:$0xff]   ;;  %v1633_v27 = vld [vmem:[%s1753_s9 + $0x154] ss:$12 sps:$4 sm:$0xff]   ;;  %v1636_v29 = vld [vmem:[%s1753_s9 + $0x150] ss:$12 sps:$4 sm:$0xff]  }
  0x15   : > { %810 = vmatprep.mubr.bf16.mxu1 %v1623_v12  ;;  %v1638_v30 = vld [vmem:[%s1753_s9 + $0x4c] ss:$12 sps:$4 sm:$0xff]   ;;  %v1642_v32 = vld [vmem:[%s1753_s9 + $0x48] ss:$12 sps:$4 sm:$0xff]   ;;  %v1644_v34 = vld [vmem:[%s1753_s9 + $0x64] ss:$12 sps:$4 sm:$0xff]  }
  0x16   : > { %v1640_v31 = vld [vmem:[%s1753_s9 + $0x16c] ss:$12 sps:$4 sm:$0xff]   ;;  %v1643_v33 = vld [vmem:[%s1753_s9 + $0x168] ss:$12 sps:$4 sm:$0xff]   ;;  %v1653_v41 = vld [vmem:[%s1753_s9 + $0x50] ss:$12 sps:$4 sm:$0xff]  }
  0x17   : > { %1420 = vmatpush3.bf16.msra.mxu0 %v1611_v9  ;;  %1589 = vmatpush3.bf16.msra.mxu1 %v1611_v9  ;;  %v1646_v35 = vld [vmem:[%s1753_s9 + $0x8] ss:$12 sps:$4 sm:$0xff]   ;;  %v1647_v36 = vld [vmem:[%s1753_s9 + $0x60] ss:$12 sps:$4 sm:$0xff]   ;;  %v1651_v39 = vld [vmem:[%s1753_s9 + $0x38] ss:$12 sps:$4 sm:$0xff]  }
  0x18   : > { %1421 = vmatprep.subr.bf16.mxu0 %v1612_v10  ;;  %1582 = vmatprep.subr.bf16.mxu1 %v1612_v10  ;;  %v1648_v37 = vld [vmem:[%s1753_s9 + $0x20] ss:$12 sps:$4 sm:$0xff]   ;;  %v1649_v38 = vld [vmem:[%s1753_s9 + $0x7c] ss:$12 sps:$4 sm:$0xff]   ;;  %v1652_v40 = vld [vmem:[%s1753_s9 + $0x78] ss:$12 sps:$4 sm:$0xff]  }
  0x19   : > { %v1654_v42 = vld [vmem:[%s1753_s9 + $0x94] ss:$12 sps:$4 sm:$0xff]   ;;  %v1657_v44 = vld [vmem:[%s1753_s9 + $0x90] ss:$12 sps:$4 sm:$0xff]   ;;  %v1659_v46 = vld [vmem:[%s1753_s9 + $0xac] ss:$12 sps:$4 sm:$0xff]  }
  0x1a   : > { %v1656_v43 = vld [vmem:[%s1753_s9 + $0x68] ss:$12 sps:$4 sm:$0xff]   ;;  %v1658_v45 = vld [vmem:[%s1753_s9 + $0x80] ss:$12 sps:$4 sm:$0xff]   ;;  %v1661_v47 = vld [vmem:[%s1753_s9 + $0x98] ss:$12 sps:$4 sm:$0xff]  }
  0x1b   : > { %1422 = vmatpush3.bf16.msra.mxu0 %v1613_v13  ;;  %1590 = vmatpush3.bf16.msra.mxu1 %v1613_v13  ;;  %v1662_v48 = vld [vmem:[%s1753_s9 + $0xa8] ss:$12 sps:$4 sm:$0xff]   ;;  %v1663_v49 = vld [vmem:[%s1753_s9 + $0xb0] ss:$12 sps:$4 sm:$0xff]   ;;  %v1667_v52 = vld [vmem:[%s1753_s9 + $0xc0] ss:$12 sps:$4 sm:$0xff]  }
  0x1c   : > { %1423 = vmatprep.subr.bf16.mxu0 %v1614_v14  ;;  %1583 = vmatprep.subr.bf16.mxu1 %v1614_v14  ;;  %v1664_v50 = vld [vmem:[%s1753_s9 + $0xc4] ss:$12 sps:$4 sm:$0xff]   ;;  %v1666_v51 = vld [vmem:[%s1753_s9 + $0xc8] ss:$12 sps:$4 sm:$0xff]   ;;  %v1668_v53 = vld [vmem:[%s1753_s9 + $0xe0] ss:$12 sps:$4 sm:$0xff]  }
  0x1d   : > { %v1669_v54 = vld [vmem:[%s1753_s9 + $0xdc] ss:$12 sps:$4 sm:$0xff]   ;;  %v1671_v55 = vld [vmem:[%s1753_s9 + $0xf8] ss:$12 sps:$4 sm:$0xff]   ;;  %v1674_v58 = vld [vmem:[%s1753_s9 + $0xf4] ss:$12 sps:$4 sm:$0xff]  }
  0x1e   : > { %v1672_v56 = vld [vmem:[%s1753_s9 + $0xd8] ss:$12 sps:$4 sm:$0xff]   ;;  %v1673_v57 = vld [vmem:[%s1753_s9 + $0x110] ss:$12 sps:$4 sm:$0xff]   ;;  %v1676_v59 = vld [vmem:[%s1753_s9 + $0x128] ss:$12 sps:$4 sm:$0xff]  }
  0x1f   : > { %1424 = vmatpush3.bf16.msra.mxu0 %v1615_v15  ;;  %1591 = vmatpush3.bf16.msra.mxu1 %v1615_v15  ;;  %v1677_v60 = vld [vmem:[%s1753_s9 + $0xf0] ss:$12 sps:$4 sm:$0xff]   ;;  %v1678_v61 = vld [vmem:[%s1753_s9 + $0x140] ss:$12 sps:$4 sm:$0xff]   ;;  %v1681_v63 = vld [vmem:[%s1753_s9 + $0x158] ss:$12 sps:$4 sm:$0xff]  }
  0x20   : > { %1425 = vmatprep.subr.bf16.mxu0 %v1616_v16  ;;  %1584 = vmatprep.subr.bf16.mxu1 %v1616_v16  ;;  %v1679_v62 = vld [vmem:[%s1753_s9 + $0x10c] ss:$12 sps:$4 sm:$0xff]   ;;  %v1682_v0 = vld [vmem:[%s1753_s9 + $0x108] ss:$12 sps:$4 sm:$0xff]   ;;  %v1683_v1 = vld [vmem:[%s1753_s9 + $0x170] ss:$12 sps:$4 sm:$0xff]  }
  0x23   : > { %1426 = vmatpush3.bf16.msra.mxu0 %v1617_v17  ;;  %1592 = vmatpush3.bf16.msra.mxu1 %v1617_v17 }
  0x24   : > { %1541 = vmatprep.subr.bf16.mxu1 %v1624_v18 }
  0x26   : > { %715 = vmatmul.mubr.bf16.vlgmr.msra.gmra.mrb[0].mxu0 %v1618_v19  ;;  %811 = vmatmul.mubr.bf16.vlgmr.msra.gmra.mrb[0].mxu1 %v1621_v20 }
  0x27   : > { %1542 = vmatpush3.bf16.msra.mxu1 %v1624_v18  ;;  %722 = vmatprep.mubr.bf16.mxu0 %v1625_v21 }
  0x28   : > { %818 = vmatprep.mubr.bf16.mxu1 %v1627_v22  ;;  %1543 = vmatprep.subr.bf16.mxu1 %v1637_v23 }
  0x2b   : > { %1544 = vmatpush3.bf16.msra.mxu1 %v1637_v23 }
  0x2e   : > { %723 = vmatmul.mubr.bf16.gmra.mrb[4].mxu0 %v1629_v24  ;;  %819 = vmatmul.mubr.bf16.gmra.mrb[4].mxu1 %v1630_v25 }
  0x2f   : > { %730 = vmatprep.mubr.bf16.mxu0 %v1631_v26  ;;  %826 = vmatprep.mubr.bf16.mxu1 %v1633_v27 }
  0x36   : > { %731 = vmatmul.mubr.bf16.gmra.mrb[8].mxu0 %v1635_v28  ;;  %827 = vmatmul.mubr.bf16.gmra.mrb[8].mxu1 %v1636_v29 }
  0x37   : > { %738 = vmatprep.mubr.bf16.mxu0 %v1638_v30  ;;  %834 = vmatprep.mubr.bf16.mxu1 %v1640_v31 }
  0x3e   : > { %739 = vmatmul.mubr.bf16.gmra.mrb[12].mxu0 %v1642_v32  ;;  %835 = vmatmul.mubr.bf16.gmra.mrb[12].mxu1 %v1643_v33 }
  0x3f   : > { %746 = vmatprep.mubr.bf16.mxu0 %v1644_v34  ;;  %1545 = vmatprep.mubr.msk.bf16.mxu1 %vm633_vm0, %v1646_v35 }
  0x46   : > { %747 = vmatmul.mubr.bf16.gmra.mrb[16].mxu0 %v1647_v36  ;;  %1546 = vmatmul.mubr.msk.bf16.vlgmr.msra.gmra.mrb[16].mxu1 %vm633_vm0, %v1648_v37 }
  0x47   : > { %754 = vmatprep.mubr.bf16.mxu0 %v1649_v38  ;;  %1549 = vmatprep.mubr.msk.bf16.mxu1 %vm633_vm0, %v1651_v39 }
  0x4e   : > { %755 = vmatmul.mubr.bf16.gmra.mrb[20].mxu0 %v1652_v40  ;;  %1550 = vmatmul.mubr.msk.bf16.gmra.mrb[20].mxu1 %vm633_vm0, %v1653_v41 }
  0x4f   : > { %762 = vmatprep.mubr.bf16.mxu0 %v1654_v42  ;;  %1553 = vmatprep.mubr.msk.bf16.mxu1 %vm633_vm0, %v1656_v43 }
  0x56   : > { %763 = vmatmul.mubr.bf16.gmra.mrb[24].mxu0 %v1657_v44  ;;  %1554 = vmatmul.mubr.msk.bf16.gmra.mrb[24].mxu1 %vm633_vm0, %v1658_v45 }
  0x57   : > { %770 = vmatprep.mubr.bf16.mxu0 %v1659_v46  ;;  %1557 = vmatprep.mubr.msk.bf16.mxu1 %vm633_vm0, %v1661_v47 }
  0x5e   : > { %771 = vmatmul.mubr.bf16.gmra.mrb[28].mxu0 %v1662_v48  ;;  %1558 = vmatmul.mubr.msk.bf16.gmra.mrb[28].mxu1 %vm633_vm0, %v1663_v49 }
  0x5f   : > { %778 = vmatprep.mubr.bf16.mxu0 %v1664_v50  ;;  %1561 = vmatprep.mubr.msk.bf16.mxu1 %vm633_vm0, %v1666_v51  ;;  %v1865_v50 = vld [vmem:[%s1988_s2] ss:$0 sm:$0xff] }
  0x66   : > { %779 = vmatmul.mubr.bf16.gmra.mrb[32].mxu0 %v1667_v52  ;;  %1562 = vmatmul.mubr.msk.bf16.gmra.mrb[32].mxu1 %vm633_vm0, %v1668_v53 }
  0x67   : > { %786 = vmatprep.mubr.bf16.mxu0 %v1669_v54  ;;  %1565 = vmatprep.mubr.msk.bf16.mxu1 %vm633_vm0, %v1671_v55 }
  0x6e   : > { %787 = vmatmul.mubr.bf16.gmra.mrb[36].mxu0 %v1672_v56  ;;  %1566 = vmatmul.mubr.msk.bf16.gmra.mrb[36].mxu1 %vm633_vm0, %v1673_v57 }
  0x6f   : > { %794 = vmatprep.mubr.bf16.mxu0 %v1674_v58  ;;  %1569 = vmatprep.mubr.msk.bf16.mxu1 %vm633_vm0, %v1676_v59 }
  0x76   : > { %795 = vmatmul.mubr.bf16.gmra.mrb[40].mxu0 %v1677_v60  ;;  %1570 = vmatmul.mubr.msk.bf16.gmra.mrb[40].mxu1 %vm633_vm0, %v1678_v61 }
  0x77   : > { %802 = vmatprep.mubr.bf16.mxu0 %v1679_v62  ;;  %1573 = vmatprep.mubr.msk.bf16.mxu1 %vm633_vm0, %v1681_v63 }
  0x7e   : > { %803 = vmatmul.mubr.bf16.gmra.mrb[44].mxu0 %v1682_v0  ;;  %1574 = vmatmul.mubr.msk.bf16.gmra.mrb[44].mxu1 %vm633_vm0, %v1683_v1 }
  0xf9   : > { %v1427_v2 = vpop.f32.mrb[0].mxu0  ;;  %v1499_v3 = vpop.f32.mrb[0].mxu1 }
  0xfa   : > { %v1428_v4 = vpop.f32.mrb[1].mxu0  ;;  %v1500_v5 = vpop.f32.mrb[1].mxu1 }
  0xfb   : > { %v1429_v6 = vadd.f32 %v1428_v4, %v1427_v2  ;;  %v1430_v7 = vpop.f32.mrb[2].mxu0  ;;  %v1846_v8 = vadd.f32 %v1500_v5, %v1499_v3  ;;  %v1502_v9 = vpop.f32.mrb[2].mxu1 }
  0xfc   : > { %v1431_v10 = vpop.f32.mrb[3].mxu0  ;;  %v1503_v11 = vpop.f32.mrb[3].mxu1 }
  0xfd   : > { %v1432_v12 = vadd.f32 %v1431_v10, %v1430_v7  ;;  %v1848_v13 = vadd.f32 %v1503_v11, %v1502_v9  ;;  %v717_v54 = vadd.f32 %v1429_v6, %v1865_v50 }
  0xff   : > { %v720_v63 = vadd.f32 %v1432_v12, %v1865_v50 }
 0x101   : > { %v1433_v14 = vpop.f32.mrb[4].mxu0  ;;  %v1505_v15 = vpop.f32.mrb[4].mxu1 }
 0x102   : > { %v1434_v16 = vpop.f32.mrb[5].mxu0  ;;  %v1506_v17 = vpop.f32.mrb[5].mxu1 }
 0x103   : > { %v1435_v18 = vadd.f32 %v1434_v16, %v1433_v14  ;;  %v1436_v19 = vpop.f32.mrb[6].mxu0  ;;  %v1850_v20 = vadd.f32 %v1506_v17, %v1505_v15  ;;  %v1508_v21 = vpop.f32.mrb[6].mxu1 }
 0x104   : > { %v1437_v22 = vpop.f32.mrb[7].mxu0  ;;  %v1509_v23 = vpop.f32.mrb[7].mxu1 }
 0x105   : > { %v1438_v24 = vadd.f32 %v1437_v22, %v1436_v19  ;;  %v1852_v25 = vadd.f32 %v1509_v23, %v1508_v21  ;;  %v725_v51 = vadd.f32 %v1435_v18, %v1865_v50 }
 0x107   : > { %v728_v58 = vadd.f32 %v1438_v24, %v1865_v50 }
 0x109   : > { %v1439_v26 = vpop.f32.mrb[8].mxu0  ;;  %v1511_v27 = vpop.f32.mrb[8].mxu1 }
 0x10a   : > { %v1440_v28 = vpop.f32.mrb[9].mxu0  ;;  %v1512_v29 = vpop.f32.mrb[9].mxu1 }
 0x10b   : > { %v1441_v30 = vadd.f32 %v1440_v28, %v1439_v26  ;;  %v1442_v31 = vpop.f32.mrb[10].mxu0  ;;  %v1854_v32 = vadd.f32 %v1512_v29, %v1511_v27  ;;  %v1514_v33 = vpop.f32.mrb[10].mxu1 }
 0x10c   : > { %v1443_v34 = vpop.f32.mrb[11].mxu0  ;;  %v1515_v35 = vpop.f32.mrb[11].mxu1 }
 0x10d   : > { %v1444_v36 = vadd.f32 %v1443_v34, %v1442_v31  ;;  %v1856_v37 = vadd.f32 %v1515_v35, %v1514_v33  ;;  %v733_v18 = vadd.f32 %v1441_v30, %v1865_v50 }
 0x10f   : > { %v736_v29 = vadd.f32 %v1444_v36, %v1865_v50 }
 0x111   : > { %v1445_v38 = vpop.f32.mrb[12].mxu0  ;;  %v1517_v39 = vpop.f32.mrb[12].mxu1 }
 0x112   : > { %v1446_v40 = vpop.f32.mrb[13].mxu0  ;;  %v1518_v41 = vpop.f32.mrb[13].mxu1 }
 0x113   : > { %v1447_v42 = vadd.f32 %v1446_v40, %v1445_v38  ;;  %v1448_v43 = vpop.f32.mrb[14].mxu0  ;;  %v1858_v44 = vadd.f32 %v1518_v41, %v1517_v39  ;;  %v1520_v45 = vpop.f32.mrb[14].mxu1 }
 0x114   : > { %v1449_v46 = vpop.f32.mrb[15].mxu0  ;;  %v1521_v47 = vpop.f32.mrb[15].mxu1 }
 0x115   : > { %v1450_v48 = vadd.f32 %v1449_v46, %v1448_v43  ;;  %v1860_v49 = vadd.f32 %v1521_v47, %v1520_v45  ;;  %v741_v14 = vadd.f32 %v1447_v42, %v1865_v50 }
 0x117   : > { %v744_v23 = vadd.f32 %v1450_v48, %v1865_v50 }
 0x119   : > { %v1451_v52 = vpop.f32.mrb[16].mxu0  ;;  %v1547_v53 = vpop.f32.mrb[16].mxu1 }
 0x11a   : > { %v886_v55 = vadd.f32 %v1547_v53, %v725_v51  ;;  %v1452_v56 = vpop.f32.mrb[17].mxu0  ;;  %v877_v57 = vpop.f32.mrb[17].mxu1 }
 0x11b   : > { %v1453_v59 = vadd.f32 %v1452_v56, %v1451_v52  ;;  %v878_v60 = vadd.f32 %v877_v57, %v717_v54  ;;  %v1454_v61 = vpop.f32.mrb[18].mxu0  ;;  %v1548_v62 = vpop.f32.mrb[18].mxu1 }
 0x11c   : > { %v1006_v0 = vmax.f32 %v886_v55, 0.0  ;;  %v889_v1 = vadd.f32 %v1548_v62, %v728_v58  ;;  %v1455_v2 = vpop.f32.mrb[19].mxu0  ;;  %v880_v3 = vpop.f32.mrb[19].mxu1 }
 0x11d   : > { %v1004_v4 = vmax.f32 %v878_v60, 0.0  ;;  %v1456_v5 = vadd.f32 %v1455_v2, %v1454_v61  ;;  %v881_v6 = vadd.f32 %v880_v3, %v720_v63  ;;  %v749_v51 = vadd.f32 %v1453_v59, %v1865_v50 }
 0x11e   : > { %v1381_v7 = vpack.c.bf16 %v1006_v0, %v1006_v0  ;;  %v1007_v9 = vmax.f32 %v889_v1, 0.0 }
 0x11f   : > { %v1379_v10 = vpack.c.bf16 %v1004_v4, %v1004_v4  ;;  %v1005_v11 = vmax.f32 %v881_v6, 0.0  ;;  %v752_v61 = vadd.f32 %v1456_v5, %v1865_v50 }
 0x120   : > { %1167 = vst.msk [vmem:[%s1875_s8 + $0x8] sm:$0xf] %vm1164_vm1, %v1381_v7  ;;  %v1382_v12 = vpack.c.bf16 %v1007_v9, %v1007_v9 }
 0x121   : > { %1165 = vst.msk [vmem:[%s1875_s8] sm:$0xf] %vm1164_vm1, %v1379_v10  ;;  %v1380_v15 = vpack.c.bf16 %v1005_v11, %v1005_v11  ;;  %v1457_v16 = vpop.f32.mrb[20].mxu0  ;;  %v1551_v17 = vpop.f32.mrb[20].mxu1 }
 0x122   : > { %1168 = vst.msk [vmem:[%s1875_s8 + $0xc] sm:$0xf] %vm1164_vm1, %v1382_v12  ;;  %v902_v19 = vadd.f32 %v1551_v17, %v741_v14  ;;  %v1458_v21 = vpop.f32.mrb[21].mxu0  ;;  %v893_v22 = vpop.f32.mrb[21].mxu1 }
 0x123   : > { %1166 = vst.msk [vmem:[%s1875_s8 + $0x4] sm:$0xf] %vm1164_vm1, %v1380_v15  ;;  %v1459_v24 = vadd.f32 %v1458_v21, %v1457_v16  ;;  %v894_v26 = vadd.f32 %v893_v22, %v733_v18  ;;  %v1460_v27 = vpop.f32.mrb[22].mxu0  ;;  %v1552_v28 = vpop.f32.mrb[22].mxu1 }
 0x124   : > { %v1010_v31 = vmax.f32 %v902_v19, 0.0  ;;  %v905_v33 = vadd.f32 %v1552_v28, %v744_v23  ;;  %v1461_v30 = vpop.f32.mrb[23].mxu0  ;;  %v896_v34 = vpop.f32.mrb[23].mxu1 }
 0x125   : > { %v1008_v35 = vmax.f32 %v894_v26, 0.0  ;;  %v1462_v38 = vadd.f32 %v1461_v30, %v1460_v27  ;;  %v897_v39 = vadd.f32 %v896_v34, %v736_v29  ;;  %v757_v46 = vadd.f32 %v1459_v24, %v1865_v50 }
 0x126   : > { %v1385_v40 = vpack.c.bf16 %v1010_v31, %v1010_v31  ;;  %v1011_v41 = vmax.f32 %v905_v33, 0.0 }
 0x127   : > { %v1383_v42 = vpack.c.bf16 %v1008_v35, %v1008_v35  ;;  %v1009_v43 = vmax.f32 %v897_v39, 0.0  ;;  %v760_v55 = vadd.f32 %v1462_v38, %v1865_v50 }
 0x128   : > { %1171 = vst.msk [vmem:[%s1875_s8 + $0x18] sm:$0xf] %vm1164_vm1, %v1385_v40  ;;  %v1386_v45 = vpack.c.bf16 %v1011_v41, %v1011_v41 }
 0x129   : > { %1169 = vst.msk [vmem:[%s1875_s8 + $0x10] sm:$0xf] %vm1164_vm1, %v1383_v42  ;;  %v1384_v36 = vpack.c.bf16 %v1009_v43, %v1009_v43  ;;  %v1463_v47 = vpop.f32.mrb[24].mxu0  ;;  %v1555_v48 = vpop.f32.mrb[24].mxu1 }
 0x12a   : > { %1172 = vst.msk [vmem:[%s1875_s8 + $0x1c] sm:$0xf] %vm1164_vm1, %v1386_v45  ;;  %v918_v52 = vadd.f32 %v1555_v48, %v757_v46  ;;  %v1464_v53 = vpop.f32.mrb[25].mxu0  ;;  %v909_v54 = vpop.f32.mrb[25].mxu1 }
 0x12b   : > { %1170 = vst.msk [vmem:[%s1875_s8 + $0x14] sm:$0xf] %vm1164_vm1, %v1384_v36  ;;  %v1465_v56 = vadd.f32 %v1464_v53, %v1463_v47  ;;  %v910_v57 = vadd.f32 %v909_v54, %v749_v51  ;;  %v1466_v58 = vpop.f32.mrb[26].mxu0  ;;  %v1556_v60 = vpop.f32.mrb[26].mxu1 }
 0x12c   : > { %v1014_v62 = vmax.f32 %v918_v52, 0.0  ;;  %v921_v63 = vadd.f32 %v1556_v60, %v760_v55  ;;  %v1467_v59 = vpop.f32.mrb[27].mxu0  ;;  %v912_v0 = vpop.f32.mrb[27].mxu1 }
 0x12d   : > { %v1012_v1 = vmax.f32 %v910_v57, 0.0  ;;  %v1468_v2 = vadd.f32 %v1467_v59, %v1466_v58  ;;  %v913_v3 = vadd.f32 %v912_v0, %v752_v61  ;;  %v765_v14 = vadd.f32 %v1465_v56, %v1865_v50 }
 0x12e   : > { %v1389_v4 = vpack.c.bf16 %v1014_v62, %v1014_v62  ;;  %v1015_v6 = vmax.f32 %v921_v63, 0.0 }
 0x12f   : > { %v1387_v7 = vpack.c.bf16 %v1012_v1, %v1012_v1  ;;  %v1013_v9 = vmax.f32 %v913_v3, 0.0  ;;  %v768_v22 = vadd.f32 %v1468_v2, %v1865_v50 }
 0x130   : > { %1175 = vst.msk [vmem:[%s1875_s8 + $0x28] sm:$0xf] %vm1164_vm1, %v1389_v4  ;;  %v1390_v10 = vpack.c.bf16 %v1015_v6, %v1015_v6 }
 0x131   : > { %1173 = vst.msk [vmem:[%s1875_s8 + $0x20] sm:$0xf] %vm1164_vm1, %v1387_v7  ;;  %v1388_v11 = vpack.c.bf16 %v1013_v9, %v1013_v9  ;;  %v1469_v5 = vpop.f32.mrb[28].mxu0  ;;  %v1559_v12 = vpop.f32.mrb[28].mxu1 }
 0x132   : > { %1176 = vst.msk [vmem:[%s1875_s8 + $0x2c] sm:$0xf] %vm1164_vm1, %v1390_v10  ;;  %v1470_v15 = vpop.f32.mrb[29].mxu0  ;;  %v925_v16 = vpop.f32.mrb[29].mxu1 }
 0x133   : > { %1174 = vst.msk [vmem:[%s1875_s8 + $0x24] sm:$0xf] %vm1164_vm1, %v1388_v11  ;;  %v1471_v17 = vadd.f32 %v1470_v15, %v1469_v5  ;;  %v926_v18 = vadd.f32 %v925_v16, %v765_v14  ;;  %v1472_v19 = vpop.f32.mrb[30].mxu0  ;;  %v1560_v21 = vpop.f32.mrb[30].mxu1  ;;  %v821_v14 = vadd.f32 %v1850_v20, %v1865_v50 }
 0x134   : > { %v1473_v23 = vpop.f32.mrb[31].mxu0  ;;  %v928_v24 = vpop.f32.mrb[31].mxu1 }
 0x135   : > { %v773_v26 = vadd.f32 %v1471_v17, %v1865_v50  ;;  %v1016_v27 = vmax.f32 %v926_v18, 0.0  ;;  %v1474_v28 = vadd.f32 %v1473_v23, %v1472_v19  ;;  %v929_v29 = vadd.f32 %v928_v24, %v768_v22 }
 0x136   : > { %v813_v19 = vadd.f32 %v1846_v8, %v1865_v50  ;;  %v824_v24 = vadd.f32 %v1852_v25, %v1865_v50  ;;  %v816_v8 = vadd.f32 %v1848_v13, %v1865_v50 }
 0x137   : > { %v934_v31 = vadd.f32 %v1559_v12, %v773_v26  ;;  %v1391_v33 = vpack.c.bf16 %v1016_v27, %v1016_v27  ;;  %v776_v30 = vadd.f32 %v1474_v28, %v1865_v50  ;;  %v1017_v34 = vmax.f32 %v929_v29, 0.0 }
 0x139   : > { %v1018_v35 = vmax.f32 %v934_v31, 0.0  ;;  %1177 = vst.msk [vmem:[%s1875_s8 + $0x30] sm:$0xf] %vm1164_vm1, %v1391_v33  ;;  %v937_v38 = vadd.f32 %v1560_v21, %v776_v30  ;;  %v1392_v39 = vpack.c.bf16 %v1017_v34, %v1017_v34  ;;  %v1475_v40 = vpop.f32.mrb[32].mxu0  ;;  %v1563_v41 = vpop.f32.mrb[32].mxu1 }
 0x13a   : > { %v1476_v42 = vpop.f32.mrb[33].mxu0  ;;  %v941_v43 = vpop.f32.mrb[33].mxu1 }
 0x13b   : > { %v1393_v45 = vpack.c.bf16 %v1018_v35, %v1018_v35  ;;  %v1019_v46 = vmax.f32 %v937_v38, 0.0  ;;  %1178 = vst.msk [vmem:[%s1875_s8 + $0x34] sm:$0xf] %vm1164_vm1, %v1392_v39  ;;  %v1477_v36 = vadd.f32 %v1476_v42, %v1475_v40  ;;  %v1478_v47 = vpop.f32.mrb[34].mxu0  ;;  %v1564_v48 = vpop.f32.mrb[34].mxu1 }
 0x13c   : > { %v1479_v51 = vpop.f32.mrb[35].mxu0  ;;  %v944_v52 = vpop.f32.mrb[35].mxu1 }
 0x13d   : > { %1179 = vst.msk [vmem:[%s1875_s8 + $0x38] sm:$0xf] %vm1164_vm1, %v1393_v45  ;;  %v1394_v53 = vpack.c.bf16 %v1019_v46, %v1019_v46  ;;  %v781_v54 = vadd.f32 %v1477_v36, %v1865_v50  ;;  %v1480_v55 = vadd.f32 %v1479_v51, %v1478_v47 }
 0x13f   : > { %1180 = vst.msk [vmem:[%s1875_s8 + $0x3c] sm:$0xf] %vm1164_vm1, %v1394_v53  ;;  %v942_v56 = vadd.f32 %v941_v43, %v781_v54  ;;  %v784_v57 = vadd.f32 %v1480_v55, %v1865_v50  ;;  %v829_v55 = vadd.f32 %v1854_v32, %v1865_v50 }
 0x141   : > { %v1020_v58 = vmax.f32 %v942_v56, 0.0  ;;  %v945_v60 = vadd.f32 %v944_v52, %v784_v57  ;;  %v1481_v61 = vpop.f32.mrb[36].mxu0  ;;  %v1923_v62 = vpop.f32.mrb[36].mxu1 }
 0x142   : > { %v1482_v63 = vpop.f32.mrb[37].mxu0  ;;  %v957_v59 = vpop.f32.mrb[37].mxu1 }
 0x143   : > { %v1395_v0 = vpack.c.bf16 %v1020_v58, %v1020_v58  ;;  %v1021_v1 = vmax.f32 %v945_v60, 0.0  ;;  %v1483_v2 = vadd.f32 %v1482_v63, %v1481_v61  ;;  %v1484_v3 = vpop.f32.mrb[38].mxu0  ;;  %v1925_v4 = vpop.f32.mrb[38].mxu1 }
 0x144   : > { %v1485_v6 = vpop.f32.mrb[39].mxu0  ;;  %v960_v7 = vpop.f32.mrb[39].mxu1 }
 0x145   : > { %1181 = vst.msk [vmem:[%s1875_s8 + $0x40] sm:$0xf] %vm1164_vm1, %v1395_v0  ;;  %v1396_v9 = vpack.c.bf16 %v1021_v1, %v1021_v1  ;;  %v789_v10 = vadd.f32 %v1483_v2, %v1865_v50  ;;  %v1486_v11 = vadd.f32 %v1485_v6, %v1484_v3 }
 0x147   : > { %1182 = vst.msk [vmem:[%s1875_s8 + $0x44] sm:$0xf] %vm1164_vm1, %v1396_v9  ;;  %v950_v5 = vadd.f32 %v1563_v41, %v789_v10  ;;  %v792_v12 = vadd.f32 %v1486_v11, %v1865_v50 }
 0x149   : > { %v1022_v15 = vmax.f32 %v950_v5, 0.0  ;;  %v953_v16 = vadd.f32 %v1564_v48, %v792_v12  ;;  %v1487_v17 = vpop.f32.mrb[40].mxu0  ;;  %v1571_v18 = vpop.f32.mrb[40].mxu1  ;;  %v837_v48 = vadd.f32 %v1858_v44, %v1865_v50  ;;  %v840_v44 = vadd.f32 %v1860_v49, %v1865_v50 }
 0x14a   : > { %v982_v21 = vadd.f32 %v1571_v18, %v821_v14  ;;  %v1488_v22 = vpop.f32.mrb[41].mxu0  ;;  %v973_v23 = vpop.f32.mrb[41].mxu1 }
 0x14b   : > { %v1397_v26 = vpack.c.bf16 %v1022_v15, %v1022_v15  ;;  %v1023_v27 = vmax.f32 %v953_v16, 0.0  ;;  %v1489_v28 = vadd.f32 %v1488_v22, %v1487_v17  ;;  %v974_v29 = vadd.f32 %v973_v23, %v813_v19  ;;  %v1490_v20 = vpop.f32.mrb[42].mxu0  ;;  %v1572_v31 = vpop.f32.mrb[42].mxu1 }
 0x14c   : > { %v1030_v33 = vmax.f32 %v982_v21, 0.0  ;;  %v985_v30 = vadd.f32 %v1572_v31, %v824_v24  ;;  %v1491_v34 = vpop.f32.mrb[43].mxu0  ;;  %v976_v35 = vpop.f32.mrb[43].mxu1 }
 0x14d   : > { %1183 = vst.msk [vmem:[%s1875_s8 + $0x48] sm:$0xf] %vm1164_vm1, %v1397_v26  ;;  %v1398_v38 = vpack.c.bf16 %v1023_v27, %v1023_v27  ;;  %v797_v25 = vadd.f32 %v1489_v28, %v1865_v50  ;;  %v1028_v39 = vmax.f32 %v974_v29, 0.0  ;;  %v1492_v40 = vadd.f32 %v1491_v34, %v1490_v20 }
 0x14e   : > { %v1405_v41 = vpack.c.bf16 %v1030_v33, %v1030_v33  ;;  %v1031_v42 = vmax.f32 %v985_v30, 0.0  ;;  %v977_v43 = vadd.f32 %v976_v35, %v816_v8 }
 0x14f   : > { %1184 = vst.msk [vmem:[%s1875_s8 + $0x4c] sm:$0xf] %vm1164_vm1, %v1398_v38  ;;  %v958_v45 = vadd.f32 %v957_v59, %v797_v25  ;;  %v1403_v46 = vpack.c.bf16 %v1028_v39, %v1028_v39  ;;  %v800_v36 = vadd.f32 %v1492_v40, %v1865_v50 }
 0x150   : > { %1191 = vst.msk [vmem:[%s1875_s8 + $0x68] sm:$0xf] %vm1164_vm1, %v1405_v41  ;;  %v1406_v13 = vpack.c.bf16 %v1031_v42, %v1031_v42  ;;  %v1029_v47 = vmax.f32 %v977_v43, 0.0 }
 0x151   : > { %v1024_v51 = vmax.f32 %v958_v45, 0.0  ;;  %1189 = vst.msk [vmem:[%s1875_s8 + $0x60] sm:$0xf] %vm1164_vm1, %v1403_v46  ;;  %v961_v52 = vadd.f32 %v960_v7, %v800_v36  ;;  %v1493_v53 = vpop.f32.mrb[44].mxu0  ;;  %v1575_v54 = vpop.f32.mrb[44].mxu1  ;;  %v832_v7 = vadd.f32 %v1856_v37, %v1865_v50 }
 0x152   : > { %1192 = vst.msk [vmem:[%s1875_s8 + $0x6c] sm:$0xf] %vm1164_vm1, %v1406_v13  ;;  %v1404_v56 = vpack.c.bf16 %v1029_v47, %v1029_v47  ;;  %v998_v57 = vadd.f32 %v1575_v54, %v837_v48  ;;  %v1494_v58 = vpop.f32.mrb[45].mxu0  ;;  %v989_v60 = vpop.f32.mrb[45].mxu1 }
 0x153   : > { %v1399_v61 = vpack.c.bf16 %v1024_v51, %v1024_v51  ;;  %v1025_v63 = vmax.f32 %v961_v52, 0.0  ;;  %v1495_v59 = vadd.f32 %v1494_v58, %v1493_v53  ;;  %v990_v0 = vadd.f32 %v989_v60, %v829_v55  ;;  %v1496_v1 = vpop.f32.mrb[46].mxu0  ;;  %v1576_v2 = vpop.f32.mrb[46].mxu1 }
 0x154   : > { %1190 = vst.msk [vmem:[%s1875_s8 + $0x64] sm:$0xf] %vm1164_vm1, %v1404_v56  ;;  %v1034_v32 = vmax.f32 %v998_v57, 0.0  ;;  %v1001_v3 = vadd.f32 %v1576_v2, %v840_v44  ;;  %v1497_v6 = vpop.f32.mrb[47].mxu0  ;;  %v992_v9 = vpop.f32.mrb[47].mxu1 }
 0x155   : > { %1185 = vst.msk [vmem:[%s1875_s8 + $0x50] sm:$0xf] %vm1164_vm1, %v1399_v61  ;;  %v1400_v49 = vpack.c.bf16 %v1025_v63, %v1025_v63  ;;  %v805_v10 = vadd.f32 %v1495_v59, %v1865_v50  ;;  %v1032_v11 = vmax.f32 %v990_v0, 0.0  ;;  %v1498_v5 = vadd.f32 %v1497_v6, %v1496_v1 }
 0x156   : > { %v1409_v12 = vpack.c.bf16 %v1034_v32, %v1034_v32  ;;  %v1035_v14 = vmax.f32 %v1001_v3, 0.0  ;;  %v993_v15 = vadd.f32 %v992_v9, %v832_v7 }
 0x157   : > { %1186 = vst.msk [vmem:[%s1875_s8 + $0x54] sm:$0xf] %vm1164_vm1, %v1400_v49  ;;  %v966_v16 = vadd.f32 %v1923_v62, %v805_v10  ;;  %v1407_v37 = vpack.c.bf16 %v1032_v11, %v1032_v11  ;;  %v808_v17 = vadd.f32 %v1498_v5, %v1865_v50 }
 0x158   : > { %1195 = vst.msk [vmem:[%s1875_s8 + $0x78] sm:$0xf] %vm1164_vm1, %v1409_v12  ;;  %v1410_v18 = vpack.c.bf16 %v1035_v14, %v1035_v14  ;;  %v1033_v19 = vmax.f32 %v993_v15, 0.0 }
 0x159   : > { %v1026_v21 = vmax.f32 %v966_v16, 0.0  ;;  %1193 = vst.msk [vmem:[%s1875_s8 + $0x70] sm:$0xf] %vm1164_vm1, %v1407_v37  ;;  %v969_v22 = vadd.f32 %v1925_v4, %v808_v17 }
 0x15a   : > { %1196 = vst.msk [vmem:[%s1875_s8 + $0x7c] sm:$0xf] %vm1164_vm1, %v1410_v18  ;;  %v1408_v23 = vpack.c.bf16 %v1033_v19, %v1033_v19 }
 0x15b   : > { %v1401_v24 = vpack.c.bf16 %v1026_v21, %v1026_v21  ;;  %v1027_v26 = vmax.f32 %v969_v22, 0.0 }
 0x15c   : > { %1194 = vst.msk [vmem:[%s1875_s8 + $0x74] sm:$0xf] %vm1164_vm1, %v1408_v23 }
 0x15d   : > { %1187 = vst.msk [vmem:[%s1875_s8 + $0x58] sm:$0xf] %vm1164_vm1, %v1401_v24  ;;  %v1402_v62 = vpack.c.bf16 %v1027_v26, %v1027_v26 }
 0x15f   : > { %1188 = vst.msk [vmem:[%s1875_s8 + $0x5c] sm:$0xf] %vm1164_vm1, %v1402_v62 }
 0x160 PF: > { %s13_s12 = sadd.s32 1, %s1690_s12  }
 0x161   : > { %p10_p4 = scmp.ge.s32.totalorder %s13_s12, 9  }
 0x163   :  { %12 = sbr.rel (!%p10_p4) target bundleno = 1 (0x1), region = 62 }

// kernel: quizdnn_forward.11
= control target key start
LH: loop header
LB: loop body
LE: loop exit
PB: predicated region body
PF: predicated region fallthrough
CT: control target
= control target key end

     0   :  { %s1806_s12 = smov 0   ;;  %s2032_s0 = inlined_call_operand.vmem [shape: bf16[512,288], index: 0, kind: input, shape index: {}]   ;;  %s2033_s1 = inlined_call_operand.vmem [shape: bf16[288,128], index: 1, kind: input, shape index: {}]   ;;  %s2034_s2 = inlined_call_operand.vmem [shape: f32[1,128], index: 2, kind: input, shape index: {}]   ;;  %s2035_s3 = inlined_call_operand.vmem [shape: bf16[512,128], index: 3, kind: output, shape index: {}]  }
   0x1 LB: > { %s1252_s13 = sadd.s32 4294967295, %s1784_s12   ;;  %p1256_p0 = scmp.ge.s32.totalorder %s1784_s12, 1  ;;  %s1784_s12 = sphi %s1806_s12, %s13_s12  }
   0x2   : > { %p139_p1 = scmp.lt.s32.totalorder %s1784_s12, 3 }
   0x4   : > { %p140_p2 = pnand %p1256_p0, %p139_p1 }
   0x5   : > { %v1696_v0 = vld [vmem:[%s2033_s1 + $0x40] sm:$0xff] (!%p140_p2)   ;;  %s1257_s16 = sshll.u32 (!%p140_p2), %s1252_s13, 5  ;;  %v1698_v2 = vld [vmem:[%s2033_s1 + $0x48] sm:$0xff] (!%p140_p2)   ;;  %v1700_v4 = vld [vmem:[%s2033_s1 + $0x50] sm:$0xff] (!%p140_p2)   ;;  %vm633_vm0 = vcmask (!%p140_p2), 261120  }
   0x6   : > { %143 = sbr.rel (%p140_p2) target bundleno = 352 (0x160), region = 32  ;;  %v1697_v1 = vld [vmem:[%s2033_s1] sm:$0xff] (!%p140_p2)   ;;  %1505 = vmatprep.subr.bf16.mxu0 (!%p140_p2), %v1696_v0  ;;  %1671 = vmatprep.subr.bf16.mxu1 (!%p140_p2), %v1696_v0  ;;  %p165_p3 = scmp.lt.s32.totalorder (!%p140_p2), %s1257_s16, 63  ;;  %v1699_v3 = vld [vmem:[%s2033_s1 + $0x8] sm:$0xff] (!%p140_p2)   ;;  %v1701_v5 = vld [vmem:[%s2033_s1 + $0x10] sm:$0xff] (!%p140_p2)  }
   0x7   : > { %1506 = vmatpush3.bf16.msra.mxu0 (!%p140_p2), %v1697_v1  ;;  %1679 = vmatpush3.bf16.msra.mxu1 (!%p140_p2), %v1697_v1  ;;  %v1702_v6 = vld [vmem:[%s2033_s1 + $0x58] sm:$0xff] (!%p140_p2)   ;;  %v1704_v8 = vld [vmem:[%s2033_s1 + $0x60] sm:$0xff] (!%p140_p2)   ;;  %v1706_v10 = vld [vmem:[%s2033_s1 + $0x68] sm:$0xff] (!%p140_p2)  }
   0x8   : > { %1507 = vmatprep.subr.bf16.mxu0 (!%p140_p2), %v1698_v2  ;;  %1672 = vmatprep.subr.bf16.mxu1 (!%p140_p2), %v1698_v2  ;;  %v1703_v7 = vld [vmem:[%s2033_s1 + $0x18] sm:$0xff] (!%p140_p2)   ;;  %v1705_v9 = vld [vmem:[%s2033_s1 + $0x20] sm:$0xff] (!%p140_p2)   ;;  %v1707_v13 = vld [vmem:[%s2033_s1 + $0x28] sm:$0xff] (!%p140_p2)  }
   0x9   : > { %v1708_v14 = vld [vmem:[%s2033_s1 + $0x70] sm:$0xff] (!%p140_p2)   ;;  %v1710_v16 = vld [vmem:[%s2033_s1 + $0x78] sm:$0xff] (!%p140_p2)   ;;  %v1718_v18 = vld [vmem:[%s2033_s1 + $0x80] sm:$0xff] (!%p140_p2)  }
   0xa   : > { %v1709_v15 = vld [vmem:[%s2033_s1 + $0x30] sm:$0xff] (!%p140_p2)   ;;  %v1711_v17 = vld [vmem:[%s2033_s1 + $0x38] sm:$0xff] (!%p140_p2)   ;;  %v1731_v23 = vld [vmem:[%s2033_s1 + $0x88] sm:$0xff] (!%p140_p2)  }
   0xb   : > { %1508 = vmatpush3.bf16.msra.mxu0 (!%p140_p2), %v1699_v3  ;;  %1680 = vmatpush3.bf16.msra.mxu1 (!%p140_p2), %v1699_v3 }
   0xc   : > { %1509 = vmatprep.subr.bf16.mxu0 (!%p140_p2), %v1700_v4  ;;  %1673 = vmatprep.subr.bf16.mxu1 (!%p140_p2), %v1700_v4 }
   0xd   : > { %s2037_s16 = smov (!%p165_p3, %s1257_s16), 63 }
   0xe   : > { %s1687_s29 = smul.u32 12, %s2037_s16  ;;  %s1260_s5 = sshll.u32 %s2037_s16, 2 }
   0xf   : > { %1510 = vmatpush3.bf16.msra.mxu0 %v1701_v5  ;;  %1681 = vmatpush3.bf16.msra.mxu1 %v1701_v5  ;;  %s1969_s8 = scalar_lea.vmem %s2035_s3, %s1260_s5 }
  0x10   : > { %1511 = vmatprep.subr.bf16.mxu0 %v1702_v6  ;;  %1674 = vmatprep.subr.bf16.mxu1 %v1702_v6  ;;  %s1847_s9 = scalar_lea.vmem %s2032_s0, %s1687_s29 }
  0x11   : > { %v1714_v11 = vld [vmem:[%s1847_s9 + $0x4] ss:$12 sps:$4 sm:$0xff]   ;;  %v1712_v19 = vld [vmem:[%s1847_s9] ss:$12 sps:$4 sm:$0xff]   ;;  %v1719_v21 = vld [vmem:[%s1847_s9 + $0x1c] ss:$12 sps:$4 sm:$0xff]  }
  0x12   : > { %v1717_v12 = vld [vmem:[%s1847_s9 + $0x124] ss:$12 sps:$4 sm:$0xff]   ;;  %714 = vmatprep.mubr.bf16.mxu0 %v1714_v11  ;;  %v1715_v20 = vld [vmem:[%s1847_s9 + $0x120] ss:$12 sps:$4 sm:$0xff]   ;;  %v1721_v22 = vld [vmem:[%s1847_s9 + $0x13c] ss:$12 sps:$4 sm:$0xff]  }
  0x13   : > { %1512 = vmatpush3.bf16.msra.mxu0 %v1703_v7  ;;  %1682 = vmatpush3.bf16.msra.mxu1 %v1703_v7  ;;  %v1723_v24 = vld [vmem:[%s1847_s9 + $0x18] ss:$12 sps:$4 sm:$0xff]   ;;  %v1725_v26 = vld [vmem:[%s1847_s9 + $0x34] ss:$12 sps:$4 sm:$0xff]   ;;  %v1729_v28 = vld [vmem:[%s1847_s9 + $0x30] ss:$12 sps:$4 sm:$0xff]  }
  0x14   : > { %1513 = vmatprep.subr.bf16.mxu0 %v1704_v8  ;;  %1675 = vmatprep.subr.bf16.mxu1 %v1704_v8  ;;  %v1724_v25 = vld [vmem:[%s1847_s9 + $0x138] ss:$12 sps:$4 sm:$0xff]   ;;  %v1727_v27 = vld [vmem:[%s1847_s9 + $0x154] ss:$12 sps:$4 sm:$0xff]   ;;  %v1730_v29 = vld [vmem:[%s1847_s9 + $0x150] ss:$12 sps:$4 sm:$0xff]  }
  0x15   : > { %810 = vmatprep.mubr.bf16.mxu1 %v1717_v12  ;;  %v1732_v30 = vld [vmem:[%s1847_s9 + $0x4c] ss:$12 sps:$4 sm:$0xff]   ;;  %v1736_v32 = vld [vmem:[%s1847_s9 + $0x48] ss:$12 sps:$4 sm:$0xff]   ;;  %v1738_v34 = vld [vmem:[%s1847_s9 + $0x64] ss:$12 sps:$4 sm:$0xff]  }
  0x16   : > { %v1734_v31 = vld [vmem:[%s1847_s9 + $0x16c] ss:$12 sps:$4 sm:$0xff]   ;;  %v1737_v33 = vld [vmem:[%s1847_s9 + $0x168] ss:$12 sps:$4 sm:$0xff]   ;;  %v1747_v41 = vld [vmem:[%s1847_s9 + $0x50] ss:$12 sps:$4 sm:$0xff]  }
  0x17   : > { %1514 = vmatpush3.bf16.msra.mxu0 %v1705_v9  ;;  %1683 = vmatpush3.bf16.msra.mxu1 %v1705_v9  ;;  %v1740_v35 = vld [vmem:[%s1847_s9 + $0x8] ss:$12 sps:$4 sm:$0xff]   ;;  %v1741_v36 = vld [vmem:[%s1847_s9 + $0x60] ss:$12 sps:$4 sm:$0xff]   ;;  %v1745_v39 = vld [vmem:[%s1847_s9 + $0x38] ss:$12 sps:$4 sm:$0xff]  }
  0x18   : > { %1515 = vmatprep.subr.bf16.mxu0 %v1706_v10  ;;  %1676 = vmatprep.subr.bf16.mxu1 %v1706_v10  ;;  %v1742_v37 = vld [vmem:[%s1847_s9 + $0x20] ss:$12 sps:$4 sm:$0xff]   ;;  %v1743_v38 = vld [vmem:[%s1847_s9 + $0x7c] ss:$12 sps:$4 sm:$0xff]   ;;  %v1746_v40 = vld [vmem:[%s1847_s9 + $0x78] ss:$12 sps:$4 sm:$0xff]  }
  0x19   : > { %v1748_v42 = vld [vmem:[%s1847_s9 + $0x94] ss:$12 sps:$4 sm:$0xff]   ;;  %v1751_v44 = vld [vmem:[%s1847_s9 + $0x90] ss:$12 sps:$4 sm:$0xff]   ;;  %v1753_v46 = vld [vmem:[%s1847_s9 + $0xac] ss:$12 sps:$4 sm:$0xff]  }
  0x1a   : > { %v1750_v43 = vld [vmem:[%s1847_s9 + $0x68] ss:$12 sps:$4 sm:$0xff]   ;;  %v1752_v45 = vld [vmem:[%s1847_s9 + $0x80] ss:$12 sps:$4 sm:$0xff]   ;;  %v1755_v47 = vld [vmem:[%s1847_s9 + $0x98] ss:$12 sps:$4 sm:$0xff]  }
  0x1b   : > { %1516 = vmatpush3.bf16.msra.mxu0 %v1707_v13  ;;  %1684 = vmatpush3.bf16.msra.mxu1 %v1707_v13  ;;  %v1756_v48 = vld [vmem:[%s1847_s9 + $0xa8] ss:$12 sps:$4 sm:$0xff]   ;;  %v1757_v49 = vld [vmem:[%s1847_s9 + $0xb0] ss:$12 sps:$4 sm:$0xff]   ;;  %v1761_v52 = vld [vmem:[%s1847_s9 + $0xc0] ss:$12 sps:$4 sm:$0xff]  }
  0x1c   : > { %1517 = vmatprep.subr.bf16.mxu0 %v1708_v14  ;;  %1677 = vmatprep.subr.bf16.mxu1 %v1708_v14  ;;  %v1758_v50 = vld [vmem:[%s1847_s9 + $0xc4] ss:$12 sps:$4 sm:$0xff]   ;;  %v1760_v51 = vld [vmem:[%s1847_s9 + $0xc8] ss:$12 sps:$4 sm:$0xff]   ;;  %v1762_v53 = vld [vmem:[%s1847_s9 + $0xe0] ss:$12 sps:$4 sm:$0xff]  }
  0x1d   : > { %v1763_v54 = vld [vmem:[%s1847_s9 + $0xdc] ss:$12 sps:$4 sm:$0xff]   ;;  %v1765_v55 = vld [vmem:[%s1847_s9 + $0xf8] ss:$12 sps:$4 sm:$0xff]   ;;  %v1768_v58 = vld [vmem:[%s1847_s9 + $0xf4] ss:$12 sps:$4 sm:$0xff]  }
  0x1e   : > { %v1766_v56 = vld [vmem:[%s1847_s9 + $0xd8] ss:$12 sps:$4 sm:$0xff]   ;;  %v1767_v57 = vld [vmem:[%s1847_s9 + $0x110] ss:$12 sps:$4 sm:$0xff]   ;;  %v1770_v59 = vld [vmem:[%s1847_s9 + $0x128] ss:$12 sps:$4 sm:$0xff]  }
  0x1f   : > { %1518 = vmatpush3.bf16.msra.mxu0 %v1709_v15  ;;  %1685 = vmatpush3.bf16.msra.mxu1 %v1709_v15  ;;  %v1771_v60 = vld [vmem:[%s1847_s9 + $0xf0] ss:$12 sps:$4 sm:$0xff]   ;;  %v1772_v61 = vld [vmem:[%s1847_s9 + $0x140] ss:$12 sps:$4 sm:$0xff]   ;;  %v1775_v63 = vld [vmem:[%s1847_s9 + $0x158] ss:$12 sps:$4 sm:$0xff]  }
  0x20   : > { %1519 = vmatprep.subr.bf16.mxu0 %v1710_v16  ;;  %1678 = vmatprep.subr.bf16.mxu1 %v1710_v16  ;;  %v1773_v62 = vld [vmem:[%s1847_s9 + $0x10c] ss:$12 sps:$4 sm:$0xff]   ;;  %v1776_v0 = vld [vmem:[%s1847_s9 + $0x108] ss:$12 sps:$4 sm:$0xff]   ;;  %v1777_v1 = vld [vmem:[%s1847_s9 + $0x170] ss:$12 sps:$4 sm:$0xff]  }
  0x23   : > { %1520 = vmatpush3.bf16.msra.mxu0 %v1711_v17  ;;  %1686 = vmatpush3.bf16.msra.mxu1 %v1711_v17 }
  0x24   : > { %1635 = vmatprep.subr.bf16.mxu1 %v1718_v18 }
  0x26   : > { %715 = vmatmul.mubr.bf16.vlgmr.msra.gmra.mrb[0].mxu0 %v1712_v19  ;;  %811 = vmatmul.mubr.bf16.vlgmr.msra.gmra.mrb[0].mxu1 %v1715_v20 }
  0x27   : > { %1636 = vmatpush3.bf16.msra.mxu1 %v1718_v18  ;;  %722 = vmatprep.mubr.bf16.mxu0 %v1719_v21 }
  0x28   : > { %818 = vmatprep.mubr.bf16.mxu1 %v1721_v22  ;;  %1637 = vmatprep.subr.bf16.mxu1 %v1731_v23 }
  0x2b   : > { %1638 = vmatpush3.bf16.msra.mxu1 %v1731_v23 }
  0x2e   : > { %723 = vmatmul.mubr.bf16.gmra.mrb[4].mxu0 %v1723_v24  ;;  %819 = vmatmul.mubr.bf16.gmra.mrb[4].mxu1 %v1724_v25 }
  0x2f   : > { %730 = vmatprep.mubr.bf16.mxu0 %v1725_v26  ;;  %826 = vmatprep.mubr.bf16.mxu1 %v1727_v27 }
  0x36   : > { %731 = vmatmul.mubr.bf16.gmra.mrb[8].mxu0 %v1729_v28  ;;  %827 = vmatmul.mubr.bf16.gmra.mrb[8].mxu1 %v1730_v29 }
  0x37   : > { %738 = vmatprep.mubr.bf16.mxu0 %v1732_v30  ;;  %834 = vmatprep.mubr.bf16.mxu1 %v1734_v31 }
  0x3e   : > { %739 = vmatmul.mubr.bf16.gmra.mrb[12].mxu0 %v1736_v32  ;;  %835 = vmatmul.mubr.bf16.gmra.mrb[12].mxu1 %v1737_v33 }
  0x3f   : > { %746 = vmatprep.mubr.bf16.mxu0 %v1738_v34  ;;  %1639 = vmatprep.mubr.msk.bf16.mxu1 %vm633_vm0, %v1740_v35 }
  0x46   : > { %747 = vmatmul.mubr.bf16.gmra.mrb[16].mxu0 %v1741_v36  ;;  %1640 = vmatmul.mubr.msk.bf16.vlgmr.msra.gmra.mrb[16].mxu1 %vm633_vm0, %v1742_v37 }
  0x47   : > { %754 = vmatprep.mubr.bf16.mxu0 %v1743_v38  ;;  %1643 = vmatprep.mubr.msk.bf16.mxu1 %vm633_vm0, %v1745_v39 }
  0x4e   : > { %755 = vmatmul.mubr.bf16.gmra.mrb[20].mxu0 %v1746_v40  ;;  %1644 = vmatmul.mubr.msk.bf16.gmra.mrb[20].mxu1 %vm633_vm0, %v1747_v41 }
  0x4f   : > { %762 = vmatprep.mubr.bf16.mxu0 %v1748_v42  ;;  %1647 = vmatprep.mubr.msk.bf16.mxu1 %vm633_vm0, %v1750_v43 }
  0x56   : > { %763 = vmatmul.mubr.bf16.gmra.mrb[24].mxu0 %v1751_v44  ;;  %1648 = vmatmul.mubr.msk.bf16.gmra.mrb[24].mxu1 %vm633_vm0, %v1752_v45 }
  0x57   : > { %770 = vmatprep.mubr.bf16.mxu0 %v1753_v46  ;;  %1651 = vmatprep.mubr.msk.bf16.mxu1 %vm633_vm0, %v1755_v47 }
  0x5e   : > { %771 = vmatmul.mubr.bf16.gmra.mrb[28].mxu0 %v1756_v48  ;;  %1652 = vmatmul.mubr.msk.bf16.gmra.mrb[28].mxu1 %vm633_vm0, %v1757_v49 }
  0x5f   : > { %778 = vmatprep.mubr.bf16.mxu0 %v1758_v50  ;;  %1655 = vmatprep.mubr.msk.bf16.mxu1 %vm633_vm0, %v1760_v51  ;;  %v1959_v50 = vld [vmem:[%s2034_s2] ss:$0 sm:$0xff] }
  0x66   : > { %779 = vmatmul.mubr.bf16.gmra.mrb[32].mxu0 %v1761_v52  ;;  %1656 = vmatmul.mubr.msk.bf16.gmra.mrb[32].mxu1 %vm633_vm0, %v1762_v53 }
  0x67   : > { %786 = vmatprep.mubr.bf16.mxu0 %v1763_v54  ;;  %1659 = vmatprep.mubr.msk.bf16.mxu1 %vm633_vm0, %v1765_v55 }
  0x6e   : > { %787 = vmatmul.mubr.bf16.gmra.mrb[36].mxu0 %v1766_v56  ;;  %1660 = vmatmul.mubr.msk.bf16.gmra.mrb[36].mxu1 %vm633_vm0, %v1767_v57 }
  0x6f   : > { %794 = vmatprep.mubr.bf16.mxu0 %v1768_v58  ;;  %1663 = vmatprep.mubr.msk.bf16.mxu1 %vm633_vm0, %v1770_v59 }
  0x76   : > { %795 = vmatmul.mubr.bf16.gmra.mrb[40].mxu0 %v1771_v60  ;;  %1664 = vmatmul.mubr.msk.bf16.gmra.mrb[40].mxu1 %vm633_vm0, %v1772_v61 }
  0x77   : > { %802 = vmatprep.mubr.bf16.mxu0 %v1773_v62  ;;  %1667 = vmatprep.mubr.msk.bf16.mxu1 %vm633_vm0, %v1775_v63 }
  0x7e   : > { %803 = vmatmul.mubr.bf16.gmra.mrb[44].mxu0 %v1776_v0  ;;  %1668 = vmatmul.mubr.msk.bf16.gmra.mrb[44].mxu1 %vm633_vm0, %v1777_v1 }
  0xf9   : > { %v1521_v2 = vpop.f32.mrb[0].mxu0  ;;  %v1593_v3 = vpop.f32.mrb[0].mxu1 }
  0xfa   : > { %v1522_v4 = vpop.f32.mrb[1].mxu0  ;;  %v1594_v5 = vpop.f32.mrb[1].mxu1 }
  0xfb   : > { %v1523_v6 = vadd.f32 %v1522_v4, %v1521_v2  ;;  %v1524_v7 = vpop.f32.mrb[2].mxu0  ;;  %v1940_v8 = vadd.f32 %v1594_v5, %v1593_v3  ;;  %v1596_v9 = vpop.f32.mrb[2].mxu1 }
  0xfc   : > { %v1525_v10 = vpop.f32.mrb[3].mxu0  ;;  %v1597_v11 = vpop.f32.mrb[3].mxu1 }
  0xfd   : > { %v1526_v12 = vadd.f32 %v1525_v10, %v1524_v7  ;;  %v1942_v13 = vadd.f32 %v1597_v11, %v1596_v9  ;;  %v717_v54 = vadd.f32 %v1523_v6, %v1959_v50 }
  0xff   : > { %v720_v63 = vadd.f32 %v1526_v12, %v1959_v50 }
 0x101   : > { %v1527_v14 = vpop.f32.mrb[4].mxu0  ;;  %v1599_v15 = vpop.f32.mrb[4].mxu1 }
 0x102   : > { %v1528_v16 = vpop.f32.mrb[5].mxu0  ;;  %v1600_v17 = vpop.f32.mrb[5].mxu1 }
 0x103   : > { %v1529_v18 = vadd.f32 %v1528_v16, %v1527_v14  ;;  %v1530_v19 = vpop.f32.mrb[6].mxu0  ;;  %v1944_v20 = vadd.f32 %v1600_v17, %v1599_v15  ;;  %v1602_v21 = vpop.f32.mrb[6].mxu1 }
 0x104   : > { %v1531_v22 = vpop.f32.mrb[7].mxu0  ;;  %v1603_v23 = vpop.f32.mrb[7].mxu1 }
 0x105   : > { %v1532_v24 = vadd.f32 %v1531_v22, %v1530_v19  ;;  %v1946_v25 = vadd.f32 %v1603_v23, %v1602_v21  ;;  %v725_v51 = vadd.f32 %v1529_v18, %v1959_v50 }
 0x107   : > { %v728_v58 = vadd.f32 %v1532_v24, %v1959_v50 }
 0x109   : > { %v1533_v26 = vpop.f32.mrb[8].mxu0  ;;  %v1605_v27 = vpop.f32.mrb[8].mxu1 }
 0x10a   : > { %v1534_v28 = vpop.f32.mrb[9].mxu0  ;;  %v1606_v29 = vpop.f32.mrb[9].mxu1 }
 0x10b   : > { %v1535_v30 = vadd.f32 %v1534_v28, %v1533_v26  ;;  %v1536_v31 = vpop.f32.mrb[10].mxu0  ;;  %v1948_v32 = vadd.f32 %v1606_v29, %v1605_v27  ;;  %v1608_v33 = vpop.f32.mrb[10].mxu1 }
 0x10c   : > { %v1537_v34 = vpop.f32.mrb[11].mxu0  ;;  %v1609_v35 = vpop.f32.mrb[11].mxu1 }
 0x10d   : > { %v1538_v36 = vadd.f32 %v1537_v34, %v1536_v31  ;;  %v1950_v37 = vadd.f32 %v1609_v35, %v1608_v33  ;;  %v733_v16 = vadd.f32 %v1535_v30, %v1959_v50 }
 0x10f   : > { %v736_v27 = vadd.f32 %v1538_v36, %v1959_v50 }
 0x111   : > { %v1539_v38 = vpop.f32.mrb[12].mxu0  ;;  %v1611_v39 = vpop.f32.mrb[12].mxu1 }
 0x112   : > { %v1540_v40 = vpop.f32.mrb[13].mxu0  ;;  %v1612_v41 = vpop.f32.mrb[13].mxu1 }
 0x113   : > { %v1541_v42 = vadd.f32 %v1540_v40, %v1539_v38  ;;  %v1542_v43 = vpop.f32.mrb[14].mxu0  ;;  %v1952_v44 = vadd.f32 %v1612_v41, %v1611_v39  ;;  %v1614_v45 = vpop.f32.mrb[14].mxu1 }
 0x114   : > { %v1543_v46 = vpop.f32.mrb[15].mxu0  ;;  %v1615_v47 = vpop.f32.mrb[15].mxu1 }
 0x115   : > { %v1544_v48 = vadd.f32 %v1543_v46, %v1542_v43  ;;  %v1954_v49 = vadd.f32 %v1615_v47, %v1614_v45  ;;  %v741_v11 = vadd.f32 %v1541_v42, %v1959_v50 }
 0x117   : > { %v744_v21 = vadd.f32 %v1544_v48, %v1959_v50 }
 0x119   : > { %v1545_v52 = vpop.f32.mrb[16].mxu0  ;;  %v1641_v53 = vpop.f32.mrb[16].mxu1 }
 0x11a   : > { %v886_v55 = vadd.f32 %v1641_v53, %v725_v51  ;;  %v1546_v56 = vpop.f32.mrb[17].mxu0  ;;  %v877_v57 = vpop.f32.mrb[17].mxu1 }
 0x11b   : > { %v1547_v59 = vadd.f32 %v1546_v56, %v1545_v52  ;;  %v878_v60 = vadd.f32 %v877_v57, %v717_v54  ;;  %v1548_v61 = vpop.f32.mrb[18].mxu0  ;;  %v1642_v62 = vpop.f32.mrb[18].mxu1 }
 0x11c   : > { %v889_v0 = vadd.f32 %v1642_v62, %v728_v58  ;;  %v1549_v1 = vpop.f32.mrb[19].mxu0  ;;  %v880_v2 = vpop.f32.mrb[19].mxu1  ;;  %v1006_v5 = vmax.f32 %v886_v55, 0.0 }
 0x11d   : > { %v1550_v3 = vadd.f32 %v1549_v1, %v1548_v61  ;;  %v881_v4 = vadd.f32 %v880_v2, %v720_v63  ;;  %v1004_v6 = vmax.f32 %v878_v60, 0.0  ;;  %v749_v46 = vadd.f32 %v1547_v59, %v1959_v50 }
 0x11e   : > { %v1007_v7 = vmax.f32 %v889_v0, 0.0 }
 0x11f   : > { %v1005_v9 = vmax.f32 %v881_v4, 0.0  ;;  %v752_v56 = vadd.f32 %v1550_v3, %v1959_v50 }
 0x120   : > { %v1418_v10 = vpack.c.bf16 %v1007_v7, %v1006_v5 }
 0x121   : > { %v1413_v12 = vpack.c.bf16 %v1005_v9, %v1004_v6  ;;  %v1551_v14 = vpop.f32.mrb[20].mxu0  ;;  %v1645_v15 = vpop.f32.mrb[20].mxu1 }
 0x122   : > { %1490 = vst [vmem:[%s1969_s8 + $0x8] sm:$0xff] %v1418_v10   ;;  %v902_v17 = vadd.f32 %v1645_v15, %v741_v11  ;;  %v1552_v18 = vpop.f32.mrb[21].mxu0  ;;  %v893_v19 = vpop.f32.mrb[21].mxu1 }
 0x123   : > { %1414 = vst [vmem:[%s1969_s8] sm:$0xff] %v1413_v12   ;;  %v1553_v22 = vadd.f32 %v1552_v18, %v1551_v14  ;;  %v894_v23 = vadd.f32 %v893_v19, %v733_v16  ;;  %v1554_v24 = vpop.f32.mrb[22].mxu0  ;;  %v1646_v26 = vpop.f32.mrb[22].mxu1 }
 0x124   : > { %v905_v28 = vadd.f32 %v1646_v26, %v744_v21  ;;  %v1555_v29 = vpop.f32.mrb[23].mxu0  ;;  %v896_v31 = vpop.f32.mrb[23].mxu1  ;;  %v1010_v30 = vmax.f32 %v902_v17, 0.0 }
 0x125   : > { %v1556_v33 = vadd.f32 %v1555_v29, %v1554_v24  ;;  %v897_v34 = vadd.f32 %v896_v31, %v736_v27  ;;  %v1008_v38 = vmax.f32 %v894_v23, 0.0  ;;  %v757_v41 = vadd.f32 %v1553_v22, %v1959_v50 }
 0x126   : > { %v1011_v35 = vmax.f32 %v905_v28, 0.0 }
 0x127   : > { %v1009_v39 = vmax.f32 %v897_v34, 0.0  ;;  %v760_v51 = vadd.f32 %v1556_v33, %v1959_v50 }
 0x128   : > { %v1428_v40 = vpack.c.bf16 %v1011_v35, %v1010_v30 }
 0x129   : > { %v1423_v42 = vpack.c.bf16 %v1009_v39, %v1008_v38  ;;  %v1557_v43 = vpop.f32.mrb[24].mxu0  ;;  %v1649_v45 = vpop.f32.mrb[24].mxu1 }
 0x12a   : > { %1492 = vst [vmem:[%s1969_s8 + $0x18] sm:$0xff] %v1428_v40   ;;  %v918_v36 = vadd.f32 %v1649_v45, %v757_v41  ;;  %v1558_v47 = vpop.f32.mrb[25].mxu0  ;;  %v909_v48 = vpop.f32.mrb[25].mxu1 }
 0x12b   : > { %1491 = vst [vmem:[%s1969_s8 + $0x10] sm:$0xff] %v1423_v42   ;;  %v1559_v52 = vadd.f32 %v1558_v47, %v1557_v43  ;;  %v910_v53 = vadd.f32 %v909_v48, %v749_v46  ;;  %v1560_v54 = vpop.f32.mrb[26].mxu0  ;;  %v1650_v55 = vpop.f32.mrb[26].mxu1 }
 0x12c   : > { %v921_v57 = vadd.f32 %v1650_v55, %v760_v51  ;;  %v1561_v58 = vpop.f32.mrb[27].mxu0  ;;  %v912_v60 = vpop.f32.mrb[27].mxu1  ;;  %v1014_v62 = vmax.f32 %v918_v36, 0.0 }
 0x12d   : > { %v1562_v61 = vadd.f32 %v1561_v58, %v1560_v54  ;;  %v913_v59 = vadd.f32 %v912_v60, %v752_v56  ;;  %v1012_v0 = vmax.f32 %v910_v53, 0.0  ;;  %v765_v6 = vadd.f32 %v1559_v52, %v1959_v50 }
 0x12e   : > { %v1015_v63 = vmax.f32 %v921_v57, 0.0 }
 0x12f   : > { %v1013_v1 = vmax.f32 %v913_v59, 0.0  ;;  %v768_v15 = vadd.f32 %v1562_v61, %v1959_v50 }
 0x130   : > { %v1438_v2 = vpack.c.bf16 %v1015_v63, %v1014_v62 }
 0x131   : > { %v1433_v4 = vpack.c.bf16 %v1013_v1, %v1012_v0  ;;  %v1563_v5 = vpop.f32.mrb[28].mxu0  ;;  %v1653_v7 = vpop.f32.mrb[28].mxu1 }
 0x132   : > { %1494 = vst [vmem:[%s1969_s8 + $0x28] sm:$0xff] %v1438_v2   ;;  %v1564_v9 = vpop.f32.mrb[29].mxu0  ;;  %v925_v10 = vpop.f32.mrb[29].mxu1 }
 0x133   : > { %1493 = vst [vmem:[%s1969_s8 + $0x20] sm:$0xff] %v1433_v4   ;;  %v1565_v3 = vadd.f32 %v1564_v9, %v1563_v5  ;;  %v926_v11 = vadd.f32 %v925_v10, %v765_v6  ;;  %v1566_v12 = vpop.f32.mrb[30].mxu0  ;;  %v1654_v14 = vpop.f32.mrb[30].mxu1  ;;  %v821_v4 = vadd.f32 %v1944_v20, %v1959_v50  ;;  %v813_v9 = vadd.f32 %v1940_v8, %v1959_v50 }
 0x134   : > { %v1567_v16 = vpop.f32.mrb[31].mxu0  ;;  %v928_v17 = vpop.f32.mrb[31].mxu1 }
 0x135   : > { %v773_v18 = vadd.f32 %v1565_v3, %v1959_v50  ;;  %v1568_v19 = vadd.f32 %v1567_v16, %v1566_v12  ;;  %v929_v21 = vadd.f32 %v928_v17, %v768_v15  ;;  %v1016_v23 = vmax.f32 %v926_v11, 0.0 }
 0x136   : > { %v824_v12 = vadd.f32 %v1946_v25, %v1959_v50 }
 0x137   : > { %v934_v22 = vadd.f32 %v1653_v7, %v773_v18  ;;  %v776_v24 = vadd.f32 %v1568_v19, %v1959_v50  ;;  %v1017_v26 = vmax.f32 %v929_v21, 0.0 }
 0x139   : > { %v937_v27 = vadd.f32 %v1654_v14, %v776_v24  ;;  %v1443_v28 = vpack.c.bf16 %v1017_v26, %v1016_v23  ;;  %v1569_v29 = vpop.f32.mrb[32].mxu0  ;;  %v1657_v31 = vpop.f32.mrb[32].mxu1  ;;  %v1018_v30 = vmax.f32 %v934_v22, 0.0  ;;  %v816_v22 = vadd.f32 %v1942_v13, %v1959_v50 }
 0x13a   : > { %v1570_v33 = vpop.f32.mrb[33].mxu0  ;;  %v941_v34 = vpop.f32.mrb[33].mxu1 }
 0x13b   : > { %v1019_v35 = vmax.f32 %v937_v27, 0.0  ;;  %1495 = vst [vmem:[%s1969_s8 + $0x30] sm:$0xff] %v1443_v28   ;;  %v1571_v38 = vadd.f32 %v1570_v33, %v1569_v29  ;;  %v1572_v39 = vpop.f32.mrb[34].mxu0  ;;  %v1658_v40 = vpop.f32.mrb[34].mxu1 }
 0x13c   : > { %v1573_v41 = vpop.f32.mrb[35].mxu0  ;;  %v944_v42 = vpop.f32.mrb[35].mxu1 }
 0x13d   : > { %v1448_v43 = vpack.c.bf16 %v1019_v35, %v1018_v30  ;;  %v781_v45 = vadd.f32 %v1571_v38, %v1959_v50  ;;  %v1574_v46 = vadd.f32 %v1573_v41, %v1572_v39  ;;  %v837_v35 = vadd.f32 %v1952_v44, %v1959_v50 }
 0x13f   : > { %1496 = vst [vmem:[%s1969_s8 + $0x38] sm:$0xff] %v1448_v43   ;;  %v942_v36 = vadd.f32 %v941_v34, %v781_v45  ;;  %v784_v47 = vadd.f32 %v1574_v46, %v1959_v50  ;;  %v840_v46 = vadd.f32 %v1954_v49, %v1959_v50 }
 0x141   : > { %v945_v48 = vadd.f32 %v944_v42, %v784_v47  ;;  %v1575_v51 = vpop.f32.mrb[36].mxu0  ;;  %v1993_v52 = vpop.f32.mrb[36].mxu1  ;;  %v1020_v55 = vmax.f32 %v942_v36, 0.0 }
 0x142   : > { %v1576_v53 = vpop.f32.mrb[37].mxu0  ;;  %v957_v54 = vpop.f32.mrb[37].mxu1 }
 0x143   : > { %v1021_v56 = vmax.f32 %v945_v48, 0.0  ;;  %v1577_v57 = vadd.f32 %v1576_v53, %v1575_v51  ;;  %v1578_v58 = vpop.f32.mrb[38].mxu0  ;;  %v1995_v60 = vpop.f32.mrb[38].mxu1 }
 0x144   : > { %v1579_v61 = vpop.f32.mrb[39].mxu0  ;;  %v960_v59 = vpop.f32.mrb[39].mxu1 }
 0x145   : > { %v1453_v62 = vpack.c.bf16 %v1021_v56, %v1020_v55  ;;  %v789_v63 = vadd.f32 %v1577_v57, %v1959_v50  ;;  %v1580_v0 = vadd.f32 %v1579_v61, %v1578_v58 }
 0x147   : > { %1497 = vst [vmem:[%s1969_s8 + $0x40] sm:$0xff] %v1453_v62   ;;  %v950_v1 = vadd.f32 %v1657_v31, %v789_v63  ;;  %v792_v2 = vadd.f32 %v1580_v0, %v1959_v50 }
 0x149   : > { %v953_v5 = vadd.f32 %v1658_v40, %v792_v2  ;;  %v1581_v7 = vpop.f32.mrb[40].mxu0  ;;  %v1665_v6 = vpop.f32.mrb[40].mxu1  ;;  %v1022_v14 = vmax.f32 %v950_v1, 0.0  ;;  %v829_v40 = vadd.f32 %v1948_v32, %v1959_v50  ;;  %v832_v32 = vadd.f32 %v1950_v37, %v1959_v50 }
 0x14a   : > { %v982_v10 = vadd.f32 %v1665_v6, %v821_v4  ;;  %v1582_v3 = vpop.f32.mrb[41].mxu0  ;;  %v973_v11 = vpop.f32.mrb[41].mxu1 }
 0x14b   : > { %v1023_v15 = vmax.f32 %v953_v5, 0.0  ;;  %v1583_v16 = vadd.f32 %v1582_v3, %v1581_v7  ;;  %v974_v17 = vadd.f32 %v973_v11, %v813_v9  ;;  %v1584_v18 = vpop.f32.mrb[42].mxu0  ;;  %v1666_v19 = vpop.f32.mrb[42].mxu1 }
 0x14c   : > { %v985_v20 = vadd.f32 %v1666_v19, %v824_v12  ;;  %v1585_v21 = vpop.f32.mrb[43].mxu0  ;;  %v976_v23 = vpop.f32.mrb[43].mxu1  ;;  %v1030_v27 = vmax.f32 %v982_v10, 0.0 }
 0x14d   : > { %v1458_v8 = vpack.c.bf16 %v1023_v15, %v1022_v14  ;;  %v797_v24 = vadd.f32 %v1583_v16, %v1959_v50  ;;  %v1586_v26 = vadd.f32 %v1585_v21, %v1584_v18  ;;  %v977_v28 = vadd.f32 %v976_v23, %v816_v22 }
 0x14e   : > { %v1031_v25 = vmax.f32 %v985_v20, 0.0  ;;  %v1028_v33 = vmax.f32 %v974_v17, 0.0 }
 0x14f   : > { %1498 = vst [vmem:[%s1969_s8 + $0x48] sm:$0xff] %v1458_v8   ;;  %v958_v29 = vadd.f32 %v957_v54, %v797_v24  ;;  %v800_v31 = vadd.f32 %v1586_v26, %v1959_v50  ;;  %v1029_v30 = vmax.f32 %v977_v28, 0.0 }
 0x150   : > { %v1478_v34 = vpack.c.bf16 %v1031_v25, %v1030_v27 }
 0x151   : > { %v961_v13 = vadd.f32 %v960_v59, %v800_v31  ;;  %v1587_v38 = vpop.f32.mrb[44].mxu0  ;;  %v1669_v39 = vpop.f32.mrb[44].mxu1  ;;  %v1473_v41 = vpack.c.bf16 %v1029_v30, %v1028_v33  ;;  %v1024_v36 = vmax.f32 %v958_v29, 0.0 }
 0x152   : > { %1502 = vst [vmem:[%s1969_s8 + $0x68] sm:$0xff] %v1478_v34   ;;  %v998_v42 = vadd.f32 %v1669_v39, %v837_v35  ;;  %v1588_v43 = vpop.f32.mrb[45].mxu0  ;;  %v989_v45 = vpop.f32.mrb[45].mxu1 }
 0x153   : > { %v1025_v47 = vmax.f32 %v961_v13, 0.0  ;;  %v1589_v48 = vadd.f32 %v1588_v43, %v1587_v38  ;;  %v990_v44 = vadd.f32 %v989_v45, %v829_v40  ;;  %v1590_v51 = vpop.f32.mrb[46].mxu0  ;;  %v1670_v53 = vpop.f32.mrb[46].mxu1  ;;  %1501 = vst [vmem:[%s1969_s8 + $0x60] sm:$0xff] %v1473_v41  }
 0x154   : > { %v1001_v54 = vadd.f32 %v1670_v53, %v840_v46  ;;  %v1591_v55 = vpop.f32.mrb[47].mxu0  ;;  %v992_v56 = vpop.f32.mrb[47].mxu1  ;;  %v1034_v61 = vmax.f32 %v998_v42, 0.0 }
 0x155   : > { %v1463_v57 = vpack.c.bf16 %v1025_v47, %v1024_v36  ;;  %v805_v58 = vadd.f32 %v1589_v48, %v1959_v50  ;;  %v1592_v49 = vadd.f32 %v1591_v55, %v1590_v51  ;;  %v993_v62 = vadd.f32 %v992_v56, %v832_v32 }
 0x156   : > { %v1035_v59 = vmax.f32 %v1001_v54, 0.0  ;;  %v1032_v1 = vmax.f32 %v990_v44, 0.0 }
 0x157   : > { %1499 = vst [vmem:[%s1969_s8 + $0x50] sm:$0xff] %v1463_v57   ;;  %v966_v63 = vadd.f32 %v1993_v52, %v805_v58  ;;  %v808_v0 = vadd.f32 %v1592_v49, %v1959_v50  ;;  %v1033_v4 = vmax.f32 %v993_v62, 0.0 }
 0x158   : > { %v1488_v2 = vpack.c.bf16 %v1035_v59, %v1034_v61 }
 0x159   : > { %v969_v37 = vadd.f32 %v1995_v60, %v808_v0  ;;  %v1483_v5 = vpack.c.bf16 %v1033_v4, %v1032_v1  ;;  %v1026_v7 = vmax.f32 %v966_v63, 0.0 }
 0x15a   : > { %1504 = vst [vmem:[%s1969_s8 + $0x78] sm:$0xff] %v1488_v2  }
 0x15b   : > { %v1027_v6 = vmax.f32 %v969_v37, 0.0  ;;  %1503 = vst [vmem:[%s1969_s8 + $0x70] sm:$0xff] %v1483_v5  }
 0x15d   : > { %v1468_v9 = vpack.c.bf16 %v1027_v6, %v1026_v7 }
 0x15f   : > { %1500 = vst [vmem:[%s1969_s8 + $0x58] sm:$0xff] %v1468_v9  }
 0x160 PF: > { %s13_s12 = sadd.s32 1, %s1784_s12  }
 0x161   : > { %p10_p4 = scmp.ge.s32.totalorder %s13_s12, 4  }
 0x163   :  { %12 = sbr.rel (!%p10_p4) target bundleno = 1 (0x1), region = 62 }

// kernel: quizdnn_forward.12
= control target key start
LH: loop header
LB: loop body
LE: loop exit
PB: predicated region body
PF: predicated region fallthrough
CT: control target
= control target key end

     0   :  { %s2443_s12 = smov 0   ;;  %s2884_s0 = inlined_call_operand.vmem [shape: bf16[512,576], index: 0, kind: input, shape index: {}]   ;;  %s2885_s1 = inlined_call_operand.vmem [shape: bf16[576,64], index: 1, kind: input, shape index: {}]   ;;  %s2886_s2 = inlined_call_operand.vmem [shape: f32[1,64], index: 2, kind: input, shape index: {}]   ;;  %s2887_s3 = inlined_call_operand.vmem [shape: bf16[512,64], index: 3, kind: output, shape index: {}]  }
   0x1 LB: > { %s1750_s13 = sadd.s32 4294967295, %s2421_s12   ;;  %p1754_p0 = scmp.ge.s32.totalorder %s2421_s12, 1  ;;  %s2421_s12 = sphi %s2443_s12, %s13_s12  }
   0x2   : > { %p139_p1 = scmp.lt.s32.totalorder %s2421_s12, 3 }
   0x4   : > { %p140_p2 = pnand %p1754_p0, %p139_p1 }
   0x5   : > { %v2267_v0 = vld [vmem:[%s2885_s1 + $0x40] sm:$0xff] (!%p140_p2)   ;;  %s1755_s16 = sshll.u32 (!%p140_p2), %s1750_s13, 5  ;;  %v2269_v2 = vld [vmem:[%s2885_s1 + $0x48] sm:$0xff] (!%p140_p2)   ;;  %v2271_v4 = vld [vmem:[%s2885_s1 + $0x50] sm:$0xff] (!%p140_p2)   ;;  %vm969_vm0 = vcmask (!%p140_p2), 523264   ;;  %vm1661_vm1 = vcmask (!%p140_p2), 519168  }
   0x6   : > { %143 = sbr.rel (%p140_p2) target bundleno = 416 (0x1a0), region = 32  ;;  %v2268_v1 = vld [vmem:[%s2885_s1] sm:$0xff] (!%p140_p2)   ;;  %1958 = vmatprep.subr.bf16.mxu0 (!%p140_p2), %v2267_v0  ;;  %2242 = vmatprep.subr.bf16.mxu1 (!%p140_p2), %v2267_v0  ;;  %p165_p3 = scmp.lt.s32.totalorder (!%p140_p2), %s1755_s16, 63  ;;  %v2270_v3 = vld [vmem:[%s2885_s1 + $0x8] sm:$0xff] (!%p140_p2)   ;;  %v2272_v5 = vld [vmem:[%s2885_s1 + $0x10] sm:$0xff] (!%p140_p2)  }
   0x7   : > { %1959 = vmatpush3.bf16.msra.mxu0 (!%p140_p2), %v2268_v1  ;;  %2250 = vmatpush3.bf16.msra.mxu1 (!%p140_p2), %v2268_v1  ;;  %v2273_v6 = vld [vmem:[%s2885_s1 + $0x58] sm:$0xff] (!%p140_p2)   ;;  %v2275_v8 = vld [vmem:[%s2885_s1 + $0x60] sm:$0xff] (!%p140_p2)   ;;  %v2277_v10 = vld [vmem:[%s2885_s1 + $0x68] sm:$0xff] (!%p140_p2)  }
   0x8   : > { %1960 = vmatprep.subr.bf16.mxu0 (!%p140_p2), %v2269_v2  ;;  %2243 = vmatprep.subr.bf16.mxu1 (!%p140_p2), %v2269_v2  ;;  %v2274_v7 = vld [vmem:[%s2885_s1 + $0x18] sm:$0xff] (!%p140_p2)   ;;  %v2276_v9 = vld [vmem:[%s2885_s1 + $0x20] sm:$0xff] (!%p140_p2)   ;;  %v2278_v13 = vld [vmem:[%s2885_s1 + $0x28] sm:$0xff] (!%p140_p2)  }
   0x9   : > { %v2279_v14 = vld [vmem:[%s2885_s1 + $0x70] sm:$0xff] (!%p140_p2)   ;;  %v2281_v16 = vld [vmem:[%s2885_s1 + $0x78] sm:$0xff] (!%p140_p2)   ;;  %v2289_v18 = vld [vmem:[%s2885_s1 + $0xc0] sm:$0xff] (!%p140_p2)  }
   0xa   : > { %v2280_v15 = vld [vmem:[%s2885_s1 + $0x30] sm:$0xff] (!%p140_p2)   ;;  %v2282_v17 = vld [vmem:[%s2885_s1 + $0x38] sm:$0xff] (!%p140_p2)   ;;  %v2292_v19 = vld [vmem:[%s2885_s1 + $0x100] sm:$0xff] (!%p140_p2)  }
   0xb   : > { %1961 = vmatpush3.bf16.msra.mxu0 (!%p140_p2), %v2270_v3  ;;  %2251 = vmatpush3.bf16.msra.mxu1 (!%p140_p2), %v2270_v3  ;;  %v2290_v22 = vld [vmem:[%s2885_s1 + $0x80] sm:$0xff] (!%p140_p2)   ;;  %v2291_v23 = vld [vmem:[%s2885_s1 + $0xc8] sm:$0xff] (!%p140_p2)   ;;  %v2300_v28 = vld [vmem:[%s2885_s1 + $0xd0] sm:$0xff] (!%p140_p2)  }
   0xc   : > { %1962 = vmatprep.subr.bf16.mxu0 (!%p140_p2), %v2271_v4  ;;  %2244 = vmatprep.subr.bf16.mxu1 (!%p140_p2), %v2271_v4  ;;  %v2293_v26 = vld [vmem:[%s2885_s1 + $0x88] sm:$0xff] (!%p140_p2)   ;;  %v2301_v30 = vld [vmem:[%s2885_s1 + $0x90] sm:$0xff] (!%p140_p2)   ;;  %v2302_v31 = vld [vmem:[%s2885_s1 + $0xd8] sm:$0xff] (!%p140_p2)  }
   0xd   : > { %s2889_s16 = smov (!%p165_p3, %s1755_s16), 63  ;;  %v2303_v34 = vld [vmem:[%s2885_s1 + $0x98] sm:$0xff]   ;;  %v2323_v35 = vld [vmem:[%s2885_s1 + $0x108] sm:$0xff]   ;;  %v2310_v37 = vld [vmem:[%s2885_s1 + $0xe0] sm:$0xff]  }
   0xe   : > { %s2258_s29 = smul.u32 20, %s2889_s16  ;;  %v2311_v39 = vld [vmem:[%s2885_s1 + $0xa0] sm:$0xff]   ;;  %v2312_v40 = vld [vmem:[%s2885_s1 + $0xe8] sm:$0xff]   ;;  %v2320_v46 = vld [vmem:[%s2885_s1 + $0xf0] sm:$0xff]   ;;  %s1758_s19 = sshll.u32 %s2889_s16, 2 }
   0xf   : > { %1963 = vmatpush3.bf16.msra.mxu0 %v2272_v5  ;;  %2252 = vmatpush3.bf16.msra.mxu1 %v2272_v5  ;;  %v2313_v43 = vld [vmem:[%s2885_s1 + $0xa8] sm:$0xff]   ;;  %v2343_v47 = vld [vmem:[%s2885_s1 + $0x110] sm:$0xff]   ;;  %v2322_v49 = vld [vmem:[%s2885_s1 + $0xf8] sm:$0xff]   ;;  %s2756_s21 = scalar_lea.vmem %s2887_s3, %s1758_s19 }
  0x10   : > { %1964 = vmatprep.subr.bf16.mxu0 %v2273_v6  ;;  %2245 = vmatprep.subr.bf16.mxu1 %v2273_v6  ;;  %s2484_s9 = scalar_lea.vmem %s2884_s0, %s2258_s29  ;;  %v2321_v48 = vld [vmem:[%s2885_s1 + $0xb0] sm:$0xff]   ;;  %v2324_v52 = vld [vmem:[%s2885_s1 + $0xb8] sm:$0xff]  }
  0x11   : > { %v2285_v11 = vld [vmem:[%s2484_s9 + $0x4] ss:$20 sps:$4 sm:$0xff]   ;;  %v2283_v20 = vld [vmem:[%s2484_s9] ss:$20 sps:$4 sm:$0xff]   ;;  %v2298_v27 = vld [vmem:[%s2484_s9 + $0x28] ss:$20 sps:$4 sm:$0xff]  }
  0x12   : > { %v2288_v12 = vld [vmem:[%s2484_s9 + $0x1e4] ss:$20 sps:$4 sm:$0xff]   ;;  %1050 = vmatprep.mubr.bf16.mxu0 %v2285_v11  ;;  %v2286_v21 = vld [vmem:[%s2484_s9 + $0x1e0] ss:$20 sps:$4 sm:$0xff]   ;;  %v2299_v29 = vld [vmem:[%s2484_s9 + $0x208] ss:$20 sps:$4 sm:$0xff]  }
  0x13   : > { %1965 = vmatpush3.bf16.msra.mxu0 %v2274_v7  ;;  %2253 = vmatpush3.bf16.msra.mxu1 %v2274_v7  ;;  %v2294_v24 = vld [vmem:[%s2484_s9 + $0x2c] ss:$20 sps:$4 sm:$0xff]   ;;  %v2304_v32 = vld [vmem:[%s2484_s9 + $0x54] ss:$20 sps:$4 sm:$0xff]   ;;  %v2308_v36 = vld [vmem:[%s2484_s9 + $0x50] ss:$20 sps:$4 sm:$0xff]  }
  0x14   : > { %1966 = vmatprep.subr.bf16.mxu0 %v2275_v8  ;;  %2246 = vmatprep.subr.bf16.mxu1 %v2275_v8  ;;  %v2296_v25 = vld [vmem:[%s2484_s9 + $0x20c] ss:$20 sps:$4 sm:$0xff]   ;;  %v2306_v33 = vld [vmem:[%s2484_s9 + $0x234] ss:$20 sps:$4 sm:$0xff]   ;;  %v2309_v38 = vld [vmem:[%s2484_s9 + $0x230] ss:$20 sps:$4 sm:$0xff]  }
  0x15   : > { %1146 = vmatprep.mubr.bf16.mxu1 %v2288_v12  ;;  %v2314_v41 = vld [vmem:[%s2484_s9 + $0x7c] ss:$20 sps:$4 sm:$0xff]   ;;  %v2318_v44 = vld [vmem:[%s2484_s9 + $0x78] ss:$20 sps:$4 sm:$0xff]   ;;  %v2330_v54 = vld [vmem:[%s2484_s9 + $0xa0] ss:$20 sps:$4 sm:$0xff]  }
  0x16   : > { %v2316_v42 = vld [vmem:[%s2484_s9 + $0x25c] ss:$20 sps:$4 sm:$0xff]   ;;  %v2319_v45 = vld [vmem:[%s2484_s9 + $0x258] ss:$20 sps:$4 sm:$0xff]   ;;  %v2333_v57 = vld [vmem:[%s2484_s9 + $0x34] ss:$20 sps:$4 sm:$0xff]  }
  0x17   : > { %1967 = vmatpush3.bf16.msra.mxu0 %v2276_v9  ;;  %2254 = vmatpush3.bf16.msra.mxu1 %v2276_v9  ;;  %v2325_v50 = vld [vmem:[%s2484_s9 + $0xa4] ss:$20 sps:$4 sm:$0xff]   ;;  %v2329_v51 = vld [vmem:[%s2484_s9 + $0xc] ss:$20 sps:$4 sm:$0xff]   ;;  %v2327_v53 = vld [vmem:[%s2484_s9 + $0x8] ss:$20 sps:$4 sm:$0xff]  }
  0x18   : > { %1968 = vmatprep.subr.bf16.mxu0 %v2277_v10  ;;  %2247 = vmatprep.subr.bf16.mxu1 %v2277_v10  ;;  %v2331_v55 = vld [vmem:[%s2484_s9 + $0xcc] ss:$20 sps:$4 sm:$0xff]   ;;  %v2362_v56 = vld [vmem:[%s2885_s1 + $0x118] sm:$0xff]   ;;  %v2336_v59 = vld [vmem:[%s2484_s9 + $0x30] ss:$20 sps:$4 sm:$0xff]  }
  0x19   : > { %v2335_v58 = vld [vmem:[%s2484_s9 + $0xc8] ss:$20 sps:$4 sm:$0xff]   ;;  %v2341_v62 = vld [vmem:[%s2484_s9 + $0xf0] ss:$20 sps:$4 sm:$0xff]   ;;  %v2342_v63 = vld [vmem:[%s2484_s9 + $0x58] ss:$20 sps:$4 sm:$0xff]  }
  0x1a   : > { %v2337_v60 = vld [vmem:[%s2484_s9 + $0xf4] ss:$20 sps:$4 sm:$0xff]   ;;  %v2339_v61 = vld [vmem:[%s2484_s9 + $0x5c] ss:$20 sps:$4 sm:$0xff]   ;;  %v2346_v1 = vld [vmem:[%s2484_s9 + $0x84] ss:$20 sps:$4 sm:$0xff]  }
  0x1b   : > { %1969 = vmatpush3.bf16.msra.mxu0 %v2278_v13  ;;  %2255 = vmatpush3.bf16.msra.mxu1 %v2278_v13  ;;  %v2344_v0 = vld [vmem:[%s2484_s9 + $0x11c] ss:$20 sps:$4 sm:$0xff]   ;;  %v2348_v2 = vld [vmem:[%s2484_s9 + $0x118] ss:$20 sps:$4 sm:$0xff]   ;;  %v2349_v3 = vld [vmem:[%s2484_s9 + $0x80] ss:$20 sps:$4 sm:$0xff]  }
  0x1c   : > { %1970 = vmatprep.subr.bf16.mxu0 %v2279_v14  ;;  %2248 = vmatprep.subr.bf16.mxu1 %v2279_v14  ;;  %v2350_v4 = vld [vmem:[%s2484_s9 + $0x144] ss:$20 sps:$4 sm:$0xff]   ;;  %v2352_v5 = vld [vmem:[%s2484_s9 + $0xac] ss:$20 sps:$4 sm:$0xff]   ;;  %v2355_v7 = vld [vmem:[%s2484_s9 + $0xa8] ss:$20 sps:$4 sm:$0xff]  }
  0x1d   : > { %v2354_v6 = vld [vmem:[%s2484_s9 + $0x140] ss:$20 sps:$4 sm:$0xff]   ;;  %v2360_v10 = vld [vmem:[%s2484_s9 + $0x168] ss:$20 sps:$4 sm:$0xff]   ;;  %v2361_v11 = vld [vmem:[%s2484_s9 + $0xd0] ss:$20 sps:$4 sm:$0xff]  }
  0x1e   : > { %v2356_v8 = vld [vmem:[%s2484_s9 + $0x16c] ss:$20 sps:$4 sm:$0xff]   ;;  %v2358_v9 = vld [vmem:[%s2484_s9 + $0xd4] ss:$20 sps:$4 sm:$0xff]   ;;  %v2365_v13 = vld [vmem:[%s2484_s9 + $0xfc] ss:$20 sps:$4 sm:$0xff]  }
  0x1f   : > { %1971 = vmatpush3.bf16.msra.mxu0 %v2280_v15  ;;  %2256 = vmatpush3.bf16.msra.mxu1 %v2280_v15  ;;  %v2363_v12 = vld [vmem:[%s2484_s9 + $0x194] ss:$20 sps:$4 sm:$0xff]   ;;  %v2367_v14 = vld [vmem:[%s2484_s9 + $0x190] ss:$20 sps:$4 sm:$0xff]   ;;  %v2368_v15 = vld [vmem:[%s2484_s9 + $0xf8] ss:$20 sps:$4 sm:$0xff]  }
  0x20   : > { %1972 = vmatprep.subr.bf16.mxu0 %v2281_v16  ;;  %2249 = vmatprep.subr.bf16.mxu1 %v2281_v16  ;;  %v2369_v16 = vld [vmem:[%s2484_s9 + $0x1bc] ss:$20 sps:$4 sm:$0xff]  }
  0x23   : > { %1973 = vmatpush3.bf16.msra.mxu0 %v2282_v17  ;;  %2257 = vmatpush3.bf16.msra.mxu1 %v2282_v17  ;;  %v2371_v17 = vld [vmem:[%s2484_s9 + $0x124] ss:$20 sps:$4 sm:$0xff]  }
  0x24   : > { %2070 = vmatprep.subr.bf16.mxu1 %v2289_v18  ;;  %2202 = vmatprep.subr.bf16.mxu0 %v2292_v19  ;;  %v2373_v18 = vld [vmem:[%s2484_s9 + $0x1b8] ss:$20 sps:$4 sm:$0xff]  }
  0x26   : > { %1051 = vmatmul.mubr.bf16.vlgmr.msra.gmra.mrb[0].mxu0 %v2283_v20  ;;  %1147 = vmatmul.mubr.bf16.vlgmr.msra.gmra.mrb[0].mxu1 %v2286_v21  ;;  %v2375_v20 = vld [vmem:[%s2484_s9 + $0x14c] ss:$20 sps:$4 sm:$0xff]   ;;  %v2377_v21 = vld [vmem:[%s2484_s9 + $0x10] ss:$20 sps:$4 sm:$0xff]  }
  0x27   : > { %2071 = vmatpush3.bf16.msra.mxu1 %v2290_v22  ;;  %2203 = vmatpush3.bf16.msra.mxu0 %v2292_v19  ;;  %v2374_v19 = vld [vmem:[%s2484_s9 + $0x120] ss:$20 sps:$4 sm:$0xff]   ;;  %v2378_v22 = vld [vmem:[%s2484_s9 + $0x148] ss:$20 sps:$4 sm:$0xff]  }
  0x28   : > { %2072 = vmatprep.subr.bf16.mxu1 %v2291_v23  ;;  %1058 = vmatprep.mubr.bf16.mxu0 %v2294_v24  ;;  %v2379_v23 = vld [vmem:[%s2484_s9 + $0x38] ss:$20 sps:$4 sm:$0xff]   ;;  %v2380_v24 = vld [vmem:[%s2484_s9 + $0x174] ss:$20 sps:$4 sm:$0xff]  }
  0x29   : > { %1154 = vmatprep.mubr.bf16.mxu1 %v2296_v25  ;;  %2204 = vmatprep.subr.bf16.mxu0 %v2323_v35  ;;  %v2382_v25 = vld [vmem:[%s2484_s9 + $0x60] ss:$20 sps:$4 sm:$0xff]  }
  0x2b   : > { %2073 = vmatpush3.bf16.msra.mxu1 %v2293_v26  ;;  %2205 = vmatpush3.bf16.msra.mxu0 %v2323_v35  ;;  %v2383_v26 = vld [vmem:[%s2484_s9 + $0x170] ss:$20 sps:$4 sm:$0xff]   ;;  %v2394_v35 = vld [vmem:[%s2484_s9 + $0x128] ss:$20 sps:$4 sm:$0xff]  }
  0x2c   : > { %2074 = vmatprep.subr.bf16.mxu1 %v2300_v28  ;;  %2206 = vmatprep.subr.bf16.mxu0 %v2343_v47  ;;  %v2385_v28 = vld [vmem:[%s2484_s9 + $0x19c] ss:$20 sps:$4 sm:$0xff]  }
  0x2e   : > { %1059 = vmatmul.mubr.bf16.gmra.mrb[4].mxu0 %v2298_v27  ;;  %1155 = vmatmul.mubr.bf16.gmra.mrb[4].mxu1 %v2299_v29  ;;  %v2384_v27 = vld [vmem:[%s2484_s9 + $0x88] ss:$20 sps:$4 sm:$0xff]   ;;  %v2387_v29 = vld [vmem:[%s2484_s9 + $0xb0] ss:$20 sps:$4 sm:$0xff]  }
  0x2f   : > { %2075 = vmatpush3.bf16.msra.mxu1 %v2301_v30  ;;  %1066 = vmatprep.mubr.bf16.mxu0 %v2304_v32  ;;  %v2388_v30 = vld [vmem:[%s2484_s9 + $0x198] ss:$20 sps:$4 sm:$0xff]  }
  0x30   : > { %2076 = vmatprep.subr.bf16.mxu1 %v2302_v31  ;;  %1162 = vmatprep.mubr.bf16.mxu1 %v2306_v33  ;;  %v2389_v31 = vld [vmem:[%s2484_s9 + $0xd8] ss:$20 sps:$4 sm:$0xff]   ;;  %v2392_v33 = vld [vmem:[%s2484_s9 + $0x100] ss:$20 sps:$4 sm:$0xff]  }
  0x31   : > { %2207 = vmatpush3.bf16.msra.mxu0 %v2343_v47  ;;  %v2390_v32 = vld [vmem:[%s2484_s9 + $0x1c4] ss:$20 sps:$4 sm:$0xff]  }
  0x32   : > { %2208 = vmatprep.subr.bf16.mxu0 %v2362_v56  ;;  %v2409_v47 = vld [vmem:[%s2484_s9 + $0x218] ss:$20 sps:$4 sm:$0xff]  }
  0x33   : > { %2077 = vmatpush3.bf16.msra.mxu1 %v2303_v34  ;;  %v2393_v34 = vld [vmem:[%s2484_s9 + $0x1c0] ss:$20 sps:$4 sm:$0xff]  }
  0x34   : > { %2078 = vmatprep.subr.bf16.mxu1 %v2310_v37  ;;  %v2397_v37 = vld [vmem:[%s2484_s9 + $0x150] ss:$20 sps:$4 sm:$0xff]  }
  0x35   : > { %2209 = vmatpush3.bf16.msra.mxu0 %v2362_v56 }
  0x36   : > { %1067 = vmatmul.mubr.bf16.gmra.mrb[8].mxu0 %v2308_v36  ;;  %1163 = vmatmul.mubr.bf16.gmra.mrb[8].mxu1 %v2309_v38  ;;  %v2395_v36 = vld [vmem:[%s2484_s9 + $0x1ec] ss:$20 sps:$4 sm:$0xff]   ;;  %v2398_v38 = vld [vmem:[%s2484_s9 + $0x1e8] ss:$20 sps:$4 sm:$0xff]  }
  0x37   : > { %2079 = vmatpush3.bf16.msra.mxu1 %v2311_v39  ;;  %1074 = vmatprep.mubr.bf16.mxu0 %v2314_v41  ;;  %v2399_v39 = vld [vmem:[%s2484_s9 + $0x178] ss:$20 sps:$4 sm:$0xff]   ;;  %v2402_v41 = vld [vmem:[%s2484_s9 + $0x1a0] ss:$20 sps:$4 sm:$0xff]  }
  0x38   : > { %2080 = vmatprep.subr.bf16.mxu1 %v2312_v40  ;;  %1170 = vmatprep.mubr.bf16.mxu1 %v2316_v42  ;;  %v2400_v40 = vld [vmem:[%s2484_s9 + $0x214] ss:$20 sps:$4 sm:$0xff]   ;;  %v2403_v42 = vld [vmem:[%s2484_s9 + $0x210] ss:$20 sps:$4 sm:$0xff]  }
  0x3b   : > { %2081 = vmatpush3.bf16.msra.mxu1 %v2313_v43  ;;  %v2404_v43 = vld [vmem:[%s2484_s9 + $0x1c8] ss:$20 sps:$4 sm:$0xff]  }
  0x3c   : > { %2082 = vmatprep.subr.bf16.mxu1 %v2320_v46  ;;  %v2408_v46 = vld [vmem:[%s2484_s9 + $0x238] ss:$20 sps:$4 sm:$0xff]  }
  0x3e   : > { %1075 = vmatmul.mubr.bf16.gmra.mrb[12].mxu0 %v2318_v44  ;;  %1171 = vmatmul.mubr.bf16.gmra.mrb[12].mxu1 %v2319_v45  ;;  %v2405_v44 = vld [vmem:[%s2484_s9 + $0x23c] ss:$20 sps:$4 sm:$0xff]  }
  0x3f   : > { %2083 = vmatpush3.bf16.msra.mxu1 %v2321_v48  ;;  %1082 = vmatprep.mubr.bf16.mxu0 %v2325_v50  ;;  %v2407_v45 = vld [vmem:[%s2484_s9 + $0x1f0] ss:$20 sps:$4 sm:$0xff]   ;;  %v2413_v50 = vld [vmem:[%s2484_s9 + $0x260] ss:$20 sps:$4 sm:$0xff]  }
  0x40   : > { %2084 = vmatprep.subr.bf16.mxu1 %v2322_v49  ;;  %1211 = vmatprep.mubr.bf16.mxu1 %v2329_v51  ;;  %v2410_v48 = vld [vmem:[%s2484_s9 + $0x264] ss:$20 sps:$4 sm:$0xff]   ;;  %v2412_v49 = vld [vmem:[%s2484_s9 + $0x240] ss:$20 sps:$4 sm:$0xff]   ;;  %v2414_v51 = vld [vmem:[%s2484_s9 + $0x268] ss:$20 sps:$4 sm:$0xff]  }
  0x43   : > { %2085 = vmatpush3.bf16.msra.mxu1 %v2324_v52 }
  0x46   : > { %1083 = vmatmul.mubr.bf16.gmra.mrb[16].mxu0 %v2330_v54  ;;  %1212 = vmatmul.mubr.bf16.vlgmr.msra.gmra.mrb[16].mxu1 %v2327_v53 }
  0x47   : > { %1090 = vmatprep.mubr.bf16.mxu0 %v2331_v55  ;;  %1219 = vmatprep.mubr.bf16.mxu1 %v2333_v57 }
  0x4e   : > { %1091 = vmatmul.mubr.bf16.gmra.mrb[20].mxu0 %v2335_v58  ;;  %1220 = vmatmul.mubr.bf16.gmra.mrb[20].mxu1 %v2336_v59 }
  0x4f   : > { %1098 = vmatprep.mubr.bf16.mxu0 %v2337_v60  ;;  %1227 = vmatprep.mubr.bf16.mxu1 %v2339_v61 }
  0x56   : > { %1099 = vmatmul.mubr.bf16.gmra.mrb[24].mxu0 %v2341_v62  ;;  %1228 = vmatmul.mubr.bf16.gmra.mrb[24].mxu1 %v2342_v63 }
  0x57   : > { %1106 = vmatprep.mubr.bf16.mxu0 %v2344_v0  ;;  %1235 = vmatprep.mubr.bf16.mxu1 %v2346_v1 }
  0x5e   : > { %1107 = vmatmul.mubr.bf16.gmra.mrb[28].mxu0 %v2348_v2  ;;  %1236 = vmatmul.mubr.bf16.gmra.mrb[28].mxu1 %v2349_v3 }
  0x5f   : > { %1114 = vmatprep.mubr.bf16.mxu0 %v2350_v4  ;;  %1243 = vmatprep.mubr.bf16.mxu1 %v2352_v5 }
  0x66   : > { %1115 = vmatmul.mubr.bf16.gmra.mrb[32].mxu0 %v2354_v6  ;;  %1244 = vmatmul.mubr.bf16.gmra.mrb[32].mxu1 %v2355_v7 }
  0x67   : > { %1122 = vmatprep.mubr.bf16.mxu0 %v2356_v8  ;;  %1251 = vmatprep.mubr.bf16.mxu1 %v2358_v9 }
  0x6e   : > { %1123 = vmatmul.mubr.bf16.gmra.mrb[36].mxu0 %v2360_v10  ;;  %1252 = vmatmul.mubr.bf16.gmra.mrb[36].mxu1 %v2361_v11 }
  0x6f   : > { %1130 = vmatprep.mubr.bf16.mxu0 %v2363_v12  ;;  %1259 = vmatprep.mubr.bf16.mxu1 %v2365_v13 }
  0x76   : > { %1131 = vmatmul.mubr.bf16.gmra.mrb[40].mxu0 %v2367_v14  ;;  %1260 = vmatmul.mubr.bf16.gmra.mrb[40].mxu1 %v2368_v15 }
  0x77   : > { %1138 = vmatprep.mubr.bf16.mxu0 %v2369_v16  ;;  %1267 = vmatprep.mubr.bf16.mxu1 %v2371_v17 }
  0x7e   : > { %1139 = vmatmul.mubr.bf16.gmra.mrb[44].mxu0 %v2373_v18  ;;  %1268 = vmatmul.mubr.bf16.gmra.mrb[44].mxu1 %v2374_v19 }
  0x7f   : > { %1275 = vmatprep.mubr.bf16.mxu1 %v2375_v20  ;;  %2210 = vmatprep.mubr.msk.bf16.mxu0 %vm969_vm0, %v2377_v21 }
  0x86   : > { %1276 = vmatmul.mubr.bf16.gmra.mrb[48].mxu1 %v2378_v22  ;;  %2211 = vmatmul.mubr.msk.bf16.vlgmr.msra.gmra.mrb[48].mxu0 %vm969_vm0, %v2379_v23 }
  0x87   : > { %1283 = vmatprep.mubr.bf16.mxu1 %v2380_v24  ;;  %2214 = vmatprep.mubr.msk.bf16.mxu0 %vm969_vm0, %v2382_v25 }
  0x8e   : > { %1284 = vmatmul.mubr.bf16.gmra.mrb[52].mxu1 %v2383_v26  ;;  %2215 = vmatmul.mubr.msk.bf16.gmra.mrb[52].mxu0 %vm969_vm0, %v2384_v27 }
  0x8f   : > { %1291 = vmatprep.mubr.bf16.mxu1 %v2385_v28  ;;  %2218 = vmatprep.mubr.msk.bf16.mxu0 %vm969_vm0, %v2387_v29 }
  0x96   : > { %1292 = vmatmul.mubr.bf16.gmra.mrb[56].mxu1 %v2388_v30  ;;  %2219 = vmatmul.mubr.msk.bf16.gmra.mrb[56].mxu0 %vm969_vm0, %v2389_v31 }
  0x97   : > { %1299 = vmatprep.mubr.bf16.mxu1 %v2390_v32  ;;  %2222 = vmatprep.mubr.msk.bf16.mxu0 %vm969_vm0, %v2392_v33 }
  0x9e   : > { %1300 = vmatmul.mubr.bf16.gmra.mrb[60].mxu1 %v2393_v34  ;;  %2223 = vmatmul.mubr.msk.bf16.gmra.mrb[60].mxu0 %vm969_vm0, %v2394_v35 }
  0x9f   : > { %1307 = vmatprep.mubr.bf16.mxu1 %v2395_v36  ;;  %2226 = vmatprep.mubr.msk.bf16.mxu0 %vm969_vm0, %v2397_v37 }
  0xa6   : > { %1308 = vmatmul.mubr.bf16.gmra.mrb[64].mxu1 %v2398_v38  ;;  %2227 = vmatmul.mubr.msk.bf16.gmra.mrb[64].mxu0 %vm969_vm0, %v2399_v39  ;;  %v2682_v38 = vld [vmem:[%s2886_s2] ss:$0 sm:$0xff] }
  0xa7   : > { %1315 = vmatprep.mubr.bf16.mxu1 %v2400_v40  ;;  %2230 = vmatprep.mubr.msk.bf16.mxu0 %vm969_vm0, %v2402_v41 }
  0xae   : > { %1316 = vmatmul.mubr.bf16.gmra.mrb[68].mxu1 %v2403_v42  ;;  %2231 = vmatmul.mubr.msk.bf16.gmra.mrb[68].mxu0 %vm969_vm0, %v2404_v43 }
  0xaf   : > { %1323 = vmatprep.mubr.bf16.mxu1 %v2405_v44  ;;  %2234 = vmatprep.mubr.msk.bf16.mxu0 %vm969_vm0, %v2407_v45 }
  0xb6   : > { %1324 = vmatmul.mubr.bf16.gmra.mrb[72].mxu1 %v2408_v46  ;;  %2235 = vmatmul.mubr.msk.bf16.gmra.mrb[72].mxu0 %vm969_vm0, %v2409_v47 }
  0xb7   : > { %1331 = vmatprep.mubr.bf16.mxu1 %v2410_v48  ;;  %2238 = vmatprep.mubr.msk.bf16.mxu0 %vm969_vm0, %v2412_v49 }
  0xbe   : > { %1332 = vmatmul.mubr.bf16.gmra.mrb[76].mxu1 %v2413_v50  ;;  %2239 = vmatmul.mubr.msk.bf16.gmra.mrb[76].mxu0 %vm969_vm0, %v2414_v51 }
  0xf9   : > { %v2046_v52 = vpop.f32.mrb[0].mxu1  ;;  %v1974_v53 = vpop.f32.mrb[0].mxu0 }
  0xfa   : > { %v2047_v54 = vpop.f32.mrb[1].mxu1  ;;  %v1975_v55 = vpop.f32.mrb[1].mxu0 }
  0xfb   : > { %v2663_v56 = vadd.f32 %v2047_v54, %v2046_v52  ;;  %v2049_v57 = vpop.f32.mrb[2].mxu1  ;;  %v1976_v58 = vadd.f32 %v1975_v55, %v1974_v53  ;;  %v1977_v59 = vpop.f32.mrb[2].mxu0 }
  0xfc   : > { %v2050_v60 = vpop.f32.mrb[3].mxu1  ;;  %v1978_v61 = vpop.f32.mrb[3].mxu0 }
  0xfd   : > { %v2665_v62 = vadd.f32 %v2050_v60, %v2049_v57  ;;  %v1979_v63 = vadd.f32 %v1978_v61, %v1977_v59  ;;  %v1053_v41 = vadd.f32 %v1976_v58, %v2682_v38 }
  0xff   : > { %v1056_v48 = vadd.f32 %v1979_v63, %v2682_v38 }
 0x101   : > { %v2052_v0 = vpop.f32.mrb[4].mxu1  ;;  %v1980_v1 = vpop.f32.mrb[4].mxu0 }
 0x102   : > { %v2053_v2 = vpop.f32.mrb[5].mxu1  ;;  %v1981_v3 = vpop.f32.mrb[5].mxu0 }
 0x103   : > { %v2667_v4 = vadd.f32 %v2053_v2, %v2052_v0  ;;  %v2055_v5 = vpop.f32.mrb[6].mxu1  ;;  %v1982_v6 = vadd.f32 %v1981_v3, %v1980_v1  ;;  %v1983_v7 = vpop.f32.mrb[6].mxu0 }
 0x104   : > { %v2056_v8 = vpop.f32.mrb[7].mxu1  ;;  %v1984_v9 = vpop.f32.mrb[7].mxu0 }
 0x105   : > { %v2669_v10 = vadd.f32 %v2056_v8, %v2055_v5  ;;  %v1985_v11 = vadd.f32 %v1984_v9, %v1983_v7  ;;  %v1061_v58 = vadd.f32 %v1982_v6, %v2682_v38 }
 0x107   : > { %v1064_v63 = vadd.f32 %v1985_v11, %v2682_v38 }
 0x109   : > { %v2058_v12 = vpop.f32.mrb[8].mxu1  ;;  %v1986_v13 = vpop.f32.mrb[8].mxu0 }
 0x10a   : > { %v2059_v14 = vpop.f32.mrb[9].mxu1  ;;  %v1987_v15 = vpop.f32.mrb[9].mxu0 }
 0x10b   : > { %v2671_v16 = vadd.f32 %v2059_v14, %v2058_v12  ;;  %v2061_v17 = vpop.f32.mrb[10].mxu1  ;;  %v1988_v18 = vadd.f32 %v1987_v15, %v1986_v13  ;;  %v1989_v19 = vpop.f32.mrb[10].mxu0 }
 0x10c   : > { %v2062_v20 = vpop.f32.mrb[11].mxu1  ;;  %v1990_v21 = vpop.f32.mrb[11].mxu0 }
 0x10d   : > { %v2673_v22 = vadd.f32 %v2062_v20, %v2061_v17  ;;  %v1991_v23 = vadd.f32 %v1990_v21, %v1989_v19  ;;  %v1069_v6 = vadd.f32 %v1988_v18, %v2682_v38 }
 0x10f   : > { %v1072_v11 = vadd.f32 %v1991_v23, %v2682_v38 }
 0x111   : > { %v2064_v24 = vpop.f32.mrb[12].mxu1  ;;  %v1992_v25 = vpop.f32.mrb[12].mxu0 }
 0x112   : > { %v2065_v26 = vpop.f32.mrb[13].mxu1  ;;  %v1993_v27 = vpop.f32.mrb[13].mxu0 }
 0x113   : > { %v2675_v28 = vadd.f32 %v2065_v26, %v2064_v24  ;;  %v2067_v29 = vpop.f32.mrb[14].mxu1  ;;  %v1994_v30 = vadd.f32 %v1993_v27, %v1992_v25  ;;  %v1995_v31 = vpop.f32.mrb[14].mxu0 }
 0x114   : > { %v2068_v32 = vpop.f32.mrb[15].mxu1  ;;  %v1996_v33 = vpop.f32.mrb[15].mxu0 }
 0x115   : > { %v2677_v34 = vadd.f32 %v2068_v32, %v2067_v29  ;;  %v1997_v35 = vadd.f32 %v1996_v33, %v1995_v31  ;;  %v1077_v18 = vadd.f32 %v1994_v30, %v2682_v38 }
 0x117   : > { %v1080_v23 = vadd.f32 %v1997_v35, %v2682_v38 }
 0x119   : > { %v2086_v36 = vpop.f32.mrb[16].mxu1  ;;  %v1998_v37 = vpop.f32.mrb[16].mxu0 }
 0x11a   : > { %v2087_v39 = vpop.f32.mrb[17].mxu1  ;;  %v1999_v40 = vpop.f32.mrb[17].mxu0 }
 0x11b   : > { %v2088_v42 = vadd.f32 %v2087_v39, %v2086_v36  ;;  %v2089_v43 = vpop.f32.mrb[18].mxu1  ;;  %v2000_v44 = vadd.f32 %v1999_v40, %v1998_v37  ;;  %v2001_v45 = vpop.f32.mrb[18].mxu0 }
 0x11c   : > { %v2090_v46 = vpop.f32.mrb[19].mxu1  ;;  %v2002_v47 = vpop.f32.mrb[19].mxu0 }
 0x11d   : > { %v2091_v49 = vadd.f32 %v2090_v46, %v2089_v43  ;;  %v2003_v50 = vadd.f32 %v2002_v47, %v2001_v45  ;;  %v2686_v51 = vadd.f32 %v2088_v42, %v1053_v41  ;;  %v1085_v30 = vadd.f32 %v2000_v44, %v2682_v38 }
 0x11f   : > { %v2688_v52 = vadd.f32 %v2091_v49, %v1056_v48  ;;  %v1088_v35 = vadd.f32 %v2003_v50, %v2682_v38 }
 0x121   : > { %v2092_v53 = vpop.f32.mrb[20].mxu1  ;;  %v2004_v54 = vpop.f32.mrb[20].mxu0 }
 0x122   : > { %v2093_v55 = vpop.f32.mrb[21].mxu1  ;;  %v2005_v57 = vpop.f32.mrb[21].mxu0 }
 0x123   : > { %v2094_v59 = vadd.f32 %v2093_v55, %v2092_v53  ;;  %v2095_v60 = vpop.f32.mrb[22].mxu1  ;;  %v2006_v61 = vadd.f32 %v2005_v57, %v2004_v54  ;;  %v2007_v0 = vpop.f32.mrb[22].mxu0 }
 0x124   : > { %v2096_v1 = vpop.f32.mrb[23].mxu1  ;;  %v2008_v2 = vpop.f32.mrb[23].mxu0 }
 0x125   : > { %v2097_v3 = vadd.f32 %v2096_v1, %v2095_v60  ;;  %v2009_v5 = vadd.f32 %v2008_v2, %v2007_v0  ;;  %v2692_v7 = vadd.f32 %v2094_v59, %v1061_v58  ;;  %v1093_v44 = vadd.f32 %v2006_v61, %v2682_v38 }
 0x127   : > { %v2694_v8 = vadd.f32 %v2097_v3, %v1064_v63  ;;  %v1096_v50 = vadd.f32 %v2009_v5, %v2682_v38 }
 0x129   : > { %v2098_v9 = vpop.f32.mrb[24].mxu1  ;;  %v2010_v12 = vpop.f32.mrb[24].mxu0 }
 0x12a   : > { %v2099_v13 = vpop.f32.mrb[25].mxu1  ;;  %v2011_v14 = vpop.f32.mrb[25].mxu0 }
 0x12b   : > { %v2100_v15 = vadd.f32 %v2099_v13, %v2098_v9  ;;  %v2101_v17 = vpop.f32.mrb[26].mxu1  ;;  %v2012_v19 = vadd.f32 %v2011_v14, %v2010_v12  ;;  %v2013_v20 = vpop.f32.mrb[26].mxu0 }
 0x12c   : > { %v2102_v21 = vpop.f32.mrb[27].mxu1  ;;  %v2014_v24 = vpop.f32.mrb[27].mxu0 }
 0x12d   : > { %v2103_v25 = vadd.f32 %v2102_v21, %v2101_v17  ;;  %v2015_v26 = vadd.f32 %v2014_v24, %v2013_v20  ;;  %v2698_v27 = vadd.f32 %v2100_v15, %v1069_v6 }
 0x12f   : > { %v2700_v29 = vadd.f32 %v2103_v25, %v1072_v11 }
 0x131   : > { %v2104_v31 = vpop.f32.mrb[28].mxu1  ;;  %v2016_v32 = vpop.f32.mrb[28].mxu0 }
 0x132   : > { %v2105_v33 = vpop.f32.mrb[29].mxu1  ;;  %v2017_v36 = vpop.f32.mrb[29].mxu0 }
 0x133   : > { %v2106_v37 = vadd.f32 %v2105_v33, %v2104_v31  ;;  %v2107_v39 = vpop.f32.mrb[30].mxu1  ;;  %v2018_v40 = vadd.f32 %v2017_v36, %v2016_v32  ;;  %v2019_v41 = vpop.f32.mrb[30].mxu0 }
 0x134   : > { %v2108_v42 = vpop.f32.mrb[31].mxu1  ;;  %v2020_v43 = vpop.f32.mrb[31].mxu0 }
 0x135   : > { %v2109_v45 = vadd.f32 %v2108_v42, %v2107_v39  ;;  %v2021_v46 = vadd.f32 %v2020_v43, %v2019_v41  ;;  %v2704_v47 = vadd.f32 %v2106_v37, %v1077_v18  ;;  %v1101_v39 = vadd.f32 %v2012_v19, %v2682_v38 }
 0x137   : > { %v2706_v48 = vadd.f32 %v2109_v45, %v1080_v23 }
 0x139   : > { %v2110_v49 = vpop.f32.mrb[32].mxu1  ;;  %v2022_v53 = vpop.f32.mrb[32].mxu0 }
 0x13a   : > { %v2111_v54 = vpop.f32.mrb[33].mxu1  ;;  %v2023_v55 = vpop.f32.mrb[33].mxu0 }
 0x13b   : > { %v2112_v57 = vadd.f32 %v2111_v54, %v2110_v49  ;;  %v2113_v58 = vpop.f32.mrb[34].mxu1  ;;  %v2709_v59 = vadd.f32 %v2023_v55, %v2022_v53  ;;  %v2025_v60 = vpop.f32.mrb[34].mxu0  ;;  %v1104_v49 = vadd.f32 %v2015_v26, %v2682_v38 }
 0x13c   : > { %v2114_v0 = vpop.f32.mrb[35].mxu1  ;;  %v2026_v1 = vpop.f32.mrb[35].mxu0 }
 0x13d   : > { %v2115_v2 = vadd.f32 %v2114_v0, %v2113_v58  ;;  %v2027_v63 = vadd.f32 %v2026_v1, %v2025_v60  ;;  %v2712_v3 = vadd.f32 %v2112_v57, %v1085_v30  ;;  %v1109_v0 = vadd.f32 %v2018_v40, %v2682_v38 }
 0x13f   : > { %v2714_v9 = vadd.f32 %v2115_v2, %v1088_v35 }
 0x141   : > { %v2116_v12 = vpop.f32.mrb[36].mxu1  ;;  %v2028_v13 = vpop.f32.mrb[36].mxu0 }
 0x142   : > { %v2117_v14 = vpop.f32.mrb[37].mxu1  ;;  %v2029_v6 = vpop.f32.mrb[37].mxu0 }
 0x143   : > { %v2118_v15 = vadd.f32 %v2117_v14, %v2116_v12  ;;  %v2119_v17 = vpop.f32.mrb[38].mxu1  ;;  %v2717_v20 = vadd.f32 %v2029_v6, %v2028_v13  ;;  %v2031_v21 = vpop.f32.mrb[38].mxu0  ;;  %v1112_v14 = vadd.f32 %v2021_v46, %v2682_v38 }
 0x144   : > { %v2120_v24 = vpop.f32.mrb[39].mxu1  ;;  %v2032_v11 = vpop.f32.mrb[39].mxu0 }
 0x145   : > { %v2121_v25 = vadd.f32 %v2120_v24, %v2119_v17  ;;  %v2720_v31 = vadd.f32 %v2032_v11, %v2031_v21  ;;  %v2722_v32 = vadd.f32 %v2118_v15, %v1093_v44 }
 0x147   : > { %v2724_v33 = vadd.f32 %v2121_v25, %v1096_v50  ;;  %v1117_v25 = vadd.f32 %v2709_v59, %v2682_v38 }
 0x149   : > { %v2122_v36 = vpop.f32.mrb[40].mxu1  ;;  %v2034_v18 = vpop.f32.mrb[40].mxu0 }
 0x14a   : > { %v2123_v37 = vpop.f32.mrb[41].mxu1  ;;  %v2035_v61 = vpop.f32.mrb[41].mxu0 }
 0x14b   : > { %v2124_v41 = vadd.f32 %v2123_v37, %v2122_v36  ;;  %v2125_v42 = vpop.f32.mrb[42].mxu1  ;;  %v2727_v43 = vadd.f32 %v2035_v61, %v2034_v18  ;;  %v2037_v23 = vpop.f32.mrb[42].mxu0  ;;  %v1120_v61 = vadd.f32 %v2027_v63, %v2682_v38 }
 0x14c   : > { %v2126_v45 = vpop.f32.mrb[43].mxu1  ;;  %v2038_v5 = vpop.f32.mrb[43].mxu0 }
 0x14d   : > { %v2127_v53 = vadd.f32 %v2126_v45, %v2125_v42  ;;  %v2730_v54 = vadd.f32 %v2038_v5, %v2037_v23  ;;  %v2732_v55 = vadd.f32 %v2124_v41, %v1101_v39 }
 0x14f   : > { %v2734_v30 = vadd.f32 %v2127_v53, %v1104_v49 }
 0x151   : > { %v2128_v57 = vpop.f32.mrb[44].mxu1  ;;  %v2040_v58 = vpop.f32.mrb[44].mxu0 }
 0x152   : > { %v2129_v60 = vpop.f32.mrb[45].mxu1  ;;  %v2041_v19 = vpop.f32.mrb[45].mxu0 }
 0x153   : > { %v2130_v1 = vadd.f32 %v2129_v60, %v2128_v57  ;;  %v2131_v35 = vpop.f32.mrb[46].mxu1  ;;  %v2737_v2 = vadd.f32 %v2041_v19, %v2040_v58  ;;  %v2043_v12 = vpop.f32.mrb[46].mxu0 }
 0x154   : > { %v2132_v26 = vpop.f32.mrb[47].mxu1  ;;  %v2044_v13 = vpop.f32.mrb[47].mxu0 }
 0x155   : > { %v2133_v6 = vadd.f32 %v2132_v26, %v2131_v35  ;;  %v2740_v44 = vadd.f32 %v2044_v13, %v2043_v12  ;;  %v2742_v15 = vadd.f32 %v2130_v1, %v1109_v0  ;;  %v1125_v35 = vadd.f32 %v2717_v20, %v2682_v38 }
 0x157   : > { %v2744_v17 = vadd.f32 %v2133_v6, %v1112_v14  ;;  %v1128_v6 = vadd.f32 %v2720_v31, %v2682_v38 }
 0x159   : > { %v2134_v21 = vpop.f32.mrb[48].mxu1  ;;  %v2212_v24 = vpop.f32.mrb[48].mxu0 }
 0x15a   : > { %v1383_v40 = vadd.f32 %v2212_v24, %v2692_v7  ;;  %v2135_v11 = vpop.f32.mrb[49].mxu1  ;;  %v1374_v50 = vpop.f32.mrb[49].mxu0 }
 0x15b   : > { %v2136_v36 = vadd.f32 %v2135_v11, %v2134_v21  ;;  %v1375_v46 = vadd.f32 %v1374_v50, %v2686_v51  ;;  %v2137_v18 = vpop.f32.mrb[50].mxu1  ;;  %v2213_v37 = vpop.f32.mrb[50].mxu0 }
 0x15c   : > { %v1503_v39 = vmax.f32 %v1383_v40, 0.0  ;;  %v1386_v41 = vadd.f32 %v2213_v37, %v2694_v8  ;;  %v2138_v42 = vpop.f32.mrb[51].mxu1  ;;  %v1377_v23 = vpop.f32.mrb[51].mxu0 }
 0x15d   : > { %v1501_v7 = vmax.f32 %v1375_v46, 0.0  ;;  %v2139_v51 = vadd.f32 %v2138_v42, %v2137_v18  ;;  %v1378_v59 = vadd.f32 %v1377_v23, %v2688_v52  ;;  %v2759_v45 = vadd.f32 %v2136_v36, %v1117_v25 }
 0x15e   : > { %v1928_v63 = vpack.c.bf16 %v1503_v39, %v1503_v39  ;;  %v1504_v5 = vmax.f32 %v1386_v41, 0.0  ;;  %v1133_v23 = vadd.f32 %v2727_v43, %v2682_v38 }
 0x15f   : > { %v1926_v8 = vpack.c.bf16 %v1501_v7, %v1501_v7  ;;  %v1502_v49 = vmax.f32 %v1378_v59, 0.0  ;;  %v2761_v53 = vadd.f32 %v2139_v51, %v1120_v61 }
 0x160   : > { %1664 = vst.msk [vmem:[%s2756_s21 + $0x8] sm:$0xf] %vm1661_vm1, %v1928_v63  ;;  %v1929_v57 = vpack.c.bf16 %v1504_v5, %v1504_v5  ;;  %v1136_v5 = vadd.f32 %v2730_v54, %v2682_v38 }
 0x161   : > { %1662 = vst.msk [vmem:[%s2756_s21] sm:$0xf] %vm1661_vm1, %v1926_v8  ;;  %v1927_v58 = vpack.c.bf16 %v1502_v49, %v1502_v49  ;;  %v2140_v60 = vpop.f32.mrb[52].mxu1  ;;  %v2216_v19 = vpop.f32.mrb[52].mxu0 }
 0x162   : > { %1665 = vst.msk [vmem:[%s2756_s21 + $0xc] sm:$0xf] %vm1661_vm1, %v1929_v57  ;;  %v1399_v52 = vadd.f32 %v2216_v19, %v2704_v47  ;;  %v2141_v0 = vpop.f32.mrb[53].mxu1  ;;  %v1390_v1 = vpop.f32.mrb[53].mxu0 }
 0x163   : > { %1663 = vst.msk [vmem:[%s2756_s21 + $0x4] sm:$0xf] %vm1661_vm1, %v1927_v58  ;;  %v2142_v12 = vadd.f32 %v2141_v0, %v2140_v60  ;;  %v1391_v26 = vadd.f32 %v1390_v1, %v2698_v27  ;;  %v2143_v13 = vpop.f32.mrb[54].mxu1  ;;  %v2217_v14 = vpop.f32.mrb[54].mxu0 }
 0x164   : > { %v1507_v21 = vmax.f32 %v1399_v52, 0.0  ;;  %v1402_v47 = vadd.f32 %v2217_v14, %v2706_v48  ;;  %v2144_v24 = vpop.f32.mrb[55].mxu1  ;;  %v1393_v40 = vpop.f32.mrb[55].mxu0 }
 0x165   : > { %v1505_v11 = vmax.f32 %v1391_v26, 0.0  ;;  %v2145_v20 = vadd.f32 %v2144_v24, %v2143_v13  ;;  %v1394_v50 = vadd.f32 %v1393_v40, %v2700_v29  ;;  %v2779_v25 = vadd.f32 %v2142_v12, %v1125_v35 }
 0x166   : > { %v1932_v27 = vpack.c.bf16 %v1507_v21, %v1507_v21  ;;  %v1508_v36 = vmax.f32 %v1402_v47, 0.0 }
 0x167   : > { %v1930_v46 = vpack.c.bf16 %v1505_v11, %v1505_v11  ;;  %v1506_v18 = vmax.f32 %v1394_v50, 0.0  ;;  %v2781_v37 = vadd.f32 %v2145_v20, %v1128_v6  ;;  %v1141_v6 = vadd.f32 %v2737_v2, %v2682_v38 }
 0x168   : > { %1668 = vst.msk [vmem:[%s2756_s21 + $0x18] sm:$0xf] %vm1661_vm1, %v1932_v27  ;;  %v1933_v31 = vpack.c.bf16 %v1508_v36, %v1508_v36  ;;  %v1144_v11 = vadd.f32 %v2740_v44, %v2682_v38 }
 0x169   : > { %1666 = vst.msk [vmem:[%s2756_s21 + $0x10] sm:$0xf] %vm1661_vm1, %v1930_v46  ;;  %v1931_v48 = vpack.c.bf16 %v1506_v18, %v1506_v18  ;;  %v2146_v61 = vpop.f32.mrb[56].mxu1  ;;  %v2220_v39 = vpop.f32.mrb[56].mxu0 }
 0x16a   : > { %1669 = vst.msk [vmem:[%s2756_s21 + $0x1c] sm:$0xf] %vm1661_vm1, %v1933_v31  ;;  %v1415_v29 = vadd.f32 %v2220_v39, %v2722_v32  ;;  %v2147_v41 = vpop.f32.mrb[57].mxu1  ;;  %v1406_v42 = vpop.f32.mrb[57].mxu0 }
 0x16b   : > { %1667 = vst.msk [vmem:[%s2756_s21 + $0x14] sm:$0xf] %vm1661_vm1, %v1931_v48  ;;  %v2148_v7 = vadd.f32 %v2147_v41, %v2146_v61  ;;  %v1407_v51 = vadd.f32 %v1406_v42, %v2712_v3  ;;  %v2149_v59 = vpop.f32.mrb[58].mxu1  ;;  %v2221_v63 = vpop.f32.mrb[58].mxu0 }
 0x16c   : > { %v1511_v8 = vmax.f32 %v1415_v29, 0.0  ;;  %v1418_v32 = vadd.f32 %v2221_v63, %v2724_v33  ;;  %v2150_v49 = vpop.f32.mrb[59].mxu1  ;;  %v1409_v57 = vpop.f32.mrb[59].mxu0 }
 0x16d   : > { %v1509_v58 = vmax.f32 %v1407_v51, 0.0  ;;  %v2151_v43 = vadd.f32 %v2150_v49, %v2149_v59  ;;  %v1410_v60 = vadd.f32 %v1409_v57, %v2714_v9  ;;  %v2799_v19 = vadd.f32 %v2148_v7, %v1133_v23 }
 0x16e   : > { %v1936_v3 = vpack.c.bf16 %v1511_v8, %v1511_v8  ;;  %v1512_v52 = vmax.f32 %v1418_v32, 0.0  ;;  %v1149_v7 = vadd.f32 %v2663_v56, %v2682_v38  ;;  %v1152_v8 = vadd.f32 %v2665_v62, %v2682_v38 }
 0x16f   : > { %v1934_v0 = vpack.c.bf16 %v1509_v58, %v1509_v58  ;;  %v1510_v1 = vmax.f32 %v1410_v60, 0.0  ;;  %v2801_v35 = vadd.f32 %v2151_v43, %v1136_v5 }
 0x170   : > { %1672 = vst.msk [vmem:[%s2756_s21 + $0x28] sm:$0xf] %vm1661_vm1, %v1936_v3  ;;  %v1937_v54 = vpack.c.bf16 %v1512_v52, %v1512_v52 }
 0x171   : > { %1670 = vst.msk [vmem:[%s2756_s21 + $0x20] sm:$0xf] %vm1661_vm1, %v1934_v0  ;;  %v1935_v33 = vpack.c.bf16 %v1510_v1, %v1510_v1  ;;  %v2152_v12 = vpop.f32.mrb[60].mxu1  ;;  %v2224_v26 = vpop.f32.mrb[60].mxu0 }
 0x172   : > { %1673 = vst.msk [vmem:[%s2756_s21 + $0x2c] sm:$0xf] %vm1661_vm1, %v1937_v54  ;;  %v1431_v9 = vadd.f32 %v2224_v26, %v2742_v15  ;;  %v2153_v13 = vpop.f32.mrb[61].mxu1  ;;  %v1422_v14 = vpop.f32.mrb[61].mxu0 }
 0x173   : > { %1671 = vst.msk [vmem:[%s2756_s21 + $0x24] sm:$0xf] %vm1661_vm1, %v1935_v33  ;;  %v2154_v21 = vadd.f32 %v2153_v13, %v2152_v12  ;;  %v1423_v47 = vadd.f32 %v1422_v14, %v2732_v55  ;;  %v2155_v24 = vpop.f32.mrb[62].mxu1  ;;  %v2225_v40 = vpop.f32.mrb[62].mxu0 }
 0x174   : > { %v1515_v20 = vmax.f32 %v1431_v9, 0.0  ;;  %v1434_v15 = vadd.f32 %v2225_v40, %v2744_v17  ;;  %v2156_v50 = vpop.f32.mrb[63].mxu1  ;;  %v1425_v27 = vpop.f32.mrb[63].mxu0  ;;  %v1157_v9 = vadd.f32 %v2667_v4, %v2682_v38 }
 0x175   : > { %v1513_v36 = vmax.f32 %v1423_v47, 0.0  ;;  %v2157_v2 = vadd.f32 %v2156_v50, %v2155_v24  ;;  %v1426_v46 = vadd.f32 %v1425_v27, %v2734_v30  ;;  %v1302_v18 = vadd.f32 %v2154_v21, %v1141_v6 }
 0x176   : > { %v1940_v31 = vpack.c.bf16 %v1515_v20, %v1515_v20  ;;  %v1516_v55 = vmax.f32 %v1434_v15, 0.0  ;;  %v1160_v47 = vadd.f32 %v2669_v10, %v2682_v38 }
 0x177   : > { %v1938_v48 = vpack.c.bf16 %v1513_v36, %v1513_v36  ;;  %v1514_v61 = vmax.f32 %v1426_v46, 0.0  ;;  %v1305_v39 = vadd.f32 %v2157_v2, %v1144_v11 }
 0x178   : > { %1676 = vst.msk [vmem:[%s2756_s21 + $0x38] sm:$0xf] %vm1661_vm1, %v1940_v31  ;;  %v1941_v44 = vpack.c.bf16 %v1516_v55, %v1516_v55 }
 0x179   : > { %1674 = vst.msk [vmem:[%s2756_s21 + $0x30] sm:$0xf] %vm1661_vm1, %v1938_v48  ;;  %v1939_v17 = vpack.c.bf16 %v1514_v61, %v1514_v61  ;;  %v2158_v29 = vpop.f32.mrb[64].mxu1  ;;  %v2228_v41 = vpop.f32.mrb[64].mxu0 }
 0x17a   : > { %1677 = vst.msk [vmem:[%s2756_s21 + $0x3c] sm:$0xf] %vm1661_vm1, %v1941_v44  ;;  %v1447_v42 = vadd.f32 %v2228_v41, %v2779_v25  ;;  %v2159_v30 = vpop.f32.mrb[65].mxu1  ;;  %v1438_v23 = vpop.f32.mrb[65].mxu0  ;;  %v1165_v44 = vadd.f32 %v2671_v16, %v2682_v38 }
 0x17b   : > { %1675 = vst.msk [vmem:[%s2756_s21 + $0x34] sm:$0xf] %vm1661_vm1, %v1939_v17  ;;  %v2160_v51 = vadd.f32 %v2159_v30, %v2158_v29  ;;  %v1439_v59 = vadd.f32 %v1438_v23, %v2759_v45  ;;  %v2161_v63 = vpop.f32.mrb[66].mxu1  ;;  %v2229_v5 = vpop.f32.mrb[66].mxu0  ;;  %v1168_v30 = vadd.f32 %v2673_v22, %v2682_v38 }
 0x17c   : > { %v1519_v32 = vmax.f32 %v1447_v42, 0.0  ;;  %v1450_v25 = vadd.f32 %v2229_v5, %v2781_v37  ;;  %v2162_v49 = vpop.f32.mrb[67].mxu1  ;;  %v1441_v57 = vpop.f32.mrb[67].mxu0 }
 0x17d   : > { %v1517_v58 = vmax.f32 %v1439_v59, 0.0  ;;  %v2163_v56 = vadd.f32 %v2162_v49, %v2161_v63  ;;  %v1442_v43 = vadd.f32 %v1441_v57, %v2761_v53  ;;  %v1310_v60 = vadd.f32 %v2160_v51, %v1149_v7 }
 0x17e   : > { %v1944_v3 = vpack.c.bf16 %v1519_v32, %v1519_v32  ;;  %v1520_v45 = vmax.f32 %v1450_v25, 0.0 }
 0x17f   : > { %v1942_v52 = vpack.c.bf16 %v1517_v58, %v1517_v58  ;;  %v1518_v0 = vmax.f32 %v1442_v43, 0.0  ;;  %v1313_v1 = vadd.f32 %v2163_v56, %v1152_v8 }
 0x180   : > { %1680 = vst.msk [vmem:[%s2756_s21 + $0x48] sm:$0xf] %vm1661_vm1, %v1944_v3  ;;  %v1945_v62 = vpack.c.bf16 %v1520_v45, %v1520_v45 }
 0x181   : > { %1678 = vst.msk [vmem:[%s2756_s21 + $0x40] sm:$0xf] %vm1661_vm1, %v1942_v52  ;;  %v1943_v37 = vpack.c.bf16 %v1518_v0, %v1518_v0  ;;  %v2164_v54 = vpop.f32.mrb[68].mxu1  ;;  %v2232_v33 = vpop.f32.mrb[68].mxu0  ;;  %v1173_v52 = vadd.f32 %v2675_v28, %v2682_v38 }
 0x182   : > { %1681 = vst.msk [vmem:[%s2756_s21 + $0x4c] sm:$0xf] %vm1661_vm1, %v1945_v62  ;;  %v1463_v12 = vadd.f32 %v2232_v33, %v1302_v18  ;;  %v2165_v26 = vpop.f32.mrb[69].mxu1  ;;  %v1454_v53 = vpop.f32.mrb[69].mxu0 }
 0x183   : > { %1679 = vst.msk [vmem:[%s2756_s21 + $0x44] sm:$0xf] %vm1661_vm1, %v1943_v37  ;;  %v2166_v13 = vadd.f32 %v2165_v26, %v2164_v54  ;;  %v1455_v14 = vadd.f32 %v1454_v53, %v2799_v19  ;;  %v2167_v6 = vpop.f32.mrb[70].mxu1  ;;  %v2233_v21 = vpop.f32.mrb[70].mxu0  ;;  %v1176_v54 = vadd.f32 %v2677_v34, %v2682_v38 }
 0x184   : > { %v1523_v24 = vmax.f32 %v1463_v12, 0.0  ;;  %v1466_v40 = vadd.f32 %v2233_v21, %v1305_v39  ;;  %v2168_v11 = vpop.f32.mrb[71].mxu1  ;;  %v1457_v20 = vpop.f32.mrb[71].mxu0 }
 0x185   : > { %v1521_v15 = vmax.f32 %v1455_v14, 0.0  ;;  %v2169_v50 = vadd.f32 %v2168_v11, %v2167_v6  ;;  %v1458_v4 = vadd.f32 %v1457_v20, %v2801_v35  ;;  %v1318_v27 = vadd.f32 %v2166_v13, %v1157_v9 }
 0x186   : > { %v1948_v36 = vpack.c.bf16 %v1523_v24, %v1523_v24  ;;  %v1524_v19 = vmax.f32 %v1466_v40, 0.0 }
 0x187   : > { %v1946_v2 = vpack.c.bf16 %v1521_v15, %v1521_v15  ;;  %v1522_v46 = vmax.f32 %v1458_v4, 0.0  ;;  %v1321_v18 = vadd.f32 %v2169_v50, %v1160_v47 }
 0x188   : > { %1684 = vst.msk [vmem:[%s2756_s21 + $0x58] sm:$0xf] %vm1661_vm1, %v1948_v36  ;;  %v1949_v10 = vpack.c.bf16 %v1524_v19, %v1524_v19 }
 0x189   : > { %1682 = vst.msk [vmem:[%s2756_s21 + $0x50] sm:$0xf] %vm1661_vm1, %v1946_v2  ;;  %v1947_v31 = vpack.c.bf16 %v1522_v46, %v1522_v46  ;;  %v2170_v55 = vpop.f32.mrb[72].mxu1  ;;  %v2236_v48 = vpop.f32.mrb[72].mxu0 }
 0x18a   : > { %1685 = vst.msk [vmem:[%s2756_s21 + $0x5c] sm:$0xf] %vm1661_vm1, %v1949_v10  ;;  %v1479_v61 = vadd.f32 %v2236_v48, %v1318_v27  ;;  %v2171_v39 = vpop.f32.mrb[73].mxu1  ;;  %v1470_v35 = vpop.f32.mrb[73].mxu0 }
 0x18b   : > { %1683 = vst.msk [vmem:[%s2756_s21 + $0x54] sm:$0xf] %vm1661_vm1, %v1947_v31  ;;  %v2172_v17 = vadd.f32 %v2171_v39, %v2170_v55  ;;  %v1471_v29 = vadd.f32 %v1470_v35, %v1310_v60  ;;  %v2173_v41 = vpop.f32.mrb[74].mxu1  ;;  %v2237_v42 = vpop.f32.mrb[74].mxu0 }
 0x18c   : > { %v1527_v23 = vmax.f32 %v1479_v61, 0.0  ;;  %v1482_v7 = vadd.f32 %v2237_v42, %v1321_v18  ;;  %v2174_v51 = vpop.f32.mrb[75].mxu1  ;;  %v1473_v59 = vpop.f32.mrb[75].mxu0 }
 0x18d   : > { %v1525_v63 = vmax.f32 %v1471_v29, 0.0  ;;  %v2175_v5 = vadd.f32 %v2174_v51, %v2173_v41  ;;  %v1474_v8 = vadd.f32 %v1473_v59, %v1313_v1  ;;  %v1326_v16 = vadd.f32 %v2172_v17, %v1165_v44 }
 0x18e   : > { %v1952_v32 = vpack.c.bf16 %v1527_v23, %v1527_v23  ;;  %v1528_v25 = vmax.f32 %v1482_v7, 0.0 }
 0x18f   : > { %v1950_v49 = vpack.c.bf16 %v1525_v63, %v1525_v63  ;;  %v1526_v57 = vmax.f32 %v1474_v8, 0.0  ;;  %v1329_v58 = vadd.f32 %v2175_v5, %v1168_v30 }
 0x190   : > { %1688 = vst.msk [vmem:[%s2756_s21 + $0x68] sm:$0xf] %vm1661_vm1, %v1952_v32  ;;  %v1953_v56 = vpack.c.bf16 %v1528_v25, %v1528_v25 }
 0x191   : > { %1686 = vst.msk [vmem:[%s2756_s21 + $0x60] sm:$0xf] %vm1661_vm1, %v1950_v49  ;;  %v1951_v22 = vpack.c.bf16 %v1526_v57, %v1526_v57  ;;  %v2176_v43 = vpop.f32.mrb[76].mxu1  ;;  %v2240_v60 = vpop.f32.mrb[76].mxu0 }
 0x192   : > { %1689 = vst.msk [vmem:[%s2756_s21 + $0x6c] sm:$0xf] %vm1661_vm1, %v1953_v56  ;;  %v2177_v3 = vpop.f32.mrb[77].mxu1  ;;  %v1486_v45 = vpop.f32.mrb[77].mxu0 }
 0x193   : > { %1687 = vst.msk [vmem:[%s2756_s21 + $0x64] sm:$0xf] %vm1661_vm1, %v1951_v22  ;;  %v2178_v0 = vadd.f32 %v2177_v3, %v2176_v43  ;;  %v1487_v1 = vadd.f32 %v1486_v45, %v1326_v16  ;;  %v2179_v62 = vpop.f32.mrb[78].mxu1  ;;  %v2241_v37 = vpop.f32.mrb[78].mxu0 }
 0x194   : > { %v2180_v33 = vpop.f32.mrb[79].mxu1  ;;  %v1489_v12 = vpop.f32.mrb[79].mxu0 }
 0x195   : > { %v1334_v26 = vadd.f32 %v2178_v0, %v1173_v52  ;;  %v1529_v53 = vmax.f32 %v1487_v1, 0.0  ;;  %v2181_v9 = vadd.f32 %v2180_v33, %v2179_v62  ;;  %v1490_v13 = vadd.f32 %v1489_v12, %v1329_v58 }
 0x197   : > { %v1495_v28 = vadd.f32 %v2240_v60, %v1334_v26  ;;  %v1954_v14 = vpack.c.bf16 %v1529_v53, %v1529_v53  ;;  %v1337_v6 = vadd.f32 %v2181_v9, %v1176_v54  ;;  %v1530_v21 = vmax.f32 %v1490_v13, 0.0 }
 0x199   : > { %v1531_v47 = vmax.f32 %v1495_v28, 0.0  ;;  %1690 = vst.msk [vmem:[%s2756_s21 + $0x70] sm:$0xf] %vm1661_vm1, %v1954_v14  ;;  %v1498_v24 = vadd.f32 %v2241_v37, %v1337_v6  ;;  %v1955_v40 = vpack.c.bf16 %v1530_v21, %v1530_v21 }
 0x19b   : > { %v1956_v11 = vpack.c.bf16 %v1531_v47, %v1531_v47  ;;  %v1532_v34 = vmax.f32 %v1498_v24, 0.0  ;;  %1691 = vst.msk [vmem:[%s2756_s21 + $0x74] sm:$0xf] %vm1661_vm1, %v1955_v40 }
 0x19d   : > { %1692 = vst.msk [vmem:[%s2756_s21 + $0x78] sm:$0xf] %vm1661_vm1, %v1956_v11  ;;  %v1957_v38 = vpack.c.bf16 %v1532_v34, %v1532_v34 }
 0x19f   : > { %1693 = vst.msk [vmem:[%s2756_s21 + $0x7c] sm:$0xf] %vm1661_vm1, %v1957_v38 }
 0x1a0 PF: > { %s13_s12 = sadd.s32 1, %s2421_s12  }
 0x1a1   : > { %p10_p4 = scmp.ge.s32.totalorder %s13_s12, 4  }
 0x1a3   :  { %12 = sbr.rel (!%p10_p4) target bundleno = 1 (0x1), region = 62 }

// kernel: quizdnn_forward.14
= control target key start
LH: loop header
LB: loop body
LE: loop exit
PB: predicated region body
PF: predicated region fallthrough
CT: control target
= control target key end

     0   :  { %vm665_vm0 = vcmask 523264   ;;  %s2076_s1 = inlined_call_operand.vmem [shape: bf16[576,256], index: 1, kind: input, shape index: {}]   ;;  %s2077_s0 = inlined_call_operand.vmem [shape: bf16[104,576], index: 0, kind: input, shape index: {}]   ;;  %s2078_s2 = inlined_call_operand.vmem [shape: f32[1,256], index: 2, kind: input, shape index: {}]   ;;  %s2079_s3 = inlined_call_operand.vmem [shape: bf16[104,256], index: 3, kind: output, shape index: {}]  }
   0x1   :  { %v1366_v0 = vld [vmem:[%s2076_s1 + $0x4] ss:$8 sps:$4 sm:$0xff]   ;;  %v1370_v2 = vld [vmem:[%s2076_s1] ss:$8 sps:$4 sm:$0xff]   ;;  %v1372_v4 = vld [vmem:[%s2076_s1 + $0x14] ss:$8 sps:$4 sm:$0xff]  }
   0x2   :  { %v1548_v1 = vld [vmem:[%s2076_s1 + $0x104] ss:$8 sps:$4 sm:$0xff]   ;;  %687 = vmatprep.subr.bf16.mxu1 %v1366_v0  ;;  %v1556_v3 = vld [vmem:[%s2076_s1 + $0x100] ss:$8 sps:$4 sm:$0xff]   ;;  %v1566_v5 = vld [vmem:[%s2076_s1 + $0x114] ss:$8 sps:$4 sm:$0xff]  }
   0x3   :  { %788 = vmatprep.subr.bf16.mxu0 %v1548_v1  ;;  %688 = vmatpush1.bf16.msra.mxu1 %v1370_v2  ;;  %v1376_v6 = vld [vmem:[%s2076_s1 + $0x10] ss:$8 sps:$4 sm:$0xff]   ;;  %v1378_v8 = vld [vmem:[%s2076_s1 + $0x24] ss:$8 sps:$4 sm:$0xff]   ;;  %v1382_v10 = vld [vmem:[%s2076_s1 + $0x20] ss:$8 sps:$4 sm:$0xff]  }
   0x4   :  { %789 = vmatpush1.bf16.msra.mxu0 %v1556_v3  ;;  %689 = vmatprep.subr.bf16.mxu1 %v1372_v4  ;;  %v1574_v7 = vld [vmem:[%s2076_s1 + $0x110] ss:$8 sps:$4 sm:$0xff]   ;;  %v1583_v9 = vld [vmem:[%s2076_s1 + $0x124] ss:$8 sps:$4 sm:$0xff]   ;;  %v1591_v11 = vld [vmem:[%s2076_s1 + $0x120] ss:$8 sps:$4 sm:$0xff]  }
   0x5   :  { %790 = vmatprep.subr.bf16.mxu0 %v1566_v5  ;;  %v1384_v12 = vld [vmem:[%s2076_s1 + $0x34] ss:$8 sps:$4 sm:$0xff]   ;;  %v1388_v14 = vld [vmem:[%s2076_s1 + $0x30] ss:$8 sps:$4 sm:$0xff]   ;;  %v1390_v16 = vld [vmem:[%s2076_s1 + $0x44] ss:$8 sps:$4 sm:$0xff]  }
   0x6   :  { %v1601_v13 = vld [vmem:[%s2076_s1 + $0x134] ss:$8 sps:$4 sm:$0xff]   ;;  %v1610_v15 = vld [vmem:[%s2076_s1 + $0x130] ss:$8 sps:$4 sm:$0xff]   ;;  %v1619_v17 = vld [vmem:[%s2076_s1 + $0x144] ss:$8 sps:$4 sm:$0xff]  }
   0x7   :  { %690 = vmatpush1.bf16.msra.mxu1 %v1376_v6  ;;  %v1394_v18 = vld [vmem:[%s2076_s1 + $0x40] ss:$8 sps:$4 sm:$0xff]   ;;  %v1396_v20 = vld [vmem:[%s2076_s1 + $0x54] ss:$8 sps:$4 sm:$0xff]   ;;  %v1400_v22 = vld [vmem:[%s2076_s1 + $0x50] ss:$8 sps:$4 sm:$0xff]  }
   0x8   :  { %791 = vmatpush1.bf16.msra.mxu0 %v1574_v7  ;;  %691 = vmatprep.subr.bf16.mxu1 %v1378_v8  ;;  %v1627_v19 = vld [vmem:[%s2076_s1 + $0x140] ss:$8 sps:$4 sm:$0xff]   ;;  %v1637_v21 = vld [vmem:[%s2076_s1 + $0x154] ss:$8 sps:$4 sm:$0xff]   ;;  %v1646_v23 = vld [vmem:[%s2076_s1 + $0x150] ss:$8 sps:$4 sm:$0xff]  }
   0x9   :  { %792 = vmatprep.subr.bf16.mxu0 %v1583_v9  ;;  %v1402_v24 = vld [vmem:[%s2076_s1 + $0x64] ss:$8 sps:$4 sm:$0xff]   ;;  %v1406_v26 = vld [vmem:[%s2076_s1 + $0x60] ss:$8 sps:$4 sm:$0xff]   ;;  %v1408_v28 = vld [vmem:[%s2076_s1 + $0x74] ss:$8 sps:$4 sm:$0xff]  }
   0xa   :  { %v1655_v25 = vld [vmem:[%s2076_s1 + $0x164] ss:$8 sps:$4 sm:$0xff]   ;;  %v1663_v27 = vld [vmem:[%s2076_s1 + $0x160] ss:$8 sps:$4 sm:$0xff]   ;;  %v1673_v29 = vld [vmem:[%s2076_s1 + $0x174] ss:$8 sps:$4 sm:$0xff]  }
   0xb   :  { %692 = vmatpush1.bf16.msra.mxu1 %v1382_v10  ;;  %v1412_v30 = vld [vmem:[%s2076_s1 + $0x70] ss:$8 sps:$4 sm:$0xff]   ;;  %v1414_v32 = vld [vmem:[%s2076_s1 + $0x84] ss:$8 sps:$4 sm:$0xff]   ;;  %v1418_v34 = vld [vmem:[%s2076_s1 + $0x80] ss:$8 sps:$4 sm:$0xff]  }
   0xc   :  { %793 = vmatpush1.bf16.msra.mxu0 %v1591_v11  ;;  %693 = vmatprep.subr.bf16.mxu1 %v1384_v12  ;;  %v1682_v31 = vld [vmem:[%s2076_s1 + $0x170] ss:$8 sps:$4 sm:$0xff]   ;;  %v1691_v33 = vld [vmem:[%s2076_s1 + $0x184] ss:$8 sps:$4 sm:$0xff]   ;;  %v1699_v35 = vld [vmem:[%s2076_s1 + $0x180] ss:$8 sps:$4 sm:$0xff]  }
   0xd   :  { %794 = vmatprep.subr.bf16.mxu0 %v1601_v13  ;;  %v1420_v36 = vld [vmem:[%s2076_s1 + $0x94] ss:$8 sps:$4 sm:$0xff]   ;;  %v1424_v38 = vld [vmem:[%s2076_s1 + $0x90] ss:$8 sps:$4 sm:$0xff]   ;;  %v1426_v40 = vld [vmem:[%s2076_s1 + $0xa4] ss:$8 sps:$4 sm:$0xff]  }
   0xe   :  { %v1709_v37 = vld [vmem:[%s2076_s1 + $0x194] ss:$8 sps:$4 sm:$0xff]   ;;  %v1718_v39 = vld [vmem:[%s2076_s1 + $0x190] ss:$8 sps:$4 sm:$0xff]   ;;  %v1727_v41 = vld [vmem:[%s2076_s1 + $0x1a4] ss:$8 sps:$4 sm:$0xff]  }
   0xf   :  { %694 = vmatpush1.bf16.msra.mxu1 %v1388_v14  ;;  %v1430_v42 = vld [vmem:[%s2076_s1 + $0xa0] ss:$8 sps:$4 sm:$0xff]   ;;  %v1432_v44 = vld [vmem:[%s2076_s1 + $0xb4] ss:$8 sps:$4 sm:$0xff]   ;;  %v1436_v46 = vld [vmem:[%s2076_s1 + $0xb0] ss:$8 sps:$4 sm:$0xff]  }
  0x10   :  { %795 = vmatpush1.bf16.msra.mxu0 %v1610_v15  ;;  %695 = vmatprep.subr.bf16.mxu1 %v1390_v16  ;;  %v1735_v43 = vld [vmem:[%s2076_s1 + $0x1a0] ss:$8 sps:$4 sm:$0xff]   ;;  %v1745_v45 = vld [vmem:[%s2076_s1 + $0x1b4] ss:$8 sps:$4 sm:$0xff]   ;;  %v1753_v47 = vld [vmem:[%s2076_s1 + $0x1b0] ss:$8 sps:$4 sm:$0xff]  }
  0x11   :  { %796 = vmatprep.subr.bf16.mxu0 %v1619_v17  ;;  %v1438_v48 = vld [vmem:[%s2076_s1 + $0xc4] ss:$8 sps:$4 sm:$0xff]   ;;  %v1442_v52 = vld [vmem:[%s2076_s1 + $0xc0] ss:$8 sps:$4 sm:$0xff]   ;;  %v1444_v54 = vld [vmem:[%s2076_s1 + $0xd4] ss:$8 sps:$4 sm:$0xff]  }
  0x12   :  { %v1464_v49 = vld [vmem:[%s2077_s0 + $0x4] ss:$20 sps:$4 sm:$0xff]   ;;  %v1467_v51 = vld [vmem:[%s2077_s0 + $0xc] ss:$20 sps:$4 sm:$0xff]   ;;  %v1787_v55 = vld [vmem:[%s2076_s1 + $0x1d4] ss:$8 sps:$4 sm:$0xff]  }
  0x13   :  { %696 = vmatpush1.bf16.msra.mxu1 %v1394_v18  ;;  %v1765_v50 = vld [vmem:[%s2076_s1 + $0x1c4] ss:$8 sps:$4 sm:$0xff]   ;;  %719 = vmatprep.mubr.bf16.mxu1 %v1464_v49  ;;  %v1777_v53 = vld [vmem:[%s2076_s1 + $0x1c0] ss:$8 sps:$4 sm:$0xff]   ;;  %v1448_v56 = vld [vmem:[%s2076_s1 + $0xd0] ss:$8 sps:$4 sm:$0xff]  }
  0x14   :  { %797 = vmatpush1.bf16.msra.mxu0 %v1627_v19  ;;  %697 = vmatprep.subr.bf16.mxu1 %v1396_v20  ;;  %v1795_v57 = vld [vmem:[%s2076_s1 + $0x1d0] ss:$8 sps:$4 sm:$0xff]   ;;  %v1450_v58 = vld [vmem:[%s2076_s1 + $0xe4] ss:$8 sps:$4 sm:$0xff]   ;;  %v1454_v60 = vld [vmem:[%s2076_s1 + $0xe0] ss:$8 sps:$4 sm:$0xff]  }
  0x15   :  { %798 = vmatprep.subr.bf16.mxu0 %v1637_v21  ;;  %820 = vmatprep.mubr.bf16.mxu0 %v1467_v51  ;;  %v1805_v59 = vld [vmem:[%s2076_s1 + $0x1e4] ss:$8 sps:$4 sm:$0xff]   ;;  %v1813_v61 = vld [vmem:[%s2076_s1 + $0x1e0] ss:$8 sps:$4 sm:$0xff]   ;;  %v1456_v62 = vld [vmem:[%s2076_s1 + $0xf4] ss:$8 sps:$4 sm:$0xff]  }
  0x16   :  { %v1823_v63 = vld [vmem:[%s2076_s1 + $0x1f4] ss:$8 sps:$4 sm:$0xff]   ;;  %v1460_v0 = vld [vmem:[%s2076_s1 + $0xf0] ss:$8 sps:$4 sm:$0xff]   ;;  %v1470_v4 = vld [vmem:[%s2076_s1 + $0x204] ss:$8 sps:$4 sm:$0xff]  }
  0x17   :  { %698 = vmatpush1.bf16.msra.mxu1 %v1400_v22  ;;  %v1832_v2 = vld [vmem:[%s2076_s1 + $0x1f0] ss:$8 sps:$4 sm:$0xff]   ;;  %v1462_v6 = vld [vmem:[%s2077_s0] ss:$20 sps:$4 sm:$0xff]   ;;  %v1465_v8 = vld [vmem:[%s2077_s0 + $0x8] ss:$20 sps:$4 sm:$0xff]  }
  0x18   :  { %799 = vmatpush1.bf16.msra.mxu0 %v1646_v23  ;;  %699 = vmatprep.subr.bf16.mxu1 %v1402_v24  ;;  %v1468_v10 = vld [vmem:[%s2076_s1 + $0x200] ss:$8 sps:$4 sm:$0xff]   ;;  %v1476_v14 = vld [vmem:[%s2076_s1 + $0x214] ss:$8 sps:$4 sm:$0xff]   ;;  %v1485_v18 = vld [vmem:[%s2076_s1 + $0x224] ss:$8 sps:$4 sm:$0xff]  }
  0x19   :  { %800 = vmatprep.subr.bf16.mxu0 %v1655_v25  ;;  %v1471_v12 = vld [vmem:[%s2077_s0 + $0x34] ss:$20 sps:$4 sm:$0xff]   ;;  %v1477_v16 = vld [vmem:[%s2077_s0 + $0x2c] ss:$20 sps:$4 sm:$0xff]   ;;  %v1473_v20 = vld [vmem:[%s2077_s0 + $0x30] ss:$20 sps:$4 sm:$0xff]  }
  0x1a   :  { %v1483_v22 = vld [vmem:[%s2076_s1 + $0x220] ss:$8 sps:$4 sm:$0xff]  }
  0x1b   :  { %700 = vmatpush1.bf16.msra.mxu1 %v1406_v26  ;;  %v1486_v24 = vld [vmem:[%s2077_s0 + $0x54] ss:$20 sps:$4 sm:$0xff]   ;;  %v1482_v26 = vld [vmem:[%s2077_s0 + $0x58] ss:$20 sps:$4 sm:$0xff]  }
  0x1c   :  { %801 = vmatpush1.bf16.msra.mxu0 %v1663_v27  ;;  %701 = vmatprep.subr.bf16.mxu1 %v1408_v28  ;;  %v1488_v28 = vld [vmem:[%s2077_s0 + $0x50] ss:$20 sps:$4 sm:$0xff]  }
  0x1d   :  { %802 = vmatprep.subr.bf16.mxu0 %v1673_v29 }
  0x1f   :  { %702 = vmatpush1.bf16.msra.mxu1 %v1412_v30  ;;  %v1498_v30 = vld [vmem:[%s2077_s0 + $0x10] ss:$20 sps:$4 sm:$0xff]  }
  0x20   :  { %803 = vmatpush1.bf16.msra.mxu0 %v1682_v31  ;;  %703 = vmatprep.subr.bf16.mxu1 %v1414_v32 }
  0x21   :  { %804 = vmatprep.subr.bf16.mxu0 %v1691_v33 }
  0x23   :  { %704 = vmatpush1.bf16.msra.mxu1 %v1418_v34 }
  0x24   :  { %805 = vmatpush1.bf16.msra.mxu0 %v1699_v35  ;;  %705 = vmatprep.subr.bf16.mxu1 %v1420_v36  ;;  %v1509_v36 = vld [vmem:[%s2077_s0 + $0x88] ss:$20 sps:$4 sm:$0xff]  }
  0x25   :  { %806 = vmatprep.subr.bf16.mxu0 %v1709_v37 }
  0x27   :  { %706 = vmatpush1.bf16.msra.mxu1 %v1424_v38  ;;  %v1513_v38 = vld [vmem:[%s2077_s0 + $0xb0] ss:$20 sps:$4 sm:$0xff]  }
  0x28   :  { %807 = vmatpush1.bf16.msra.mxu0 %v1718_v39  ;;  %707 = vmatprep.subr.bf16.mxu1 %v1426_v40  ;;  %v52_v40 = vld [vmem:[%s2077_s0 + $0xf8] sm:$0xff] }
  0x29   :  { %808 = vmatprep.subr.bf16.mxu0 %v1727_v41 }
  0x2b   :  { %708 = vmatpush1.bf16.msra.mxu1 %v1430_v42  ;;  %v1517_v42 = vld [vmem:[%s2077_s0 + $0xd8] ss:$20 sps:$4 sm:$0xff]  }
  0x2c   :  { %809 = vmatpush1.bf16.msra.mxu0 %v1735_v43  ;;  %709 = vmatprep.subr.bf16.mxu1 %v1432_v44  ;;  %v1145_v44 = vcombine.low %v52_v40, %v52_v40 }
  0x2d   :  { %810 = vmatprep.subr.bf16.mxu0 %v1745_v45 }
  0x2f   :  { %710 = vmatpush1.bf16.msra.mxu1 %v1436_v46 }
  0x30   :  { %811 = vmatpush1.bf16.msra.mxu0 %v1753_v47  ;;  %711 = vmatprep.subr.bf16.mxu1 %v1438_v48 }
  0x31   :  { %812 = vmatprep.subr.bf16.mxu0 %v1765_v50 }
  0x33   :  { %712 = vmatpush1.bf16.msra.mxu1 %v1442_v52 }
  0x34   :  { %813 = vmatpush1.bf16.msra.mxu0 %v1777_v53  ;;  %713 = vmatprep.subr.bf16.mxu1 %v1444_v54  ;;  %v128_v54 = vlaneseq }
  0x35   :  { %814 = vmatprep.subr.bf16.mxu0 %v1787_v55 }
  0x37   :  { %714 = vmatpush1.bf16.msra.mxu1 %v1448_v56 }
  0x38   :  { %815 = vmatpush1.bf16.msra.mxu0 %v1795_v57  ;;  %715 = vmatprep.subr.bf16.mxu1 %v1450_v58  ;;  %v129_v58 = vshrl.u32 %v128_v54, 7 }
  0x39   :  { %816 = vmatprep.subr.bf16.mxu0 %v1805_v59 }
  0x3b   :  { %716 = vmatpush1.bf16.msra.mxu1 %v1454_v60  ;;  %v130_v60 = vsub.s32 0, %v129_v58 }
  0x3c   :  { %817 = vmatpush1.bf16.msra.mxu0 %v1813_v61  ;;  %717 = vmatprep.subr.bf16.mxu1 %v1456_v62  ;;  %v134_v62 = vsub.s32 1, %v129_v58 }
  0x3d   :  { %818 = vmatprep.subr.bf16.mxu0 %v1823_v63 }
  0x3f   :  { %718 = vmatpush1.bf16.msra.mxu1 %v1460_v0 }
  0x40   :  { %819 = vmatpush1.bf16.msra.mxu0 %v1832_v2  ;;  %1253 = vmatprep.subr.bf16.mxu1 %v1548_v1  ;;  %v1474_v1 = vld [vmem:[%s2076_s1 + $0x210] ss:$8 sps:$4 sm:$0xff]  }
  0x41   :  { %889 = vmatprep.subr.bf16.mxu0 %v1470_v4 }
  0x42   :  { %720 = vmatmul.mubr.bf16.vlgmr.msra.gmra.mrb[0].mxu1 %v1462_v6 }
  0x43   :  { %821 = vmatmul.mubr.bf16.vlgmr.msra.gmra.mrb[0].mxu0 %v1465_v8  ;;  %1269 = vmatpush1.bf16.msra.mxu1 %v1556_v3  ;;  %v1479_v3 = vld [vmem:[%s2077_s0 + $0x28] ss:$20 sps:$4 sm:$0xff]  }
  0x44   :  { %890 = vmatpush1.bf16.msra.mxu0 %v1468_v10  ;;  %1254 = vmatprep.subr.bf16.mxu1 %v1566_v5  ;;  %v1480_v5 = vld [vmem:[%s2077_s0 + $0x5c] ss:$20 sps:$4 sm:$0xff]  }
  0x45   :  { %830 = vmatprep.mubr.bf16.mxu0 %v1471_v12  ;;  %891 = vmatprep.subr.bf16.mxu0 %v1476_v14 }
  0x46   :  { %729 = vmatprep.mubr.bf16.mxu1 %v1477_v16 }
  0x47   :  { %1270 = vmatpush1.bf16.msra.mxu1 %v1574_v7  ;;  %v1494_v7 = vld [vmem:[%s2076_s1 + $0x234] ss:$8 sps:$4 sm:$0xff]  }
  0x48   :  { %892 = vmatpush1.bf16.msra.mxu0 %v1474_v1  ;;  %1255 = vmatprep.subr.bf16.mxu1 %v1583_v9  ;;  %v1492_v9 = vld [vmem:[%s2076_s1 + $0x230] ss:$8 sps:$4 sm:$0xff]  }
  0x49   :  { %893 = vmatprep.subr.bf16.mxu0 %v1485_v18 }
  0x4a   :  { %730 = vmatmul.mubr.bf16.gmra.mrb[4].mxu1 %v1479_v3 }
  0x4b   :  { %831 = vmatmul.mubr.bf16.gmra.mrb[4].mxu0 %v1473_v20  ;;  %1271 = vmatpush1.bf16.msra.mxu1 %v1591_v11  ;;  %v1489_v11 = vld [vmem:[%s2077_s0 + $0x84] ss:$20 sps:$4 sm:$0xff]  }
  0x4c   :  { %840 = vmatprep.mubr.bf16.mxu0 %v1480_v5  ;;  %1256 = vmatprep.subr.bf16.mxu1 %v1601_v13  ;;  %v1495_v13 = vld [vmem:[%s2077_s0 + $0x7c] ss:$20 sps:$4 sm:$0xff]  }
  0x4d   :  { %894 = vmatpush1.bf16.msra.mxu0 %v1483_v22  ;;  %739 = vmatprep.mubr.bf16.mxu1 %v1486_v24 }
  0x4e   :  { %895 = vmatprep.subr.bf16.mxu0 %v1494_v7 }
  0x4f   :  { %1272 = vmatpush1.bf16.msra.mxu1 %v1610_v15  ;;  %v1491_v15 = vld [vmem:[%s2077_s0 + $0x80] ss:$20 sps:$4 sm:$0xff]  }
  0x50   :  { %1257 = vmatprep.subr.bf16.mxu1 %v1619_v17  ;;  %v1497_v17 = vld [vmem:[%s2077_s0 + $0x78] ss:$20 sps:$4 sm:$0xff]  }
  0x51   :  { %896 = vmatpush1.bf16.msra.mxu0 %v1492_v9 }
  0x52   :  { %740 = vmatmul.mubr.bf16.gmra.mrb[8].mxu1 %v1488_v28 }
  0x53   :  { %841 = vmatmul.mubr.bf16.gmra.mrb[8].mxu0 %v1482_v26  ;;  %1273 = vmatpush1.bf16.msra.mxu1 %v1627_v19  ;;  %v1499_v19 = vld [vmem:[%s2077_s0 + $0xa4] ss:$20 sps:$4 sm:$0xff]  }
  0x54   :  { %850 = vmatprep.mubr.bf16.mxu0 %v1489_v11  ;;  %1258 = vmatprep.subr.bf16.mxu1 %v1637_v21  ;;  %v1521_v21 = vmov 0  }
  0x55   :  { %749 = vmatprep.mubr.bf16.mxu1 %v1495_v13 }
  0x57   :  { %1274 = vmatpush1.bf16.msra.mxu1 %v1646_v23  ;;  %v1501_v23 = vld [vmem:[%s2077_s0 + $0xa0] ss:$20 sps:$4 sm:$0xff]  }
  0x58   :  { %1259 = vmatprep.subr.bf16.mxu1 %v1655_v25  ;;  %v1503_v25 = vld [vmem:[%s2077_s0 + $0xcc] ss:$20 sps:$4 sm:$0xff]  }
  0x5a   :  { %750 = vmatmul.mubr.bf16.gmra.mrb[12].mxu1 %v1497_v17 }
  0x5b   :  { %851 = vmatmul.mubr.bf16.gmra.mrb[12].mxu0 %v1491_v15  ;;  %1275 = vmatpush1.bf16.msra.mxu1 %v1663_v27  ;;  %v51_v27 = vld [vmem:[%s2077_s0 + $0xf0] sm:$0xff] }
  0x5c   :  { %921 = vmatprep.mubr.bf16.mxu0 %v1521_v21  ;;  %1260 = vmatprep.subr.bf16.mxu1 %v1673_v29  ;;  %v1502_v29 = vld [vmem:[%s2077_s0 + $0x38] ss:$20 sps:$4 sm:$0xff]   ;;  %v1144_v32 = vcombine.high %v51_v27, %v51_v27  ;;  %v1143_v34 = vcombine.low %v51_v27, %v51_v27 }
  0x5d   :  { %759 = vmatprep.mubr.bf16.mxu1 %v1499_v19 }
  0x5f   :  { %1276 = vmatpush1.bf16.msra.mxu1 %v1682_v31  ;;  %v1505_v31 = vld [vmem:[%s2077_s0 + $0xc8] ss:$20 sps:$4 sm:$0xff]  }
  0x60   :  { %1261 = vmatprep.subr.bf16.mxu1 %v1691_v33  ;;  %v1506_v33 = vld [vmem:[%s2077_s0 + $0x60] ss:$20 sps:$4 sm:$0xff]  }
  0x62   :  { %760 = vmatmul.mubr.bf16.gmra.mrb[16].mxu1 %v1501_v23 }
  0x63   :  { %1220 = vmatmul.mubr.msk.bf16.vlgmr.msra.gmra.mrb[0].mxu0 %vm665_vm0, %v1498_v30  ;;  %1277 = vmatpush1.bf16.msra.mxu1 %v1699_v35  ;;  %v1512_v35 = vld [vmem:[%s2077_s0 + $0xac] ss:$20 sps:$4 sm:$0xff]  }
  0x64   :  { %931 = vmatprep.mubr.bf16.mxu0 %v1521_v21  ;;  %1262 = vmatprep.subr.bf16.mxu1 %v1709_v37  ;;  %v1510_v37 = vld [vmem:[%s2077_s0 + $0xa8] ss:$20 sps:$4 sm:$0xff]  }
  0x65   :  { %769 = vmatprep.mubr.bf16.mxu1 %v1503_v25 }
  0x67   :  { %1278 = vmatpush1.bf16.msra.mxu1 %v1718_v39  ;;  %v1514_v39 = vld [vmem:[%s2077_s0 + $0xd4] ss:$20 sps:$4 sm:$0xff]  }
  0x68   :  { %1263 = vmatprep.subr.bf16.mxu1 %v1727_v41  ;;  %v1516_v41 = vld [vmem:[%s2077_s0 + $0xd0] ss:$20 sps:$4 sm:$0xff]  }
  0x6a   :  { %770 = vmatmul.mubr.bf16.gmra.mrb[20].mxu1 %v1505_v31 }
  0x6b   :  { %1221 = vmatmul.mubr.msk.bf16.gmra.mrb[4].mxu0 %vm665_vm0, %v1502_v29  ;;  %1279 = vmatpush1.bf16.msra.mxu1 %v1735_v43  ;;  %v1146_v43 = vcombine.high %v52_v40, %v52_v40 }
  0x6c   :  { %941 = vmatprep.mubr.bf16.mxu0 %v1521_v21  ;;  %1264 = vmatprep.subr.bf16.mxu1 %v1745_v45  ;;  %v1520_v45 = vld [vmem:[%s2077_s0 + $0x100] ss:$0 sps:$4 sm:$0xff]  }
  0x6d   :  { %779 = vmatprep.mubr.bf16.mxu1 %v1144_v32 }
  0x6f   :  { %1280 = vmatpush1.bf16.msra.mxu1 %v1753_v47 }
  0x70   :  { %1265 = vmatprep.subr.bf16.mxu1 %v1765_v50 }
  0x72   :  { %780 = vmatmul.mubr.bf16.gmra.mrb[24].mxu1 %v1143_v34 }
  0x73   :  { %1222 = vmatmul.mubr.msk.bf16.gmra.mrb[8].mxu0 %vm665_vm0, %v1506_v33  ;;  %1281 = vmatpush1.bf16.msra.mxu1 %v1777_v53 }
  0x74   :  { %951 = vmatprep.mubr.bf16.mxu0 %v1521_v21  ;;  %1266 = vmatprep.subr.bf16.mxu1 %v1787_v55 }
  0x75   :  { %860 = vmatprep.mubr.bf16.mxu1 %v1512_v35 }
  0x77   :  { %1282 = vmatpush1.bf16.msra.mxu1 %v1795_v57 }
  0x78   :  { %1267 = vmatprep.subr.bf16.mxu1 %v1805_v59 }
  0x7b   :  { %1223 = vmatmul.mubr.msk.bf16.gmra.mrb[12].mxu0 %vm665_vm0, %v1509_v36  ;;  %1283 = vmatpush1.bf16.msra.mxu1 %v1813_v61  ;;  %v126_v61 = vld [vmem:[%s2078_s2] sm:$0x3] }
  0x7c   :  { %961 = vmatprep.mubr.bf16.mxu0 %v1521_v21  ;;  %1268 = vmatprep.subr.bf16.mxu1 %v1823_v63  ;;  %v2001_v4 = vrot.slane %v126_v61, %v130_v60  ;;  %v2005_v8 = vrot.slane %v126_v61, %v134_v62 }
  0x7f   :  { %1284 = vmatpush1.bf16.msra.mxu1 %v1832_v2 }
  0x82   :  { %861 = vmatmul.mubr.bf16.vlgmr.msra.gmra.mrb[16].mxu1 %v1510_v37 }
  0x83   :  { %1224 = vmatmul.mubr.msk.bf16.gmra.mrb[16].mxu0 %vm665_vm0, %v1513_v38  ;;  %870 = vmatprep.mubr.bf16.mxu1 %v1514_v39 }
  0x84   :  { %971 = vmatprep.mubr.bf16.mxu0 %v1521_v21 }
  0x8a   :  { %871 = vmatmul.mubr.bf16.gmra.mrb[20].mxu1 %v1516_v41 }
  0x8b   :  { %1225 = vmatmul.mubr.msk.bf16.gmra.mrb[20].mxu0 %vm665_vm0, %v1517_v42  ;;  %880 = vmatprep.mubr.bf16.mxu1 %v1146_v43 }
  0x8c   :  { %981 = vmatprep.mubr.bf16.mxu0 %v1521_v21 }
  0x92   :  { %881 = vmatmul.mubr.bf16.gmra.mrb[24].mxu1 %v1145_v44 }
  0x93   :  { %1226 = vmatmul.mubr.msk.bf16.gmra.mrb[24].mxu0 %vm665_vm0, %v1520_v45 }
 0x115   :  { %v721_v46 = vpop.f32.mrb[0].mxu1 }
 0x116   :  { %v723_v47 = vpop.f32.mrb[1].mxu1  ;;  %v722_v10 = vadd.f32 %v721_v46, %v2001_v4 }
 0x117   :  { %v725_v48 = vpop.f32.mrb[2].mxu1  ;;  %v724_v12 = vadd.f32 %v723_v47, %v2005_v8 }
 0x118   :  { %v727_v49 = vpop.f32.mrb[3].mxu1  ;;  %v726_v16 = vadd.f32 %v725_v48, %v2001_v4 }
 0x119   :  { %v728_v20 = vadd.f32 %v727_v49, %v2005_v8 }
 0x11d   :  { %v731_v50 = vpop.f32.mrb[4].mxu1 }
 0x11e   :  { %v733_v51 = vpop.f32.mrb[5].mxu1  ;;  %v732_v15 = vadd.f32 %v731_v50, %v2001_v4 }
 0x11f   :  { %v735_v52 = vpop.f32.mrb[6].mxu1  ;;  %v734_v17 = vadd.f32 %v733_v51, %v2005_v8 }
 0x120   :  { %v737_v53 = vpop.f32.mrb[7].mxu1  ;;  %v736_v30 = vadd.f32 %v735_v52, %v2001_v4 }
 0x121   :  { %v738_v27 = vadd.f32 %v737_v53, %v2005_v8 }
 0x125   :  { %v741_v55 = vpop.f32.mrb[8].mxu1 }
 0x126   :  { %v743_v56 = vpop.f32.mrb[9].mxu1  ;;  %v742_v40 = vadd.f32 %v741_v55, %v2001_v4 }
 0x127   :  { %v745_v57 = vpop.f32.mrb[10].mxu1  ;;  %v744_v41 = vadd.f32 %v743_v56, %v2005_v8 }
 0x128   :  { %v747_v59 = vpop.f32.mrb[11].mxu1  ;;  %v746_v44 = vadd.f32 %v745_v57, %v2001_v4 }
 0x129   :  { %v748_v47 = vadd.f32 %v747_v59, %v2005_v8 }
 0x12d   :  { %v1995_v63 = vpop.f32.mrb[12].mxu1 }
 0x12e   :  { %v1997_v0 = vpop.f32.mrb[13].mxu1  ;;  %v752_v57 = vadd.f32 %v1995_v63, %v2001_v4 }
 0x12f   :  { %v1999_v2 = vpop.f32.mrb[14].mxu1  ;;  %v754_v59 = vadd.f32 %v1997_v0, %v2005_v8 }
 0x130   :  { %v2003_v6 = vpop.f32.mrb[15].mxu1  ;;  %v756_v62 = vadd.f32 %v1999_v2, %v2001_v4 }
 0x136   :  { %v923_v14 = vpop.f32.mrb[0].mxu0 }
 0x137   :  { %v1286_v1 = vadd.f32 %v923_v14, %v722_v10  ;;  %v925_v18 = vpop.f32.mrb[1].mxu0  ;;  %v758_v14 = vadd.f32 %v2003_v6, %v2005_v8 }
 0x138   :  { %v1288_v3 = vadd.f32 %v925_v18, %v724_v12  ;;  %v927_v5 = vpop.f32.mrb[2].mxu0 }
 0x139   :  { %v990_v22 = vmax.f32 %v1286_v1, 0.0  ;;  %v1290_v24 = vadd.f32 %v927_v5, %v726_v16  ;;  %v929_v7 = vpop.f32.mrb[3].mxu0 }
 0x13a   :  { %v991_v9 = vmax.f32 %v1288_v3, 0.0  ;;  %v1292_v26 = vadd.f32 %v929_v7, %v728_v20 }
 0x13b   :  { %v992_v28 = vmax.f32 %v1290_v24, 0.0 }
 0x13c   :  { %v1240_v11 = vpack.c.bf16 %v991_v9, %v990_v22  ;;  %v993_v13 = vmax.f32 %v1292_v26, 0.0 }
 0x13e   :  { %1096 = vst [vmem:[%s2079_s3] sm:$0xff] %v1240_v11  ;;  %v1241_v19 = vpack.c.bf16 %v993_v13, %v992_v28  ;;  %v933_v21 = vpop.f32.mrb[4].mxu0 }
 0x13f   :  { %v1294_v23 = vadd.f32 %v933_v21, %v732_v15  ;;  %v935_v25 = vpop.f32.mrb[5].mxu0 }
 0x140   :  { %1097 = vst [vmem:[%s2079_s3 + $0x8] sm:$0xff] %v1241_v19  ;;  %v1296_v29 = vadd.f32 %v935_v25, %v734_v17  ;;  %v937_v31 = vpop.f32.mrb[6].mxu0 }
 0x141   :  { %v994_v32 = vmax.f32 %v1294_v23, 0.0  ;;  %v1298_v33 = vadd.f32 %v937_v31, %v736_v30  ;;  %v939_v34 = vpop.f32.mrb[7].mxu0 }
 0x142   :  { %v995_v35 = vmax.f32 %v1296_v29, 0.0  ;;  %v1300_v36 = vadd.f32 %v939_v34, %v738_v27 }
 0x143   :  { %v996_v37 = vmax.f32 %v1298_v33, 0.0 }
 0x144   :  { %v1242_v38 = vpack.c.bf16 %v995_v35, %v994_v32  ;;  %v997_v39 = vmax.f32 %v1300_v36, 0.0 }
 0x146   :  { %1098 = vst [vmem:[%s2079_s3 + $0x10] sm:$0xff] %v1242_v38  ;;  %v1243_v42 = vpack.c.bf16 %v997_v39, %v996_v37  ;;  %v943_v43 = vpop.f32.mrb[8].mxu0 }
 0x147   :  { %v1302_v45 = vadd.f32 %v943_v43, %v742_v40  ;;  %v945_v46 = vpop.f32.mrb[9].mxu0 }
 0x148   :  { %1099 = vst [vmem:[%s2079_s3 + $0x18] sm:$0xff] %v1243_v42  ;;  %v1304_v48 = vadd.f32 %v945_v46, %v744_v41  ;;  %v947_v49 = vpop.f32.mrb[10].mxu0 }
 0x149   :  { %v998_v50 = vmax.f32 %v1302_v45, 0.0  ;;  %v1306_v51 = vadd.f32 %v947_v49, %v746_v44  ;;  %v949_v52 = vpop.f32.mrb[11].mxu0 }
 0x14a   :  { %v999_v53 = vmax.f32 %v1304_v48, 0.0  ;;  %v1308_v54 = vadd.f32 %v949_v52, %v748_v47 }
 0x14b   :  { %v1000_v55 = vmax.f32 %v1306_v51, 0.0 }
 0x14c   :  { %v1244_v56 = vpack.c.bf16 %v999_v53, %v998_v50  ;;  %v1001_v58 = vmax.f32 %v1308_v54, 0.0 }
 0x14e   :  { %1100 = vst [vmem:[%s2079_s3 + $0x20] sm:$0xff] %v1244_v56  ;;  %v1245_v60 = vpack.c.bf16 %v1001_v58, %v1000_v55  ;;  %v953_v61 = vpop.f32.mrb[12].mxu0 }
 0x14f   :  { %v1310_v10 = vadd.f32 %v953_v61, %v752_v57  ;;  %v955_v12 = vpop.f32.mrb[13].mxu0 }
 0x150   :  { %1101 = vst [vmem:[%s2079_s3 + $0x28] sm:$0xff] %v1245_v60  ;;  %v1312_v63 = vadd.f32 %v955_v12, %v754_v59  ;;  %v957_v0 = vpop.f32.mrb[14].mxu0 }
 0x151   :  { %v1002_v16 = vmax.f32 %v1310_v10, 0.0  ;;  %v1314_v1 = vadd.f32 %v957_v0, %v756_v62  ;;  %v959_v18 = vpop.f32.mrb[15].mxu0 }
 0x152   :  { %v1003_v20 = vmax.f32 %v1312_v63, 0.0  ;;  %v1316_v3 = vadd.f32 %v959_v18, %v758_v14 }
 0x153   :  { %v1004_v5 = vmax.f32 %v1314_v1, 0.0 }
 0x154   :  { %v1246_v22 = vpack.c.bf16 %v1003_v20, %v1002_v16  ;;  %v1005_v24 = vmax.f32 %v1316_v3, 0.0 }
 0x155   :  { %v862_v6 = vpop.f32.mrb[16].mxu1 }
 0x156   :  { %1102 = vst [vmem:[%s2079_s3 + $0x30] sm:$0xff] %v1246_v22  ;;  %v1247_v2 = vpack.c.bf16 %v1005_v24, %v1004_v5  ;;  %v963_v7 = vpop.f32.mrb[16].mxu0  ;;  %v1317_v9 = vadd.f32 %v862_v6, %v2001_v4  ;;  %v864_v26 = vpop.f32.mrb[17].mxu1 }
 0x157   :  { %v965_v28 = vpop.f32.mrb[17].mxu0  ;;  %v1319_v11 = vadd.f32 %v864_v26, %v2005_v8  ;;  %v866_v13 = vpop.f32.mrb[18].mxu1 }
 0x158   :  { %1103 = vst [vmem:[%s2079_s3 + $0x38] sm:$0xff] %v1247_v2  ;;  %v967_v15 = vpop.f32.mrb[18].mxu0  ;;  %v1318_v17 = vadd.f32 %v1317_v9, %v963_v7  ;;  %v1321_v19 = vadd.f32 %v866_v13, %v2001_v4  ;;  %v868_v21 = vpop.f32.mrb[19].mxu1 }
 0x159   :  { %v969_v30 = vpop.f32.mrb[19].mxu0  ;;  %v1320_v23 = vadd.f32 %v1319_v11, %v965_v28  ;;  %v1323_v25 = vadd.f32 %v868_v21, %v2005_v8 }
 0x15a   :  { %v1006_v27 = vmax.f32 %v1318_v17, 0.0  ;;  %v1322_v29 = vadd.f32 %v1321_v19, %v967_v15 }
 0x15b   :  { %v1007_v31 = vmax.f32 %v1320_v23, 0.0  ;;  %v1324_v32 = vadd.f32 %v1323_v25, %v969_v30 }
 0x15c   :  { %v1008_v33 = vmax.f32 %v1322_v29, 0.0 }
 0x15d   :  { %v1248_v34 = vpack.c.bf16 %v1007_v31, %v1006_v27  ;;  %v1009_v35 = vmax.f32 %v1324_v32, 0.0  ;;  %v872_v36 = vpop.f32.mrb[20].mxu1 }
 0x15e   :  { %v973_v37 = vpop.f32.mrb[20].mxu0  ;;  %v1325_v38 = vadd.f32 %v872_v36, %v2001_v4  ;;  %v874_v39 = vpop.f32.mrb[21].mxu1 }
 0x15f   :  { %v975_v40 = vpop.f32.mrb[21].mxu0  ;;  %1104 = vst [vmem:[%s2079_s3 + $0x40] sm:$0xff] %v1248_v34  ;;  %v1249_v41 = vpack.c.bf16 %v1009_v35, %v1008_v33  ;;  %v1327_v42 = vadd.f32 %v874_v39, %v2005_v8  ;;  %v876_v43 = vpop.f32.mrb[22].mxu1 }
 0x160   :  { %v977_v44 = vpop.f32.mrb[22].mxu0  ;;  %v1326_v45 = vadd.f32 %v1325_v38, %v973_v37  ;;  %v1329_v46 = vadd.f32 %v876_v43, %v2001_v4  ;;  %v878_v47 = vpop.f32.mrb[23].mxu1 }
 0x161   :  { %v979_v48 = vpop.f32.mrb[23].mxu0  ;;  %1105 = vst [vmem:[%s2079_s3 + $0x48] sm:$0xff] %v1249_v41  ;;  %v1328_v49 = vadd.f32 %v1327_v42, %v975_v40  ;;  %v1331_v50 = vadd.f32 %v878_v47, %v2005_v8 }
 0x162   :  { %v1010_v51 = vmax.f32 %v1326_v45, 0.0  ;;  %v1330_v52 = vadd.f32 %v1329_v46, %v977_v44 }
 0x163   :  { %v1011_v53 = vmax.f32 %v1328_v49, 0.0  ;;  %v1332_v54 = vadd.f32 %v1331_v50, %v979_v48 }
 0x164   :  { %v1012_v55 = vmax.f32 %v1330_v52, 0.0 }
 0x165   :  { %v1250_v56 = vpack.c.bf16 %v1011_v53, %v1010_v51  ;;  %v1013_v58 = vmax.f32 %v1332_v54, 0.0  ;;  %v882_v57 = vpop.f32.mrb[24].mxu1 }
 0x166   :  { %v983_v59 = vpop.f32.mrb[24].mxu0  ;;  %v1333_v60 = vadd.f32 %v882_v57, %v2001_v4  ;;  %v884_v61 = vpop.f32.mrb[25].mxu1 }
 0x167   :  { %v985_v62 = vpop.f32.mrb[25].mxu0  ;;  %1106 = vst [vmem:[%s2079_s3 + $0x50] sm:$0xff] %v1250_v56  ;;  %v1251_v10 = vpack.c.bf16 %v1013_v58, %v1012_v55  ;;  %v1335_v12 = vadd.f32 %v884_v61, %v2005_v8  ;;  %v886_v14 = vpop.f32.mrb[26].mxu1 }
 0x168   :  { %v987_v63 = vpop.f32.mrb[26].mxu0  ;;  %v1334_v0 = vadd.f32 %v1333_v60, %v983_v59  ;;  %v887_v16 = vpop.f32.mrb[27].mxu1 }
 0x169   :  { %v988_v1 = vpop.f32.mrb[27].mxu0  ;;  %1107 = vst [vmem:[%s2079_s3 + $0x58] sm:$0xff] %v1251_v10  ;;  %v1336_v18 = vadd.f32 %v1335_v12, %v985_v62 }
 0x16a   :  { %v1014_v4 = vmax.f32 %v1334_v0, 0.0 }
 0x16b   :  { %v1015_v20 = vmax.f32 %v1336_v18, 0.0 }
 0x16d   :  { %v1252_v3 = vpack.c.bf16 %v1015_v20, %v1014_v4 }
 0x16f   :  { %1108 = vst [vmem:[%s2079_s3 + $0x60] sm:$0xff] %v1252_v3 }

// kernel: quizdnn_forward.17
= control target key start
LH: loop header
LB: loop body
LE: loop exit
PB: predicated region body
PF: predicated region fallthrough
CT: control target
= control target key end

     0   :  { %v321_v3 = vmov 0.0|0.0   ;;  %vm322_vm0 = vmmov 0   ;;  %v323_v6 = vmov 0.0   ;;  %s437_s0 = inlined_call_operand.vmem [shape: bf16[2,49,128], index: 0, kind: input, shape index: {}]   ;;  %s438_s1 = inlined_call_operand.vmem [shape: f32[128,10], index: 1, kind: input, shape index: {}]   ;;  %s439_s2 = inlined_call_operand.hbm [shape: f32[2,10], index: 2, kind: output, shape index: {}]  }
   0x1   :  { %v70_v0 = vld [vmem:[%s438_s1] sm:$0xff]  ;;  %v71_v1 = vld [vmem:[%s438_s1 + $0x8] sm:$0xff]  ;;  %v72_v2 = vld [vmem:[%s438_s1 + $0x10] sm:$0xff]  ;;  %265 = vmatprep.subr.bf16.mxu0 %v321_v3  ;;  %262 = vmatprep.mubr.msk.f32.mxu0 %vm322_vm0, %v323_v6 }
   0x2   :  { %v266_v4 = vpack.c.bf16 %v71_v1, %v70_v0  ;;  %v73_v5 = vld [vmem:[%s438_s1 + $0x18] sm:$0xff]  ;;  %v74_v8 = vld [vmem:[%s438_s1 + $0x20] sm:$0xff]  ;;  %v75_v9 = vld [vmem:[%s438_s1 + $0x28] sm:$0xff] }
   0x3   :  { %v269_v7 = vpack.c.bf16 %v73_v5, %v72_v2  ;;  %v190_v10 = vld [vmem:[%s437_s0] sm:$0xff]   ;;  %v209_v11 = vld [vmem:[%s437_s0 + $0x8] sm:$0xff]   ;;  %v19_v14 = vld [vmem:[%s437_s0 + $0x1c] ss:$20 sps:$4 sm:$0xff]   ;;  %v272_v15 = vpack.c.bf16 %v75_v9, %v74_v8 }
   0x4   :  { %267 = vmatpush3.bf16.msra.mxu0 %v266_v4  ;;  %v191_v12 = vunpack.c.l.bf16 %v190_v10  ;;  %v192_v13 = vunpack.c.h.bf16 %v190_v10  ;;  %v76_v16 = vld [vmem:[%s438_s1 + $0x30] sm:$0xff]  ;;  %v77_v17 = vld [vmem:[%s438_s1 + $0x38] sm:$0xff]  ;;  %v195_v18 = vunpack.c.l.bf16 %v209_v11  ;;  %v211_v19 = vld [vmem:[%s437_s0 + $0x20] sm:$0xff]  }
   0x5   :  { %268 = vmatprep.subr.bf16.mxu0 %v321_v3  ;;  %v210_v20 = vld [vmem:[%s437_s0 + $0x10] sm:$0xff]   ;;  %v203_v21 = vunpack.c.l.bf16 %v211_v19  ;;  %v212_v22 = vld [vmem:[%s437_s0 + $0x28] sm:$0xff]  }
   0x8   :  { %270 = vmatpush3.bf16.msra.mxu0 %v269_v7 }
   0x9   :  { %271 = vmatprep.subr.bf16.mxu0 %v321_v3 }
   0xa   :  { %7 = vsyncpa [#allocation3], 0  ;;  %v196_v23 = vunpack.c.h.bf16 %v209_v11  ;;  %v18_v24 = vld [vmem:[%s437_s0 + $0x18] sm:$0x1]  ;;  %v204_v25 = vunpack.c.h.bf16 %v211_v19  ;;  %v33_v26 = vunpack.c.l.bf16 %v19_v14  ;;  %v40_v27 = vadd.f32 %v192_v13, %v191_v12  ;;  %v25_v31 = vld [vmem:[%s437_s0 + $0x34] sm:$0x1] }
   0xb   :  { %v275_v28 = vpack.c.bf16 %v77_v17, %v76_v16  ;;  %v199_v29 = vunpack.c.l.bf16 %v210_v20  ;;  %v207_v30 = vunpack.c.l.bf16 %v212_v22  ;;  %v78_v34 = vld [vmem:[%s438_s1 + $0x40] sm:$0xff]  ;;  %v79_v35 = vld [vmem:[%s438_s1 + $0x48] sm:$0xff]  ;;  %v32_v36 = vunpack.c.l.bf16 %v18_v24  ;;  %v80_v46 = vld [vmem:[%s438_s1 + $0x50] sm:$0xff] }
   0xc   :  { %273 = vmatpush3.bf16.msra.mxu0 %v272_v15  ;;  %v41_v32 = vadd.f32 %v195_v18, %v40_v27  ;;  %v54_v33 = vadd.f32 %v203_v21, %v33_v26  ;;  %vm45_vm1 = vcmask 1040384   ;;  %v200_v37 = vunpack.c.h.bf16 %v210_v20  ;;  %v81_v47 = vld [vmem:[%s438_s1 + $0x58] sm:$0xff]  ;;  %v82_v55 = vld [vmem:[%s438_s1 + $0x60] sm:$0xff]  ;;  %v83_v56 = vld [vmem:[%s438_s1 + $0x68] sm:$0xff] }
   0xd   :  { %274 = vmatprep.subr.bf16.mxu0 %v321_v3  ;;  %v208_v38 = vunpack.c.h.bf16 %v212_v22  ;;  %v39_v41 = vunpack.c.l.bf16 %v25_v31  ;;  %v278_v42 = vpack.c.bf16 %v79_v35, %v78_v34  ;;  %v38_v43 = vunpack.c.h.bf16 %v19_v14  ;;  %v84_v62 = vld [vmem:[%s438_s1 + $0x70] sm:$0xff]  ;;  %v85_v63 = vld [vmem:[%s438_s1 + $0x78] sm:$0xff]  ;;  %s324_s1 = smov [#allocation2]  }
   0xe   :  { %v42_v39 = vadd.f32 %v196_v23, %v41_v32  ;;  %v55_v40 = vadd.f32 %v204_v25, %v54_v33  ;;  %v46_v48 = vsel %vm45_vm1, %v32_v36, 0.0  ;;  %v281_v52 = vpack.c.bf16 %v81_v47, %v80_v46  ;;  %s181_s28 = sshll.u32 %s324_s1, 4  ;;  %s182_s28 = int_to_ptr.vmem [resolvable:$true] %s181_s28 }
   0xf   :  { %v59_v51 = vsel %vm45_vm1, %v39_v41, 0.0  ;;  %v284_v59 = vpack.c.bf16 %v83_v56, %v82_v55  ;;  %v287_v2 = vpack.c.bf16 %v85_v63, %v84_v62  ;;  %vm88_vm2 = vcmask 1041409   ;;  %s297_s29 = scalar_lea.vmem %s182_s28, 32  ;;  %p302_p1 = scmp.lt.s32.totalorder %s182_s28, %s182_s28 }
  0x10   :  { %276 = vmatpush3.bf16.msra.mxu0 %v275_v28  ;;  %v43_v44 = vadd.f32 %v199_v29, %v42_v39  ;;  %v56_v45 = vadd.f32 %v207_v30, %v55_v40  ;;  %vm161_vm3 = vcmask 74752   ;;  %p298_p0 = scmp.ne.s32.totalorder %s182_s28, %s297_s29  ;;  %p303_p2 = scmp.lt.s32.totalorder %s297_s29, %s297_s29 }
  0x11   :  { %277 = vmatprep.subr.bf16.mxu0 %v321_v3 }
  0x12   :  { %v44_v49 = vadd.f32 %v200_v37, %v43_v44  ;;  %v57_v50 = vadd.f32 %v208_v38, %v56_v45  ;;  %p304_p3 = por %p303_p2, %p302_p1 }
  0x14   :  { %279 = vmatpush3.bf16.msra.mxu0 %v278_v42  ;;  %v47_v53 = vadd.f32 %v46_v48, %v44_v49  ;;  %v58_v54 = vadd.f32 %v57_v50, %v38_v43  ;;  %p305_p4 = pnand %p304_p3, %p298_p0 }
  0x15   :  { %280 = vmatprep.subr.bf16.mxu0 %v321_v3 }
  0x16   :  { %v48_v57 = vrot.slane %v47_v53, 4  ;;  %v60_v58 = vadd.f32 %v59_v51, %v58_v54 }
  0x18   :  { %282 = vmatpush3.bf16.msra.mxu0 %v281_v52  ;;  %v49_v60 = vadd.f32 %v48_v57, %v47_v53  ;;  %v61_v61 = vrot.slane %v60_v58, 4 }
  0x19   :  { %283 = vmatprep.subr.bf16.mxu0 %v321_v3 }
  0x1a   :  { %v50_v0 = vrot.slane %v49_v60, 2  ;;  %v62_v1 = vadd.f32 %v61_v61, %v60_v58 }
  0x1c   :  { %285 = vmatpush3.bf16.msra.mxu0 %v284_v59  ;;  %v51_v4 = vadd.f32 %v50_v0, %v49_v60  ;;  %v63_v5 = vrot.slane %v62_v1, 2 }
  0x1d   :  { %286 = vmatprep.subr.bf16.mxu0 %v321_v3 }
  0x1e   :  { %v52_v6 = vrot.slane %v51_v4, 1  ;;  %v64_v7 = vadd.f32 %v63_v5, %v62_v1 }
  0x20   :  { %288 = vmatpush3.bf16.msra.mxu0 %v287_v2  ;;  %v53_v8 = vadd.f32 %v52_v6, %v51_v4  ;;  %v65_v9 = vrot.slane %v64_v7, 1 }
  0x22   :  { %v66_v10 = vadd.f32 %v65_v9, %v64_v7  ;;  %v68_v11 = vmul.f32 0.020408163, %v53_v8 }
  0x24   :  { %v69_v12 = vmul.f32 0.020408163, %v66_v10 }
  0x26   :  { %v89_v13 = vsel %vm88_vm2, %v69_v12, %v68_v11 }
  0x27   :  { %263 = vmatmul.mubr.f32.vlgmr.msra.gmra.mrb[0].mxu0 %v89_v13 }
  0xfa   :  { %v157_v14 = vpop.f32.mrb[0].mxu0 }
  0xfb   :  { %v264_v15 = vpop.f32.mrb[1].mxu0  ;;  %v162_v16 = vsel %vm161_vm3, %v157_v14, -inf }
  0xfc   :  { %163 = vmax.xlane.f32.xlu0 %v162_v16 }
 0x189   :  { %v164_v17 = vpop.xlane.xlu0 %163 }
 0x18a   :  { %v165_v18 = vsub.f32 %v157_v14, %v164_v17 }
 0x18c   :  { %v166_v3 = vmul.f32 1.442695, %v165_v18 }
 0x18e   :  { %293 = vpow2.f32 %v166_v3 }
 0x198   :  { %v294_v19 = vpop.eup %293 }
 0x199   :  { %v168_v20 = vsel %vm161_vm3, %v294_v19, 0.0 }
 0x19a   :  { %169 = vadd.xlane.f32.xlu0 %v168_v20 }
 0x227   :  { %v170_v21 = vpop.xlane.xlu0 %169 }
 0x228   :  { %295 = vlog2.f32 %v170_v21 }
 0x232   :  { %v296_v22 = vpop.eup %295 }
 0x233   :  { %v172_v23 = vmul.f32 0.6931472, %v296_v22 }
 0x235   :  { %v173_v24 = vsub.f32 %v165_v18, %v172_v23 }
 0x237   :  { %174 = vst.msk [vmem:[#allocation2] sm:$0x3] %vm161_vm3, %v173_v24 }
 0x238   :  { %308 = shalt.err (!%p305_p4)
}
 0x239   :  { %s309_s4 = scalar_lea.hbm %s439_s2, 32 }
 0x23a   :  { %p310_p5 = scmp.ne.s32.totalorder %s439_s2, %s309_s4  ;;  %p313_p6 = scmp.lt.u32.totalorder %s309_s4, %s439_s2 }
 0x23c   :  { %p315_p7 = pnand %p313_p6, %p310_p5 }
 0x23e   :  { %318 = shalt.err (!%p315_p7)
}
 0x23f   :  { %184 = dma.vmem_to_hbm [thread:$0]  %s182_s28, 32, %s439_s2, [#allocation3]  }
 0x240   :  { %319 = dma.done.wait [#allocation3], 32  }
 0x241   :  { %320 = vsyncadd [#allocation3], 4294967264 }
 0x242   :  { %188 = vsyncpa [#allocation3], 1 }

// kernel: quizdnn_forward.15
= control target key start
LH: loop header
LB: loop body
LE: loop exit
PB: predicated region body
PF: predicated region fallthrough
CT: control target
= control target key end

     0   :  { %vm2160_vm0 = vmmov 0   ;;  %s2695_s1 = inlined_call_operand.vmem [shape: bf16[1152,128], index: 1, kind: input, shape index: {}]   ;;  %s2696_s0 = inlined_call_operand.vmem [shape: bf16[104,1152], index: 0, kind: input, shape index: {}]   ;;  %s2697_s2 = inlined_call_operand.vmem [shape: f32[1,128], index: 2, kind: input, shape index: {}]   ;;  %s2698_s3 = inlined_call_operand.vmem [shape: bf16[104,128], index: 3, kind: output, shape index: {}]  }
   0x1   :  { %v2000_v0 = vld [vmem:[%s2695_s1 + $0x40] sm:$0xff]   ;;  %v2002_v2 = vld [vmem:[%s2695_s1 + $0x48] sm:$0xff]   ;;  %v2004_v4 = vld [vmem:[%s2695_s1 + $0x50] sm:$0xff]  }
   0x2   :  { %v2001_v1 = vld [vmem:[%s2695_s1] sm:$0xff]   ;;  %1982 = vmatprep.subr.bf16.mxu1 %v2000_v0  ;;  %1691 = vmatprep.subr.bf16.mxu0 %v2000_v0  ;;  %v2003_v3 = vld [vmem:[%s2695_s1 + $0x8] sm:$0xff]   ;;  %v2005_v5 = vld [vmem:[%s2695_s1 + $0x10] sm:$0xff]  }
   0x3   :  { %1990 = vmatpush3.bf16.msra.mxu1 %v2001_v1  ;;  %1692 = vmatpush3.bf16.msra.mxu0 %v2001_v1  ;;  %v2006_v6 = vld [vmem:[%s2695_s1 + $0x58] sm:$0xff]   ;;  %v2008_v8 = vld [vmem:[%s2695_s1 + $0x60] sm:$0xff]   ;;  %v2010_v10 = vld [vmem:[%s2695_s1 + $0x68] sm:$0xff]  }
   0x4   :  { %1983 = vmatprep.subr.bf16.mxu1 %v2002_v2  ;;  %1693 = vmatprep.subr.bf16.mxu0 %v2002_v2  ;;  %v2007_v7 = vld [vmem:[%s2695_s1 + $0x18] sm:$0xff]   ;;  %v2009_v9 = vld [vmem:[%s2695_s1 + $0x20] sm:$0xff]   ;;  %v2011_v12 = vld [vmem:[%s2695_s1 + $0x28] sm:$0xff]  }
   0x5   :  { %v2018_v11 = vld [vmem:[%s2696_s0 + $0x124] ss:$36 sps:$4 sm:$0xff]   ;;  %v2012_v14 = vld [vmem:[%s2695_s1 + $0x70] sm:$0xff]   ;;  %v2014_v16 = vld [vmem:[%s2695_s1 + $0x78] sm:$0xff]  }
   0x6   :  { %v2022_v13 = vld [vmem:[%s2696_s0 + $0x4] ss:$36 sps:$4 sm:$0xff]   ;;  %1035 = vmatprep.mubr.bf16.mxu1 %v2018_v11  ;;  %v2013_v15 = vld [vmem:[%s2695_s1 + $0x30] sm:$0xff]   ;;  %v2015_v17 = vld [vmem:[%s2695_s1 + $0x38] sm:$0xff]  }
   0x7   :  { %1991 = vmatpush3.bf16.msra.mxu1 %v2003_v3  ;;  %1694 = vmatpush3.bf16.msra.mxu0 %v2003_v3  ;;  %v2019_v18 = vld [vmem:[%s2695_s1 + $0xc0] sm:$0xff]   ;;  %v2026_v24 = vld [vmem:[%s2695_s1 + $0xc8] sm:$0xff]   ;;  %v2030_v30 = vld [vmem:[%s2695_s1 + $0xd0] sm:$0xff]  }
   0x8   :  { %1984 = vmatprep.subr.bf16.mxu1 %v2004_v4  ;;  %1695 = vmatprep.subr.bf16.mxu0 %v2004_v4  ;;  %v2016_v19 = vld [vmem:[%s2696_s0 + $0x120] ss:$36 sps:$4 sm:$0xff]   ;;  %v2028_v25 = vld [vmem:[%s2695_s1 + $0x148] sm:$0xff]   ;;  %v2035_v31 = vld [vmem:[%s2695_s1 + $0x150] sm:$0xff]  }
   0x9   :  { %1003 = vmatprep.mubr.bf16.mxu0 %v2022_v13  ;;  %v2020_v20 = vld [vmem:[%s2696_s0] ss:$36 sps:$4 sm:$0xff]   ;;  %v2031_v26 = vld [vmem:[%s2696_s0 + $0x4c] ss:$36 sps:$4 sm:$0xff]   ;;  %v2037_v36 = vld [vmem:[%s2695_s1 + $0xd8] sm:$0xff]  }
   0xa   :  { %v2024_v21 = vld [vmem:[%s2695_s1 + $0x140] sm:$0xff]   ;;  %v2027_v27 = vld [vmem:[%s2695_s1 + $0x88] sm:$0xff]   ;;  %v2033_v32 = vld [vmem:[%s2695_s1 + $0x90] sm:$0xff]  }
   0xb   :  { %1992 = vmatpush3.bf16.msra.mxu1 %v2005_v5  ;;  %1696 = vmatpush3.bf16.msra.mxu0 %v2005_v5  ;;  %v2023_v22 = vld [vmem:[%s2695_s1 + $0x80] sm:$0xff]   ;;  %v2038_v28 = vld [vmem:[%s2696_s0 + $0x16c] ss:$36 sps:$4 sm:$0xff]   ;;  %v2042_v37 = vld [vmem:[%s2695_s1 + $0x158] sm:$0xff]  }
   0xc   :  { %1985 = vmatprep.subr.bf16.mxu1 %v2006_v6  ;;  %1697 = vmatprep.subr.bf16.mxu0 %v2006_v6  ;;  %v2025_v23 = vld [vmem:[%s2695_s1 + $0x100] sm:$0xff]   ;;  %v2029_v29 = vld [vmem:[%s2695_s1 + $0x108] sm:$0xff]   ;;  %v2036_v35 = vld [vmem:[%s2695_s1 + $0x110] sm:$0xff]  }
   0xd   :  { %v2034_v33 = vld [vmem:[%s2696_s0 + $0x48] ss:$36 sps:$4 sm:$0xff]   ;;  %v2040_v38 = vld [vmem:[%s2695_s1 + $0x98] sm:$0xff]   ;;  %v2044_v41 = vld [vmem:[%s2695_s1 + $0xe0] sm:$0xff]  }
   0xe   :  { %v2041_v34 = vld [vmem:[%s2696_s0 + $0x168] ss:$36 sps:$4 sm:$0xff]   ;;  %v2045_v39 = vld [vmem:[%s2696_s0 + $0x94] ss:$36 sps:$4 sm:$0xff]   ;;  %v2049_v43 = vld [vmem:[%s2695_s1 + $0x160] sm:$0xff]  }
   0xf   :  { %1993 = vmatpush3.bf16.msra.mxu1 %v2007_v7  ;;  %1698 = vmatpush3.bf16.msra.mxu0 %v2007_v7  ;;  %v2043_v40 = vld [vmem:[%s2695_s1 + $0x118] sm:$0xff]   ;;  %v75_v42 = vld [vmem:[%s2696_s0 + $0x1b0] sm:$0xff]  ;;  %v2047_v45 = vld [vmem:[%s2695_s1 + $0xa0] sm:$0xff]   ;;  %v2159_v7 = vmov 0.0  }
  0x10   :  { %1986 = vmatprep.subr.bf16.mxu1 %v2008_v8  ;;  %1699 = vmatprep.subr.bf16.mxu0 %v2008_v8  ;;  %v1550_v44 = vcombine.high %v75_v42, %v75_v42  ;;  %v2048_v46 = vld [vmem:[%s2696_s0 + $0x90] ss:$36 sps:$4 sm:$0xff]   ;;  %v2050_v47 = vld [vmem:[%s2695_s1 + $0x120] sm:$0xff]   ;;  %v1549_v48 = vcombine.low %v75_v42, %v75_v42  ;;  %v2051_v49 = vld [vmem:[%s2695_s1 + $0xe8] sm:$0xff]  }
  0x11   :  { %v2055_v50 = vld [vmem:[%s2695_s1 + $0x168] sm:$0xff]   ;;  %v2058_v52 = vld [vmem:[%s2696_s0 + $0xdc] ss:$36 sps:$4 sm:$0xff]   ;;  %v2057_v54 = vld [vmem:[%s2695_s1 + $0xf0] sm:$0xff]  }
  0x12   :  { %v2053_v51 = vld [vmem:[%s2695_s1 + $0xa8] sm:$0xff]   ;;  %v2062_v55 = vld [vmem:[%s2695_s1 + $0x170] sm:$0xff]   ;;  %v2061_v57 = vld [vmem:[%s2696_s0 + $0xd8] ss:$36 sps:$4 sm:$0xff]  }
  0x13   :  { %1994 = vmatpush3.bf16.msra.mxu1 %v2009_v9  ;;  %1700 = vmatpush3.bf16.msra.mxu0 %v2009_v9  ;;  %v2056_v53 = vld [vmem:[%s2695_s1 + $0x128] sm:$0xff]   ;;  %v2060_v56 = vld [vmem:[%s2695_s1 + $0xb0] sm:$0xff]   ;;  %v2064_v59 = vld [vmem:[%s2695_s1 + $0xf8] sm:$0xff]  }
  0x14   :  { %1987 = vmatprep.subr.bf16.mxu1 %v2010_v10  ;;  %1701 = vmatprep.subr.bf16.mxu0 %v2010_v10  ;;  %v2063_v58 = vld [vmem:[%s2695_s1 + $0x130] sm:$0xff]   ;;  %v2066_v60 = vld [vmem:[%s2695_s1 + $0x178] sm:$0xff]   ;;  %v2071_v0 = vld [vmem:[%s2695_s1 + $0x1c0] sm:$0xff]  }
  0x15   :  { %v2069_v61 = vld [vmem:[%s2696_s0 + $0xc] ss:$36 sps:$4 sm:$0xff]   ;;  %v2065_v62 = vld [vmem:[%s2695_s1 + $0xb8] sm:$0xff]   ;;  %v2075_v4 = vld [vmem:[%s2695_s1 + $0x180] sm:$0xff]  }
  0x16   :  { %v2070_v63 = vld [vmem:[%s2695_s1 + $0x138] sm:$0xff]   ;;  %v2067_v2 = vld [vmem:[%s2696_s0 + $0x8] ss:$36 sps:$4 sm:$0xff]   ;;  %v2072_v3 = vld [vmem:[%s2696_s0 + $0x10] ss:$36 sps:$4 sm:$0xff]  }
  0x17   :  { %1995 = vmatpush3.bf16.msra.mxu1 %v2011_v12  ;;  %1702 = vmatpush3.bf16.msra.mxu0 %v2011_v12  ;;  %v2074_v1 = vld [vmem:[%s2696_s0 + $0x14] ss:$36 sps:$4 sm:$0xff]   ;;  %v2076_v5 = vld [vmem:[%s2695_s1 + $0x200] sm:$0xff]   ;;  %v2079_v8 = vld [vmem:[%s2695_s1 + $0x1c8] sm:$0xff]  }
  0x18   :  { %1988 = vmatprep.subr.bf16.mxu1 %v2012_v14  ;;  %1703 = vmatprep.subr.bf16.mxu0 %v2012_v14  ;;  %v2077_v6 = vld [vmem:[%s2696_s0 + $0x54] ss:$36 sps:$4 sm:$0xff]   ;;  %v2081_v9 = vld [vmem:[%s2695_s1 + $0x188] sm:$0xff]   ;;  %v2082_v10 = vld [vmem:[%s2696_s0 + $0x5c] ss:$36 sps:$4 sm:$0xff]  }
  0x19   :  { %v2085_v11 = vld [vmem:[%s2695_s1 + $0x208] sm:$0xff]   ;;  %v2086_v12 = vld [vmem:[%s2695_s1 + $0x1d0] sm:$0xff]   ;;  %v2084_v14 = vld [vmem:[%s2696_s0 + $0x58] ss:$36 sps:$4 sm:$0xff]  }
  0x1a   :  { %v2080_v13 = vld [vmem:[%s2696_s0 + $0x50] ss:$36 sps:$4 sm:$0xff]   ;;  %v2128_v42 = vld [vmem:[%s2695_s1 + $0x1f8] sm:$0xff]  }
  0x1b   :  { %1996 = vmatpush3.bf16.msra.mxu1 %v2013_v15  ;;  %1704 = vmatpush3.bf16.msra.mxu0 %v2013_v15  ;;  %v2087_v15 = vld [vmem:[%s2696_s0 + $0x9c] ss:$36 sps:$4 sm:$0xff]  }
  0x1c   :  { %1989 = vmatprep.subr.bf16.mxu1 %v2014_v16  ;;  %1705 = vmatprep.subr.bf16.mxu0 %v2014_v16  ;;  %v2089_v16 = vld [vmem:[%s2695_s1 + $0x190] sm:$0xff]  }
  0x1f   :  { %1997 = vmatpush3.bf16.msra.mxu1 %v2015_v17  ;;  %1706 = vmatpush3.bf16.msra.mxu0 %v2015_v17  ;;  %v2091_v17 = vld [vmem:[%s2696_s0 + $0xa4] ss:$36 sps:$4 sm:$0xff]  }
  0x20   :  { %1749 = vmatprep.subr.bf16.mxu1 %v2019_v18  ;;  %1807 = vmatprep.subr.bf16.mxu0 %v2024_v21  ;;  %v2094_v18 = vld [vmem:[%s2695_s1 + $0x210] sm:$0xff]   ;;  %v2090_v21 = vld [vmem:[%s2696_s0 + $0x98] ss:$36 sps:$4 sm:$0xff]  }
  0x22   :  { %1036 = vmatmul.mubr.bf16.vlgmr.msra.gmra.mrb[0].mxu1 %v2016_v19  ;;  %1004 = vmatmul.mubr.bf16.vlgmr.msra.gmra.mrb[0].mxu0 %v2020_v20  ;;  %v2095_v19 = vld [vmem:[%s2695_s1 + $0x1d8] sm:$0xff]  }
  0x23   :  { %1750 = vmatpush3.bf16.msra.mxu1 %v2023_v22  ;;  %1808 = vmatpush3.bf16.msra.mxu0 %v2025_v23  ;;  %v2096_v20 = vld [vmem:[%s2695_s1 + $0x198] sm:$0xff]   ;;  %v2093_v22 = vld [vmem:[%s2696_s0 + $0xa0] ss:$36 sps:$4 sm:$0xff]  }
  0x24   :  { %1751 = vmatprep.subr.bf16.mxu1 %v2026_v24  ;;  %1809 = vmatprep.subr.bf16.mxu0 %v2028_v25  ;;  %v2097_v23 = vld [vmem:[%s2696_s0 + $0xe4] ss:$36 sps:$4 sm:$0xff]   ;;  %v2100_v24 = vld [vmem:[%s2696_s0 + $0xec] ss:$36 sps:$4 sm:$0xff]   ;;  %v2103_v25 = vld [vmem:[%s2695_s1 + $0x218] sm:$0xff]  }
  0x25   :  { %1011 = vmatprep.mubr.bf16.mxu0 %v2031_v26  ;;  %1043 = vmatprep.mubr.bf16.mxu1 %v2038_v28  ;;  %v2104_v26 = vld [vmem:[%s2695_s1 + $0x1e0] sm:$0xff]  }
  0x26   :  { %v2099_v28 = vld [vmem:[%s2696_s0 + $0xe0] ss:$36 sps:$4 sm:$0xff]  }
  0x27   :  { %1752 = vmatpush3.bf16.msra.mxu1 %v2027_v27  ;;  %1810 = vmatpush3.bf16.msra.mxu0 %v2029_v29  ;;  %v2105_v27 = vld [vmem:[%s2695_s1 + $0x1a0] sm:$0xff]   ;;  %v2102_v29 = vld [vmem:[%s2696_s0 + $0xe8] ss:$36 sps:$4 sm:$0xff]  }
  0x28   :  { %1753 = vmatprep.subr.bf16.mxu1 %v2030_v30  ;;  %1811 = vmatprep.subr.bf16.mxu0 %v2035_v31  ;;  %v2112_v30 = vld [vmem:[%s2695_s1 + $0x220] sm:$0xff]   ;;  %v2113_v31 = vld [vmem:[%s2695_s1 + $0x1e8] sm:$0xff]  }
  0x2a   :  { %1012 = vmatmul.mubr.bf16.gmra.mrb[4].mxu0 %v2034_v33  ;;  %1044 = vmatmul.mubr.bf16.gmra.mrb[4].mxu1 %v2041_v34  ;;  %v2106_v33 = vld [vmem:[%s2696_s0 + $0x12c] ss:$36 sps:$4 sm:$0xff]   ;;  %v2109_v34 = vld [vmem:[%s2696_s0 + $0x134] ss:$36 sps:$4 sm:$0xff]  }
  0x2b   :  { %1754 = vmatpush3.bf16.msra.mxu1 %v2033_v32  ;;  %1812 = vmatpush3.bf16.msra.mxu0 %v2036_v35  ;;  %v2114_v32 = vld [vmem:[%s2695_s1 + $0x1a8] sm:$0xff]  }
  0x2c   :  { %1755 = vmatprep.subr.bf16.mxu1 %v2037_v36  ;;  %1813 = vmatprep.subr.bf16.mxu0 %v2042_v37  ;;  %v2120_v35 = vld [vmem:[%s2695_s1 + $0x228] sm:$0xff]   ;;  %v2122_v36 = vld [vmem:[%s2695_s1 + $0x1f0] sm:$0xff]  }
  0x2d   :  { %1019 = vmatprep.mubr.bf16.mxu0 %v2045_v39  ;;  %1051 = vmatprep.mubr.bf16.mxu1 %v1550_v44  ;;  %v2108_v37 = vld [vmem:[%s2696_s0 + $0x128] ss:$36 sps:$4 sm:$0xff]   ;;  %v2123_v39 = vld [vmem:[%s2695_s1 + $0x1b0] sm:$0xff]   ;;  %v2130_v44 = vld [vmem:[%s2695_s1 + $0x1b8] sm:$0xff]  }
  0x2f   :  { %1756 = vmatpush3.bf16.msra.mxu1 %v2040_v38  ;;  %1814 = vmatpush3.bf16.msra.mxu0 %v2043_v40  ;;  %v2111_v38 = vld [vmem:[%s2696_s0 + $0x130] ss:$36 sps:$4 sm:$0xff]  }
  0x30   :  { %1757 = vmatprep.subr.bf16.mxu1 %v2044_v41  ;;  %1815 = vmatprep.subr.bf16.mxu0 %v2049_v43  ;;  %v2115_v40 = vld [vmem:[%s2696_s0 + $0x174] ss:$36 sps:$4 sm:$0xff]   ;;  %v2118_v43 = vld [vmem:[%s2696_s0 + $0x17c] ss:$36 sps:$4 sm:$0xff]  }
  0x31   :  { %v2126_v41 = vld [vmem:[%s2695_s1 + $0x230] sm:$0xff]  }
  0x32   :  { %1020 = vmatmul.mubr.bf16.gmra.mrb[8].mxu0 %v2048_v46  ;;  %1052 = vmatmul.mubr.bf16.gmra.mrb[8].mxu1 %v1549_v48  ;;  %v76_v46 = vld [vmem:[%s2696_s0 + $0x1b8] sm:$0xff]  ;;  %v2117_v48 = vld [vmem:[%s2696_s0 + $0x170] ss:$36 sps:$4 sm:$0xff]  }
  0x33   :  { %1758 = vmatpush3.bf16.msra.mxu1 %v2047_v45  ;;  %1816 = vmatpush3.bf16.msra.mxu0 %v2050_v47  ;;  %v2134_v45 = vld [vmem:[%s2695_s1 + $0x238] sm:$0xff]   ;;  %v77_v47 = vld [vmem:[%s2696_s0 + $0x1c0] sm:$0xff] }
  0x34   :  { %1759 = vmatprep.subr.bf16.mxu1 %v2051_v49  ;;  %1817 = vmatprep.subr.bf16.mxu0 %v2055_v50  ;;  %v2121_v49 = vld [vmem:[%s2696_s0 + $0x178] ss:$36 sps:$4 sm:$0xff]   ;;  %v1552_v50 = vcombine.high %v76_v46, %v76_v46 }
  0x35   :  { %1027 = vmatprep.mubr.bf16.mxu0 %v2058_v52  ;;  %1091 = vmatprep.mubr.bf16.mxu1 %v2069_v61  ;;  %v1551_v52 = vcombine.low %v76_v46, %v76_v46  ;;  %v2142_v61 = vld [vmem:[%s2696_s0 + $0xa8] ss:$36 sps:$4 sm:$0xff]  }
  0x37   :  { %1760 = vmatpush3.bf16.msra.mxu1 %v2053_v51  ;;  %1818 = vmatpush3.bf16.msra.mxu0 %v2056_v53  ;;  %v1554_v51 = vcombine.high %v77_v47, %v77_v47  ;;  %v1553_v53 = vcombine.low %v77_v47, %v77_v47 }
  0x38   :  { %1761 = vmatprep.subr.bf16.mxu1 %v2057_v54  ;;  %1819 = vmatprep.subr.bf16.mxu0 %v2062_v55  ;;  %v2133_v54 = vld [vmem:[%s2696_s0 + $0x1c] ss:$36 sps:$4 sm:$0xff]  }
  0x39   :  { %v2131_v55 = vld [vmem:[%s2696_s0 + $0x18] ss:$36 sps:$4 sm:$0xff]  }
  0x3a   :  { %1028 = vmatmul.mubr.bf16.gmra.mrb[12].mxu0 %v2061_v57  ;;  %v2136_v57 = vld [vmem:[%s2696_s0 + $0x64] ss:$36 sps:$4 sm:$0xff]  }
  0x3b   :  { %1762 = vmatpush3.bf16.msra.mxu1 %v2060_v56  ;;  %1820 = vmatpush3.bf16.msra.mxu0 %v2063_v58  ;;  %v2135_v56 = vld [vmem:[%s2696_s0 + $0x20] ss:$36 sps:$4 sm:$0xff]  }
  0x3c   :  { %1763 = vmatprep.subr.bf16.mxu1 %v2064_v59  ;;  %1821 = vmatprep.subr.bf16.mxu0 %v2066_v60  ;;  %v2138_v58 = vld [vmem:[%s2696_s0 + $0x60] ss:$36 sps:$4 sm:$0xff]   ;;  %v2139_v59 = vld [vmem:[%s2696_s0 + $0x68] ss:$36 sps:$4 sm:$0xff]  }
  0x3d   :  { %1179 = vmatprep.mubr.bf16.mxu0 %v2074_v1  ;;  %v2140_v60 = vld [vmem:[%s2696_s0 + $0xac] ss:$36 sps:$4 sm:$0xff]   ;;  %v2147_v1 = vld [vmem:[%s2696_s0 + $0xf8] ss:$36 sps:$4 sm:$0xff]  }
  0x3f   :  { %1764 = vmatpush3.bf16.msra.mxu1 %v2065_v62  ;;  %1822 = vmatpush3.bf16.msra.mxu0 %v2070_v63  ;;  %v2143_v62 = vld [vmem:[%s2696_s0 + $0xb0] ss:$36 sps:$4 sm:$0xff]  }
  0x40   :  { %1865 = vmatprep.subr.bf16.mxu1 %v2071_v0  ;;  %1938 = vmatprep.subr.bf16.mxu0 %v2159_v7  ;;  %v2144_v63 = vld [vmem:[%s2696_s0 + $0xf4] ss:$36 sps:$4 sm:$0xff]  }
  0x41   :  { %v2146_v0 = vld [vmem:[%s2696_s0 + $0xf0] ss:$36 sps:$4 sm:$0xff]  }
  0x42   :  { %1092 = vmatmul.mubr.bf16.vlgmr.msra.gmra.mrb[12].mxu1 %v2067_v2  ;;  %1180 = vmatmul.mubr.bf16.vlgmr.msra.gmra.mrb[16].mxu0 %v2072_v3  ;;  %v2148_v2 = vld [vmem:[%s2696_s0 + $0x13c] ss:$36 sps:$4 sm:$0xff]  }
  0x43   :  { %1866 = vmatpush3.bf16.msra.mxu1 %v2075_v4  ;;  %1939 = vmatpush3.bf16.msra.mxu0 %v2076_v5  ;;  %v2150_v3 = vld [vmem:[%s2696_s0 + $0x138] ss:$36 sps:$4 sm:$0xff]   ;;  %v2151_v4 = vld [vmem:[%s2696_s0 + $0x140] ss:$36 sps:$4 sm:$0xff]  }
  0x44   :  { %1099 = vmatprep.mubr.bf16.mxu1 %v2077_v6  ;;  %1867 = vmatprep.subr.bf16.mxu1 %v2079_v8  ;;  %v2152_v5 = vld [vmem:[%s2696_s0 + $0x184] ss:$36 sps:$4 sm:$0xff]  }
  0x45   :  { %1187 = vmatprep.mubr.bf16.mxu0 %v2082_v10  ;;  %1940 = vmatprep.subr.bf16.mxu0 %v2159_v7  ;;  %v78_v6 = vld [vmem:[%s2696_s0 + $0x1c8] sm:$0xff]  ;;  %v2154_v8 = vld [vmem:[%s2696_s0 + $0x180] ss:$36 sps:$4 sm:$0xff]  }
  0x46   :  { %v1556_v10 = vcombine.high %v78_v6, %v78_v6 }
  0x47   :  { %1868 = vmatpush3.bf16.msra.mxu1 %v2081_v9  ;;  %1941 = vmatpush3.bf16.msra.mxu0 %v2085_v11  ;;  %v2155_v9 = vld [vmem:[%s2696_s0 + $0x188] ss:$36 sps:$4 sm:$0xff]   ;;  %v1555_v11 = vcombine.low %v78_v6, %v78_v6 }
  0x48   :  { %1869 = vmatprep.subr.bf16.mxu1 %v2086_v12  ;;  %1942 = vmatprep.subr.bf16.mxu0 %v2159_v7  ;;  %v2158_v12 = vld [vmem:[%s2696_s0 + $0x1d0] ss:$0 sps:$4 sm:$0xff]  }
  0x4a   :  { %1100 = vmatmul.mubr.bf16.gmra.mrb[16].mxu1 %v2080_v13  ;;  %1188 = vmatmul.mubr.bf16.gmra.mrb[20].mxu0 %v2084_v14 }
  0x4b   :  { %1107 = vmatprep.mubr.bf16.mxu1 %v2087_v15  ;;  %1870 = vmatpush3.bf16.msra.mxu1 %v2089_v16 }
  0x4c   :  { %1195 = vmatprep.mubr.bf16.mxu0 %v2091_v17  ;;  %1943 = vmatpush3.bf16.msra.mxu0 %v2094_v18 }
  0x4d   :  { %1871 = vmatprep.subr.bf16.mxu1 %v2095_v19  ;;  %1944 = vmatprep.subr.bf16.mxu0 %v2159_v7 }
  0x4f   :  { %1872 = vmatpush3.bf16.msra.mxu1 %v2096_v20 }
  0x50   :  { %1945 = vmatpush3.bf16.msra.mxu0 %v2103_v25  ;;  %1873 = vmatprep.subr.bf16.mxu1 %v2104_v26 }
  0x51   :  { %1946 = vmatprep.subr.bf16.mxu0 %v2159_v7 }
  0x52   :  { %1108 = vmatmul.mubr.bf16.gmra.mrb[20].mxu1 %v2090_v21  ;;  %1196 = vmatmul.mubr.bf16.gmra.mrb[24].mxu0 %v2093_v22 }
  0x53   :  { %1115 = vmatprep.mubr.bf16.mxu1 %v2097_v23  ;;  %1203 = vmatprep.mubr.bf16.mxu0 %v2100_v24 }
  0x54   :  { %1874 = vmatpush3.bf16.msra.mxu1 %v2105_v27  ;;  %1947 = vmatpush3.bf16.msra.mxu0 %v2112_v30 }
  0x55   :  { %1875 = vmatprep.subr.bf16.mxu1 %v2113_v31  ;;  %1948 = vmatprep.subr.bf16.mxu0 %v2159_v7 }
  0x58   :  { %1876 = vmatpush3.bf16.msra.mxu1 %v2114_v32  ;;  %1949 = vmatpush3.bf16.msra.mxu0 %v2120_v35 }
  0x59   :  { %1877 = vmatprep.subr.bf16.mxu1 %v2122_v36  ;;  %1950 = vmatprep.subr.bf16.mxu0 %v2159_v7 }
  0x5a   :  { %1116 = vmatmul.mubr.bf16.gmra.mrb[24].mxu1 %v2099_v28  ;;  %1204 = vmatmul.mubr.bf16.gmra.mrb[28].mxu0 %v2102_v29 }
  0x5b   :  { %1123 = vmatprep.mubr.bf16.mxu1 %v2106_v33  ;;  %1211 = vmatprep.mubr.bf16.mxu0 %v2109_v34 }
  0x5c   :  { %1878 = vmatpush3.bf16.msra.mxu1 %v2123_v39  ;;  %1951 = vmatpush3.bf16.msra.mxu0 %v2126_v41 }
  0x5d   :  { %1879 = vmatprep.subr.bf16.mxu1 %v2128_v42  ;;  %1952 = vmatprep.subr.bf16.mxu0 %v2159_v7 }
  0x60   :  { %1880 = vmatpush3.bf16.msra.mxu1 %v2130_v44  ;;  %1953 = vmatpush3.bf16.msra.mxu0 %v2134_v45 }
  0x62   :  { %1124 = vmatmul.mubr.bf16.gmra.mrb[28].mxu1 %v2108_v37  ;;  %1212 = vmatmul.mubr.bf16.gmra.mrb[32].mxu0 %v2111_v38 }
  0x63   :  { %1131 = vmatprep.mubr.bf16.mxu1 %v2115_v40  ;;  %1219 = vmatprep.mubr.bf16.mxu0 %v2118_v43 }
  0x6a   :  { %1132 = vmatmul.mubr.bf16.gmra.mrb[32].mxu1 %v2117_v48  ;;  %1220 = vmatmul.mubr.bf16.gmra.mrb[36].mxu0 %v2121_v49 }
  0x6b   :  { %1139 = vmatprep.mubr.bf16.mxu1 %v1552_v50  ;;  %1227 = vmatprep.mubr.bf16.mxu0 %v1554_v51 }
  0x72   :  { %1140 = vmatmul.mubr.bf16.gmra.mrb[36].mxu1 %v1551_v52  ;;  %1228 = vmatmul.mubr.bf16.gmra.mrb[40].mxu0 %v1553_v53 }
  0x73   :  { %1267 = vmatprep.mubr.bf16.mxu1 %v2133_v54  ;;  %1954 = vmatprep.mubr.msk.bf16.mxu0 %vm2160_vm0, %v2159_v7 }
  0x7a   :  { %1268 = vmatmul.mubr.bf16.vlgmr.msra.gmra.mrb[40].mxu1 %v2131_v55  ;;  %1955 = vmatmul.mubr.bf16.vlgmr.msra.gmra.mrb[44].mxu0 %v2135_v56  ;;  %v2613_v55 = vld [vmem:[%s2697_s2] ss:$0 sm:$0xff] }
  0x7b   :  { %1275 = vmatprep.mubr.bf16.mxu1 %v2136_v57  ;;  %1958 = vmatprep.mubr.msk.bf16.mxu0 %vm2160_vm0, %v2159_v7 }
  0x82   :  { %1276 = vmatmul.mubr.bf16.gmra.mrb[44].mxu1 %v2138_v58  ;;  %1959 = vmatmul.mubr.bf16.gmra.mrb[48].mxu0 %v2139_v59 }
  0x83   :  { %1283 = vmatprep.mubr.bf16.mxu1 %v2140_v60  ;;  %1962 = vmatprep.mubr.msk.bf16.mxu0 %vm2160_vm0, %v2159_v7 }
  0x8a   :  { %1284 = vmatmul.mubr.bf16.gmra.mrb[48].mxu1 %v2142_v61  ;;  %1963 = vmatmul.mubr.bf16.gmra.mrb[52].mxu0 %v2143_v62 }
  0x8b   :  { %1291 = vmatprep.mubr.bf16.mxu1 %v2144_v63  ;;  %1966 = vmatprep.mubr.msk.bf16.mxu0 %vm2160_vm0, %v2159_v7 }
  0x92   :  { %1292 = vmatmul.mubr.bf16.gmra.mrb[52].mxu1 %v2146_v0  ;;  %1967 = vmatmul.mubr.bf16.gmra.mrb[56].mxu0 %v2147_v1 }
  0x93   :  { %1299 = vmatprep.mubr.bf16.mxu1 %v2148_v2  ;;  %1970 = vmatprep.mubr.msk.bf16.mxu0 %vm2160_vm0, %v2159_v7 }
  0x9a   :  { %1300 = vmatmul.mubr.bf16.gmra.mrb[56].mxu1 %v2150_v3  ;;  %1971 = vmatmul.mubr.bf16.gmra.mrb[60].mxu0 %v2151_v4 }
  0x9b   :  { %1307 = vmatprep.mubr.bf16.mxu1 %v2152_v5  ;;  %1974 = vmatprep.mubr.msk.bf16.mxu0 %vm2160_vm0, %v2159_v7 }
  0xa2   :  { %1308 = vmatmul.mubr.bf16.gmra.mrb[60].mxu1 %v2154_v8  ;;  %1975 = vmatmul.mubr.bf16.gmra.mrb[64].mxu0 %v2155_v9 }
  0xa3   :  { %1315 = vmatprep.mubr.bf16.mxu1 %v1556_v10  ;;  %1978 = vmatprep.mubr.msk.bf16.mxu0 %vm2160_vm0, %v2159_v7 }
  0xaa   :  { %1316 = vmatmul.mubr.bf16.gmra.mrb[64].mxu1 %v1555_v11  ;;  %1979 = vmatmul.mubr.bf16.gmra.mrb[68].mxu0 %v2158_v12 }
  0xf5   :  { %v1731_v13 = vpop.f32.mrb[0].mxu1  ;;  %v1707_v14 = vpop.f32.mrb[0].mxu0 }
  0xf6   :  { %v1732_v15 = vpop.f32.mrb[1].mxu1  ;;  %v1708_v16 = vpop.f32.mrb[1].mxu0 }
  0xf7   :  { %v2596_v17 = vadd.f32 %v1732_v15, %v1731_v13  ;;  %v1734_v18 = vpop.f32.mrb[2].mxu1  ;;  %v1709_v19 = vadd.f32 %v1708_v16, %v1707_v14  ;;  %v1710_v20 = vpop.f32.mrb[2].mxu0 }
  0xf8   :  { %v1735_v21 = vpop.f32.mrb[3].mxu1  ;;  %v1711_v22 = vpop.f32.mrb[3].mxu0 }
  0xf9   :  { %v2598_v23 = vadd.f32 %v1735_v21, %v1734_v18  ;;  %v1712_v7 = vadd.f32 %v1711_v22, %v1710_v20  ;;  %v1006_v58 = vadd.f32 %v1709_v19, %v2613_v55 }
  0xfb   :  { %v1009_v1 = vadd.f32 %v1712_v7, %v2613_v55 }
  0xfd   :  { %v1713_v24 = vpop.f32.mrb[4].mxu0  ;;  %v1737_v25 = vpop.f32.mrb[4].mxu1 }
  0xfe   :  { %v1714_v26 = vpop.f32.mrb[5].mxu0  ;;  %v1738_v27 = vpop.f32.mrb[5].mxu1 }
  0xff   :  { %v1715_v28 = vadd.f32 %v1714_v26, %v1713_v24  ;;  %v1716_v29 = vpop.f32.mrb[6].mxu0  ;;  %v2600_v30 = vadd.f32 %v1738_v27, %v1737_v25  ;;  %v1740_v31 = vpop.f32.mrb[6].mxu1 }
 0x100   :  { %v1717_v32 = vpop.f32.mrb[7].mxu0  ;;  %v1741_v33 = vpop.f32.mrb[7].mxu1 }
 0x101   :  { %v1718_v34 = vadd.f32 %v1717_v32, %v1716_v29  ;;  %v2602_v35 = vadd.f32 %v1741_v33, %v1740_v31  ;;  %v1014_v13 = vadd.f32 %v1715_v28, %v2613_v55 }
 0x103   :  { %v1017_v21 = vadd.f32 %v1718_v34, %v2613_v55 }
 0x105   :  { %v1719_v36 = vpop.f32.mrb[8].mxu0  ;;  %v1743_v37 = vpop.f32.mrb[8].mxu1 }
 0x106   :  { %v1720_v38 = vpop.f32.mrb[9].mxu0  ;;  %v1744_v39 = vpop.f32.mrb[9].mxu1 }
 0x107   :  { %v1721_v40 = vadd.f32 %v1720_v38, %v1719_v36  ;;  %v1722_v41 = vpop.f32.mrb[10].mxu0  ;;  %v2604_v42 = vadd.f32 %v1744_v39, %v1743_v37  ;;  %v1746_v43 = vpop.f32.mrb[10].mxu1 }
 0x108   :  { %v1723_v44 = vpop.f32.mrb[11].mxu0  ;;  %v1747_v45 = vpop.f32.mrb[11].mxu1 }
 0x109   :  { %v1724_v46 = vadd.f32 %v1723_v44, %v1722_v41  ;;  %v1022_v33 = vadd.f32 %v1721_v40, %v2613_v55 }
 0x10b   :  { %v1025_v43 = vadd.f32 %v1724_v46, %v2613_v55 }
 0x10d   :  { %v1725_v47 = vpop.f32.mrb[12].mxu0 }
 0x10e   :  { %v1726_v48 = vpop.f32.mrb[13].mxu0 }
 0x10f   :  { %v2606_v49 = vadd.f32 %v1726_v48, %v1725_v47  ;;  %v1728_v50 = vpop.f32.mrb[14].mxu0 }
 0x110   :  { %v1729_v51 = vpop.f32.mrb[15].mxu0 }
 0x111   :  { %v2608_v52 = vadd.f32 %v1729_v51, %v1728_v50 }
 0x115   :  { %v1765_v53 = vpop.f32.mrb[12].mxu1  ;;  %v1823_v54 = vpop.f32.mrb[16].mxu0 }
 0x116   :  { %v1766_v56 = vpop.f32.mrb[13].mxu1  ;;  %v1824_v57 = vpop.f32.mrb[17].mxu0 }
 0x117   :  { %v1767_v59 = vadd.f32 %v1766_v56, %v1765_v53  ;;  %v1768_v60 = vpop.f32.mrb[14].mxu1  ;;  %v1825_v61 = vadd.f32 %v1824_v57, %v1823_v54  ;;  %v1826_v62 = vpop.f32.mrb[18].mxu0  ;;  %v1030_v57 = vadd.f32 %v2606_v49, %v2613_v55 }
 0x118   :  { %v1769_v63 = vpop.f32.mrb[15].mxu1  ;;  %v1827_v0 = vpop.f32.mrb[19].mxu0 }
 0x119   :  { %v1094_v2 = vadd.f32 %v1767_v59, %v1006_v58  ;;  %v1770_v3 = vadd.f32 %v1769_v63, %v1768_v60  ;;  %v1828_v4 = vadd.f32 %v1827_v0, %v1826_v62  ;;  %v1033_v63 = vadd.f32 %v2608_v52, %v2613_v55 }
 0x11b   :  { %v1097_v5 = vadd.f32 %v1770_v3, %v1009_v1  ;;  %v2617_v6 = vadd.f32 %v1825_v61, %v1094_v2 }
 0x11d   :  { %v2619_v8 = vadd.f32 %v1828_v4, %v1097_v5  ;;  %v1771_v9 = vpop.f32.mrb[16].mxu1  ;;  %v1829_v10 = vpop.f32.mrb[20].mxu0 }
 0x11e   :  { %v1772_v11 = vpop.f32.mrb[17].mxu1  ;;  %v1830_v12 = vpop.f32.mrb[21].mxu0 }
 0x11f   :  { %v1773_v14 = vadd.f32 %v1772_v11, %v1771_v9  ;;  %v1774_v15 = vpop.f32.mrb[18].mxu1  ;;  %v1831_v16 = vadd.f32 %v1830_v12, %v1829_v10  ;;  %v1832_v18 = vpop.f32.mrb[22].mxu0  ;;  %v1038_v12 = vadd.f32 %v2596_v17, %v2613_v55 }
 0x120   :  { %v1775_v19 = vpop.f32.mrb[19].mxu1  ;;  %v1833_v20 = vpop.f32.mrb[23].mxu0 }
 0x121   :  { %v1102_v22 = vadd.f32 %v1773_v14, %v1014_v13  ;;  %v1776_v7 = vadd.f32 %v1775_v19, %v1774_v15  ;;  %v1834_v24 = vadd.f32 %v1833_v20, %v1832_v18  ;;  %v1041_v19 = vadd.f32 %v2598_v23, %v2613_v55 }
 0x123   :  { %v1105_v25 = vadd.f32 %v1776_v7, %v1017_v21  ;;  %v2623_v26 = vadd.f32 %v1831_v16, %v1102_v22 }
 0x125   :  { %v2625_v27 = vadd.f32 %v1834_v24, %v1105_v25  ;;  %v1777_v29 = vpop.f32.mrb[20].mxu1  ;;  %v1835_v31 = vpop.f32.mrb[24].mxu0 }
 0x126   :  { %v1778_v32 = vpop.f32.mrb[21].mxu1  ;;  %v1836_v28 = vpop.f32.mrb[25].mxu0 }
 0x127   :  { %v1779_v36 = vadd.f32 %v1778_v32, %v1777_v29  ;;  %v1780_v37 = vpop.f32.mrb[22].mxu1  ;;  %v1837_v38 = vadd.f32 %v1836_v28, %v1835_v31  ;;  %v1838_v39 = vpop.f32.mrb[26].mxu0  ;;  %v1046_v28 = vadd.f32 %v2600_v30, %v2613_v55 }
 0x128   :  { %v1781_v41 = vpop.f32.mrb[23].mxu1  ;;  %v1839_v34 = vpop.f32.mrb[27].mxu0 }
 0x129   :  { %v1110_v44 = vadd.f32 %v1779_v36, %v1022_v33  ;;  %v1782_v45 = vadd.f32 %v1781_v41, %v1780_v37  ;;  %v1840_v47 = vadd.f32 %v1839_v34, %v1838_v39  ;;  %v1049_v41 = vadd.f32 %v2602_v35, %v2613_v55 }
 0x12b   :  { %v1113_v48 = vadd.f32 %v1782_v45, %v1025_v43  ;;  %v2629_v50 = vadd.f32 %v1837_v38, %v1110_v44 }
 0x12d   :  { %v2631_v51 = vadd.f32 %v1840_v47, %v1113_v48  ;;  %v1783_v53 = vpop.f32.mrb[24].mxu1  ;;  %v1841_v54 = vpop.f32.mrb[28].mxu0 }
 0x12e   :  { %v1784_v56 = vpop.f32.mrb[25].mxu1  ;;  %v1842_v40 = vpop.f32.mrb[29].mxu0 }
 0x12f   :  { %v1785_v58 = vadd.f32 %v1784_v56, %v1783_v53  ;;  %v1786_v59 = vpop.f32.mrb[26].mxu1  ;;  %v1843_v60 = vadd.f32 %v1842_v40, %v1841_v54  ;;  %v1844_v61 = vpop.f32.mrb[30].mxu0  ;;  %v1054_v40 = vadd.f32 %v2604_v42, %v2613_v55 }
 0x130   :  { %v1787_v46 = vpop.f32.mrb[27].mxu1  ;;  %v1845_v62 = vpop.f32.mrb[31].mxu0 }
 0x131   :  { %v1118_v0 = vadd.f32 %v1785_v58, %v1030_v57  ;;  %v1788_v1 = vadd.f32 %v1787_v46, %v1786_v59  ;;  %v1846_v2 = vadd.f32 %v1845_v62, %v1844_v61 }
 0x133   :  { %v1121_v3 = vadd.f32 %v1788_v1, %v1033_v63  ;;  %v2637_v4 = vadd.f32 %v1843_v60, %v1118_v0 }
 0x135   :  { %v2639_v5 = vadd.f32 %v1846_v2, %v1121_v3  ;;  %v1789_v9 = vpop.f32.mrb[28].mxu1  ;;  %v1847_v10 = vpop.f32.mrb[32].mxu0 }
 0x136   :  { %v1790_v49 = vpop.f32.mrb[29].mxu1  ;;  %v1848_v11 = vpop.f32.mrb[33].mxu0 }
 0x137   :  { %v1791_v13 = vadd.f32 %v1790_v49, %v1789_v9  ;;  %v1792_v14 = vpop.f32.mrb[30].mxu1  ;;  %v1849_v15 = vadd.f32 %v1848_v11, %v1847_v10  ;;  %v1850_v16 = vpop.f32.mrb[34].mxu0 }
 0x138   :  { %v1793_v52 = vpop.f32.mrb[31].mxu1  ;;  %v1851_v18 = vpop.f32.mrb[35].mxu0 }
 0x139   :  { %v1126_v20 = vadd.f32 %v1791_v13, %v1038_v12  ;;  %v1794_v21 = vadd.f32 %v1793_v52, %v1792_v14  ;;  %v1852_v22 = vadd.f32 %v1851_v18, %v1850_v16 }
 0x13b   :  { %v1129_v7 = vadd.f32 %v1794_v21, %v1041_v19  ;;  %v2645_v24 = vadd.f32 %v1849_v15, %v1126_v20 }
 0x13d   :  { %v2647_v25 = vadd.f32 %v1852_v22, %v1129_v7  ;;  %v1795_v29 = vpop.f32.mrb[32].mxu1  ;;  %v1853_v31 = vpop.f32.mrb[36].mxu0 }
 0x13e   :  { %v1796_v17 = vpop.f32.mrb[33].mxu1  ;;  %v1854_v32 = vpop.f32.mrb[37].mxu0 }
 0x13f   :  { %v1797_v33 = vadd.f32 %v1796_v17, %v1795_v29  ;;  %v1798_v36 = vpop.f32.mrb[34].mxu1  ;;  %v1855_v37 = vadd.f32 %v1854_v32, %v1853_v31  ;;  %v1856_v38 = vpop.f32.mrb[38].mxu0 }
 0x140   :  { %v1799_v23 = vpop.f32.mrb[35].mxu1  ;;  %v1857_v39 = vpop.f32.mrb[39].mxu0 }
 0x141   :  { %v1134_v34 = vadd.f32 %v1797_v33, %v1046_v28  ;;  %v1800_v43 = vadd.f32 %v1799_v23, %v1798_v36  ;;  %v1858_v44 = vadd.f32 %v1857_v39, %v1856_v38 }
 0x143   :  { %v1137_v45 = vadd.f32 %v1800_v43, %v1049_v41  ;;  %v2653_v47 = vadd.f32 %v1855_v37, %v1134_v34 }
 0x145   :  { %v2655_v48 = vadd.f32 %v1858_v44, %v1137_v45  ;;  %v1801_v53 = vpop.f32.mrb[36].mxu1  ;;  %v1859_v54 = vpop.f32.mrb[40].mxu0 }
 0x146   :  { %v1802_v30 = vpop.f32.mrb[37].mxu1  ;;  %v1860_v56 = vpop.f32.mrb[41].mxu0 }
 0x147   :  { %v1803_v57 = vadd.f32 %v1802_v30, %v1801_v53  ;;  %v1804_v58 = vpop.f32.mrb[38].mxu1  ;;  %v1861_v59 = vadd.f32 %v1860_v56, %v1859_v54  ;;  %v1862_v60 = vpop.f32.mrb[42].mxu0 }
 0x148   :  { %v1805_v35 = vpop.f32.mrb[39].mxu1  ;;  %v1863_v61 = vpop.f32.mrb[43].mxu0 }
 0x149   :  { %v1142_v46 = vadd.f32 %v1803_v57, %v1054_v40 }
 0x14b   :  { %v2659_v62 = vadd.f32 %v1861_v59, %v1142_v46 }
 0x14d   :  { %v1881_v63 = vpop.f32.mrb[40].mxu1  ;;  %v1357_v0 = vpop.f32.mrb[44].mxu0 }
 0x14e   :  { %v1882_v1 = vpop.f32.mrb[41].mxu1  ;;  %v1956_v2 = vpop.f32.mrb[45].mxu0 }
 0x14f   :  { %v1883_v3 = vadd.f32 %v1882_v1, %v1881_v63  ;;  %v1884_v9 = vpop.f32.mrb[42].mxu1  ;;  %v1360_v10 = vpop.f32.mrb[46].mxu0 }
 0x150   :  { %v1885_v49 = vpop.f32.mrb[43].mxu1  ;;  %v1957_v11 = vpop.f32.mrb[47].mxu0 }
 0x151   :  { %v1886_v12 = vadd.f32 %v1885_v49, %v1884_v9  ;;  %v1270_v42 = vadd.f32 %v1883_v3, %v2617_v6 }
 0x153   :  { %v1358_v55 = vadd.f32 %v1357_v0, %v1270_v42  ;;  %v1273_v13 = vadd.f32 %v1886_v12, %v2619_v8 }
 0x155   :  { %v1361_v14 = vadd.f32 %v1360_v10, %v1273_v13  ;;  %v1887_v15 = vpop.f32.mrb[44].mxu1  ;;  %v1365_v16 = vpop.f32.mrb[48].mxu0  ;;  %v1411_v19 = vmax.f32 %v1358_v55, 0.0 }
 0x156   :  { %v1888_v52 = vpop.f32.mrb[45].mxu1  ;;  %v1960_v18 = vpop.f32.mrb[49].mxu0 }
 0x157   :  { %v1412_v20 = vmax.f32 %v1361_v14, 0.0  ;;  %v1889_v21 = vadd.f32 %v1888_v52, %v1887_v15  ;;  %v1890_v22 = vpop.f32.mrb[46].mxu1  ;;  %v1368_v7 = vpop.f32.mrb[50].mxu0 }
 0x158   :  { %v1891_v29 = vpop.f32.mrb[47].mxu1  ;;  %v1961_v31 = vpop.f32.mrb[51].mxu0 }
 0x159   :  { %v1659_v17 = vpack.c.bf16 %v1412_v20, %v1411_v19  ;;  %v1892_v32 = vadd.f32 %v1891_v29, %v1890_v22  ;;  %v1278_v28 = vadd.f32 %v1889_v21, %v2623_v26 }
 0x15b   :  { %1660 = vst [vmem:[%s2698_s3] sm:$0xff] %v1659_v17   ;;  %v1366_v6 = vadd.f32 %v1365_v16, %v1278_v28  ;;  %v1281_v8 = vadd.f32 %v1892_v32, %v2625_v27 }
 0x15d   :  { %v1369_v33 = vadd.f32 %v1368_v7, %v1281_v8  ;;  %v1893_v36 = vpop.f32.mrb[48].mxu1  ;;  %v1373_v37 = vpop.f32.mrb[52].mxu0  ;;  %v1413_v39 = vmax.f32 %v1366_v6, 0.0 }
 0x15e   :  { %v1894_v38 = vpop.f32.mrb[49].mxu1  ;;  %v1964_v23 = vpop.f32.mrb[53].mxu0 }
 0x15f   :  { %v1414_v41 = vmax.f32 %v1369_v33, 0.0  ;;  %v1895_v34 = vadd.f32 %v1894_v38, %v1893_v36  ;;  %v1896_v43 = vpop.f32.mrb[50].mxu1  ;;  %v1376_v44 = vpop.f32.mrb[54].mxu0 }
 0x160   :  { %v1897_v45 = vpop.f32.mrb[51].mxu1  ;;  %v1965_v53 = vpop.f32.mrb[55].mxu0 }
 0x161   :  { %v1664_v26 = vpack.c.bf16 %v1414_v41, %v1413_v39  ;;  %v1898_v54 = vadd.f32 %v1897_v45, %v1896_v43  ;;  %v1286_v30 = vadd.f32 %v1895_v34, %v2629_v50 }
 0x163   :  { %1686 = vst [vmem:[%s2698_s3 + $0x8] sm:$0xff] %v1664_v26   ;;  %v1374_v27 = vadd.f32 %v1373_v37, %v1286_v30  ;;  %v1289_v56 = vadd.f32 %v1898_v54, %v2631_v51 }
 0x165   :  { %v1377_v40 = vadd.f32 %v1376_v44, %v1289_v56  ;;  %v1899_v57 = vpop.f32.mrb[52].mxu1  ;;  %v1381_v58 = vpop.f32.mrb[56].mxu0  ;;  %v1415_v35 = vmax.f32 %v1374_v27, 0.0 }
 0x166   :  { %v1900_v59 = vpop.f32.mrb[53].mxu1  ;;  %v1968_v60 = vpop.f32.mrb[57].mxu0 }
 0x167   :  { %v1416_v61 = vmax.f32 %v1377_v40, 0.0  ;;  %v1901_v46 = vadd.f32 %v1900_v59, %v1899_v57  ;;  %v1902_v63 = vpop.f32.mrb[54].mxu1  ;;  %v1384_v0 = vpop.f32.mrb[58].mxu0 }
 0x168   :  { %v1903_v1 = vpop.f32.mrb[55].mxu1  ;;  %v1969_v2 = vpop.f32.mrb[59].mxu0 }
 0x169   :  { %v1669_v50 = vpack.c.bf16 %v1416_v61, %v1415_v35  ;;  %v1904_v3 = vadd.f32 %v1903_v1, %v1902_v63  ;;  %v1294_v9 = vadd.f32 %v1901_v46, %v2637_v4 }
 0x16b   :  { %1687 = vst [vmem:[%s2698_s3 + $0x10] sm:$0xff] %v1669_v50   ;;  %v1382_v51 = vadd.f32 %v1381_v58, %v1294_v9  ;;  %v1297_v10 = vadd.f32 %v1904_v3, %v2639_v5 }
 0x16d   :  { %v1385_v49 = vadd.f32 %v1384_v0, %v1297_v10  ;;  %v1905_v11 = vpop.f32.mrb[56].mxu1  ;;  %v1389_v12 = vpop.f32.mrb[60].mxu0  ;;  %v1417_v13 = vmax.f32 %v1382_v51, 0.0 }
 0x16e   :  { %v1906_v42 = vpop.f32.mrb[57].mxu1  ;;  %v1972_v55 = vpop.f32.mrb[61].mxu0 }
 0x16f   :  { %v1418_v14 = vmax.f32 %v1385_v49, 0.0  ;;  %v1907_v15 = vadd.f32 %v1906_v42, %v1905_v11  ;;  %v1908_v16 = vpop.f32.mrb[58].mxu1  ;;  %v1392_v52 = vpop.f32.mrb[62].mxu0 }
 0x170   :  { %v1909_v18 = vpop.f32.mrb[59].mxu1  ;;  %v1973_v19 = vpop.f32.mrb[63].mxu0 }
 0x171   :  { %v1674_v4 = vpack.c.bf16 %v1418_v14, %v1417_v13  ;;  %v1910_v20 = vadd.f32 %v1909_v18, %v1908_v16  ;;  %v1302_v21 = vadd.f32 %v1907_v15, %v2645_v24 }
 0x173   :  { %1688 = vst [vmem:[%s2698_s3 + $0x18] sm:$0xff] %v1674_v4   ;;  %v1390_v5 = vadd.f32 %v1389_v12, %v1302_v21  ;;  %v1305_v22 = vadd.f32 %v1910_v20, %v2647_v25 }
 0x175   :  { %v1393_v7 = vadd.f32 %v1392_v52, %v1305_v22  ;;  %v1911_v29 = vpop.f32.mrb[60].mxu1  ;;  %v1397_v31 = vpop.f32.mrb[64].mxu0  ;;  %v1419_v28 = vmax.f32 %v1390_v5, 0.0 }
 0x176   :  { %v1912_v17 = vpop.f32.mrb[61].mxu1  ;;  %v1976_v32 = vpop.f32.mrb[65].mxu0 }
 0x177   :  { %v1420_v6 = vmax.f32 %v1393_v7, 0.0  ;;  %v1913_v8 = vadd.f32 %v1912_v17, %v1911_v29  ;;  %v1914_v33 = vpop.f32.mrb[62].mxu1  ;;  %v1400_v36 = vpop.f32.mrb[66].mxu0 }
 0x178   :  { %v1915_v37 = vpop.f32.mrb[63].mxu1  ;;  %v1977_v38 = vpop.f32.mrb[67].mxu0 }
 0x179   :  { %v1679_v24 = vpack.c.bf16 %v1420_v6, %v1419_v28  ;;  %v1916_v23 = vadd.f32 %v1915_v37, %v1914_v33  ;;  %v1310_v39 = vadd.f32 %v1913_v8, %v2653_v47 }
 0x17b   :  { %1689 = vst [vmem:[%s2698_s3 + $0x20] sm:$0xff] %v1679_v24   ;;  %v1398_v25 = vadd.f32 %v1397_v31, %v1310_v39  ;;  %v1313_v41 = vadd.f32 %v1916_v23, %v2655_v48 }
 0x17d   :  { %v1401_v34 = vadd.f32 %v1400_v36, %v1313_v41  ;;  %v1917_v43 = vpop.f32.mrb[64].mxu1  ;;  %v1405_v44 = vpop.f32.mrb[68].mxu0  ;;  %v1421_v26 = vmax.f32 %v1398_v25, 0.0 }
 0x17e   :  { %v1918_v45 = vpop.f32.mrb[65].mxu1  ;;  %v1980_v53 = vpop.f32.mrb[69].mxu0 }
 0x17f   :  { %v1422_v54 = vmax.f32 %v1401_v34, 0.0  ;;  %v1919_v30 = vadd.f32 %v1918_v45, %v1917_v43  ;;  %v1920_v27 = vpop.f32.mrb[66].mxu1  ;;  %v1408_v56 = vpop.f32.mrb[70].mxu0 }
 0x180   :  { %v1921_v40 = vpop.f32.mrb[67].mxu1  ;;  %v1981_v57 = vpop.f32.mrb[71].mxu0 }
 0x181   :  { %v1684_v47 = vpack.c.bf16 %v1422_v54, %v1421_v26  ;;  %v1318_v58 = vadd.f32 %v1919_v30, %v2659_v62 }
 0x183   :  { %1690 = vst [vmem:[%s2698_s3 + $0x28] sm:$0xff] %v1684_v47   ;;  %v1406_v48 = vadd.f32 %v1405_v44, %v1318_v58 }
 0x185   :  { %v1423_v59 = vmax.f32 %v1406_v48, 0.0 }
 0x187   :  { %v1655_v60 = vpack.c.bf16 %v1423_v59, %v1423_v59 }
 0x189   :  { %1489 = vst [vmem:[%s2698_s3 + $0x30] sm:$0xf] %v1655_v60 }

</bundles_post_ra>
